<compile_context>
chip_gen: v5e
topology: v5e:2x2
jax: 0.10.0
libtpu: 0.0.40
codegen_flags: <defaults>
</compile_context>

<pallas_src>
import functools

import jax
import jax.numpy as jnp
from jax import lax
from jax.experimental import pallas as pl
from jax.experimental.pallas import tpu as pltpu

BN_EPS = 1e-5
MATMUL_DTYPE = jnp.bfloat16            # MXU input dtype (f32 accumulation)


def _round_up(x, m):
    return (x + m - 1) // m * m


def _largest_divisor_leq(n, cap):
    cap = max(1, min(n, cap))
    for d in range(cap, 0, -1):
        if n % d == 0:
            return d
    return 1


def _hw_defaults():
    """Generation-aware row cap / VMEM budget (v7x has 64 MiB, v5e/v6e 128)."""
    vmem_cap = 64 * 1024 * 1024
    try:
        if hasattr(pltpu, "get_tpu_info"):
            info = pltpu.get_tpu_info()
            vmem_cap = int(getattr(info, "vmem_capacity_bytes", vmem_cap))
    except Exception:
        pass
    if vmem_cap >= 100 * 1024 * 1024:          # v4 / v5e / v6e (128 MiB VMEM)
        return 1024, 96 * 1024 * 1024
    return 512, 44 * 1024 * 1024               # v7x-class (64 MiB VMEM)


ROW_CAP, VMEM_LIMIT_BYTES = _hw_defaults()


def _compiler_params():
    return pltpu.CompilerParams(
        dimension_semantics=("parallel",),
        vmem_limit_bytes=VMEM_LIMIT_BYTES,
    )


# ----------------------------------------------------------------------------
# In-kernel helpers.
# ----------------------------------------------------------------------------
def _store_stats(st_ref, acc, rows):
    """Per-tile BN partials: row 0 = sum, row 1 = centered sum-of-squares."""
    ssum = jnp.sum(acc, axis=0, keepdims=True)            # (1, C_p) f32
    mu = ssum * (1.0 / rows)
    d = acc - mu
    m2 = jnp.sum(d * d, axis=0, keepdims=True)
    st_ref[0:1, :] = ssum                                  # direct row writes
    st_ref[1:2, :] = m2                                    # (rows 2..7 unused)


# ----------------------------------------------------------------------------
# Conv pass 1 kernels (stats from the f32 accumulator, bf16 y output).
# ----------------------------------------------------------------------------
def _conv_banded_kernel(band_out, wo, with_sc, taps_ref, w_ref, *outs):
    """Stride-1 3x3 conv: kw folded into lanes, kh gathered in-kernel from a
    halo'd row band (3 shifted slices of the resident tile, 3 matmuls)."""
    if with_sc:
        y_ref, ys_ref, st_ref, sts_ref = outs
    else:
        y_ref, st_ref = outs
    rows = band_out * wo
    kp = taps_ref.shape[1]

    def tap(kh):                                   # (rows, K3p) shifted slice
        return taps_ref[kh * wo: kh * wo + rows, :]

    def wmat(idx):                                 # (K3p, C_p) weight slab
        return w_ref[idx * kp: (idx + 1) * kp, :]

    t1 = tap(1)
    acc = jnp.dot(tap(0), wmat(0), preferred_element_type=jnp.float32)
    acc = acc + jnp.dot(t1, wmat(1), preferred_element_type=jnp.float32)
    acc = acc + jnp.dot(tap(2), wmat(2), preferred_element_type=jnp.float32)
    y_ref[...] = acc.astype(y_ref.dtype)
    _store_stats(st_ref, acc, rows)
    if with_sc:
        # Fused shortcut: 1x1 conv / identity embedded at the central-tap rows.
        acc_s = jnp.dot(t1, wmat(3), preferred_element_type=jnp.float32)
        ys_ref[...] = acc_s.astype(ys_ref.dtype)
        _store_stats(sts_ref, acc_s, rows)


def _conv_flat_kernel(with_sc, taps_ref, w_ref, *outs):
    """Fallback for strided conv1: fully folded (9*Cin) taps, one matmul."""
    if with_sc:
        y_ref, ys_ref, st_ref, sts_ref = outs
    else:
        y_ref, st_ref = outs
    rows = taps_ref.shape[0]
    kp = taps_ref.shape[1]

    def wmat(idx):
        return w_ref[idx * kp: (idx + 1) * kp, :]

    t = taps_ref[...]
    acc = jnp.dot(t, wmat(0), preferred_element_type=jnp.float32)
    y_ref[...] = acc.astype(y_ref.dtype)
    _store_stats(st_ref, acc, rows)
    if with_sc:
        acc_s = jnp.dot(t, wmat(1), preferred_element_type=jnp.float32)
        ys_ref[...] = acc_s.astype(ys_ref.dtype)
        _store_stats(sts_ref, acc_s, rows)


def _conv_banded_call(taps, w_all, band_out, wo, with_sc, m, c_p):
    rows_in = (band_out + 2) * wo
    rows = band_out * wo
    kp = taps.shape[1]
    n_tiles = taps.shape[0] // rows_in
    assert n_tiles * rows_in == taps.shape[0] and n_tiles * rows == m

    tile_spec = pl.BlockSpec((rows, c_p), lambda i: (i, 0))
    stat_spec = pl.BlockSpec((8, c_p), lambda i: (i, 0))
    tile_shape = jax.ShapeDtypeStruct((m, c_p), MATMUL_DTYPE)
    stat_shape = jax.ShapeDtypeStruct((n_tiles * 8, c_p), jnp.float32)
    if with_sc:
        out_specs = (tile_spec, tile_spec, stat_spec, stat_spec)
        out_shape = (tile_shape, tile_shape, stat_shape, stat_shape)
    else:
        out_specs = (tile_spec, stat_spec)
        out_shape = (tile_shape, stat_shape)

    return pl.pallas_call(
        functools.partial(_conv_banded_kernel, band_out, wo, with_sc),
        grid=(n_tiles,),
        in_specs=[
            pl.BlockSpec((rows_in, kp), lambda i: (i, 0)),
            pl.BlockSpec(w_all.shape, lambda i: (0, 0)),   # constant index map
        ],
        out_specs=out_specs,
        out_shape=out_shape,
        compiler_params=_compiler_params(),
    )(taps, w_all)


def _conv_flat_call(taps, w_all, tile_rows, with_sc, m, c_p):
    kp = taps.shape[1]
    assert taps.shape[0] == m and m % tile_rows == 0
    n_tiles = m // tile_rows

    tile_spec = pl.BlockSpec((tile_rows, c_p), lambda i: (i, 0))
    stat_spec = pl.BlockSpec((8, c_p), lambda i: (i, 0))
    tile_shape = jax.ShapeDtypeStruct((m, c_p), MATMUL_DTYPE)
    stat_shape = jax.ShapeDtypeStruct((n_tiles * 8, c_p), jnp.float32)
    if with_sc:
        out_specs = (tile_spec, tile_spec, stat_spec, stat_spec)
        out_shape = (tile_shape, tile_shape, stat_shape, stat_shape)
    else:
        out_specs = (tile_spec, stat_spec)
        out_shape = (tile_shape, stat_shape)

    return pl.pallas_call(
        functools.partial(_conv_flat_kernel, with_sc),
        grid=(n_tiles,),
        in_specs=[
            pl.BlockSpec((tile_rows, kp), lambda i: (i, 0)),
            pl.BlockSpec(w_all.shape, lambda i: (0, 0)),
        ],
        out_specs=out_specs,
        out_shape=out_shape,
        compiler_params=_compiler_params(),
    )(taps, w_all)


# ----------------------------------------------------------------------------
# Pass 2 kernel: BN affine (+ fused shortcut BN affine) + ReLU.
# ----------------------------------------------------------------------------
def _bn_apply_kernel(has_res, y_ref, scale_ref, bias_ref, *rest):
    if has_res:
        res_ref, rscale_ref, rbias_ref, out_ref = rest
    else:
        (out_ref,) = rest
    y = y_ref[...].astype(jnp.float32) * scale_ref[...] + bias_ref[...]
    if has_res:
        y = y + res_ref[...].astype(jnp.float32) * rscale_ref[...] + rbias_ref[...]
    out_ref[...] = jnp.maximum(y, 0.0).astype(out_ref.dtype)


def _bn_apply_call(y, scale, bias, tile_rows, out_dtype,
                   res=None, rscale=None, rbias=None):
    m, c_p = y.shape
    n_tiles = m // tile_rows
    has_res = res is not None
    tile_spec = pl.BlockSpec((tile_rows, c_p), lambda i: (i, 0))
    vec_spec = pl.BlockSpec((1, c_p), lambda i: (0, 0))
    in_specs = [tile_spec, vec_spec, vec_spec]
    args = [y, scale, bias]
    if has_res:
        in_specs += [tile_spec, vec_spec, vec_spec]
        args += [res, rscale, rbias]
    return pl.pallas_call(
        functools.partial(_bn_apply_kernel, has_res),
        grid=(n_tiles,),
        in_specs=in_specs,
        out_specs=tile_spec,
        out_shape=jax.ShapeDtypeStruct((m, c_p), out_dtype),
        compiler_params=_compiler_params(),
    )(*args)


# ----------------------------------------------------------------------------
# Plain-JAX glue: tap construction, weight folding, stats reduction.
# ----------------------------------------------------------------------------
def _banded_rowtaps(x_nhwc, band_out, k3_pad, dtype):
    """Stride-1 taps, kw folded into lanes, halo'd row bands.
    Returns ((N * Ho/band_out) * (band_out+2)*Wo, K3_pad) bf16."""
    n, h, w, c = x_nhwc.shape
    xp = jnp.pad(x_nhwc, ((0, 0), (1, 1), (1, 1), (0, 0)))        # (n,h+2,w+2,c)
    cols = [xp[:, :, kw:kw + w, :] for kw in range(3)]
    colrow = jnp.concatenate(cols, axis=3)                        # (n,h+2,w,3c)
    colrow = jnp.pad(colrow, ((0, 0), (0, 0), (0, 0), (0, k3_pad - 3 * c)))
    nb = h // band_out
    band_in = band_out + 2
    bands = [colrow[:, b * band_out: b * band_out + band_in] for b in range(nb)]
    banded = jnp.stack(bands, axis=1)                             # (n,nb,bi,w,k3p)
    return banded.reshape(n * nb * band_in * w, k3_pad).astype(dtype)


def _im2col_flat(x_nhwc, stride, k_pad, dtype):
    """Fully folded 3x3 / pad=1 taps: (N*Ho*Wo, K_pad).  Used for stride != 1."""
    n, h, w, c = x_nhwc.shape
    ho = (h + 2 - 3) // stride + 1
    wo = (w + 2 - 3) // stride + 1
    xp = jnp.pad(x_nhwc, ((0, 0), (1, 1), (1, 1), (0, 0)))
    taps = []
    for kh in range(3):
        for kw in range(3):
            t = lax.slice(
                xp,
                (0, kh, kw, 0),
                (n, kh + stride * (ho - 1) + 1, kw + stride * (wo - 1) + 1, c),
                (1, stride, stride, 1),
            )
            taps.append(t)
    col = jnp.stack(taps, axis=3).reshape(n * ho * wo, 9 * c)
    col = jnp.pad(col, ((0, 0), (0, k_pad - 9 * c)))
    return col.astype(dtype)


def _bn_scale_bias(stats, rows_per_tile, gamma_p, beta_p):
    """Combine per-tile (sum, centered-M2) partials exactly (Chan formula)."""
    c_p = stats.shape[-1]
    st = stats.reshape(-1, 8, c_p)
    ssum = st[:, 0, :]
    m2 = st[:, 1, :]
    n_tiles = st.shape[0]
    m_total = n_tiles * rows_per_tile
    mu_t = ssum / rows_per_tile
    mean = jnp.sum(ssum, axis=0) / m_total
    var = (jnp.sum(m2, axis=0)
           + rows_per_tile * jnp.sum((mu_t - mean[None, :]) ** 2, axis=0)) / m_total
    var = jnp.maximum(var, 0.0)                         # training-mode (biased) var
    scale = gamma_p * lax.rsqrt(var + BN_EPS)
    bias = beta_p - mean * scale
    return scale.reshape(1, c_p), bias.reshape(1, c_p)


# ----------------------------------------------------------------------------
# BasicBlock forward (NCHW in / NCHW out), training-mode BatchNorm.
# ----------------------------------------------------------------------------
def basic_block_forward(x_nchw, params, stride=1):
    n, c_in, h, w = x_nchw.shape
    planes = params["w1"].shape[0]
    with_proj = (stride != 1) or (c_in != planes)

    x = jnp.transpose(x_nchw, (0, 2, 3, 1)).astype(jnp.float32)     # NHWC
    c_p = _round_up(planes, 128)
    ho = (h + 2 - 3) // stride + 1
    wo = (w + 2 - 3) // stride + 1
    m = n * ho * wo

    assert wo % 8 == 0, "this demo kernel assumes Wo is a multiple of 8"
    band_out = _largest_divisor_leq(ho, max(1, ROW_CAP // wo))
    tile_rows = band_out * wo                                       # divides m

    def padded_vec(name):
        return jnp.pad(params[name].astype(jnp.float32), (0, c_p - planes))

    g1, b1 = padded_vec("g1"), padded_vec("b1")
    g2, b2 = padded_vec("g2"), padded_vec("b2")

    # Shortcut weights embedded at the central-tap rows of conv1's taps.
    if with_proj:
        ws_oi = params["ws"].reshape(planes, c_in).T                # (Cin, planes)
    else:
        ws_oi = jnp.eye(c_in, dtype=jnp.float32)                    # identity

    # ---- conv1 (+ fused shortcut matmul), per-tile BN partials ----
    if stride == 1:
        k1p = _round_up(3 * c_in, 128)
        taps1 = _banded_rowtaps(x, band_out, k1p, MATMUL_DTYPE)
        w1_k = jnp.transpose(params["w1"], (2, 3, 1, 0)).reshape(3, 3 * c_in, planes)
        w1_k = jnp.pad(w1_k, ((0, 0), (0, k1p - 3 * c_in), (0, c_p - planes)))
        w1_k = w1_k.reshape(3 * k1p, c_p)
        ws_emb = jnp.zeros((k1p, c_p), jnp.float32)
        ws_emb = ws_emb.at[c_in:2 * c_in, :planes].set(ws_oi)       # kw = 1 rows
        w_all = jnp.concatenate([w1_k, ws_emb], axis=0).astype(MATMUL_DTYPE)
        y1, ys, st1, sts = _conv_banded_call(taps1, w_all, band_out, wo, True, m, c_p)
    else:
        k1p = _round_up(9 * c_in, 128)
        taps1 = _im2col_flat(x, stride, k1p, MATMUL_DTYPE)
        w1_m = jnp.transpose(params["w1"], (2, 3, 1, 0)).reshape(9 * c_in, planes)
        w1_m = jnp.pad(w1_m, ((0, k1p - 9 * c_in), (0, c_p - planes)))
        ws_emb = jnp.zeros((k1p, c_p), jnp.float32)
        ws_emb = ws_emb.at[4 * c_in:5 * c_in, :planes].set(ws_oi)   # central tap
        w_all = jnp.concatenate([w1_m, ws_emb], axis=0).astype(MATMUL_DTYPE)
        y1, ys, st1, sts = _conv_flat_call(taps1, w_all, tile_rows, True, m, c_p)

    s1, bb1 = _bn_scale_bias(st1, tile_rows, g1, b1)
    if with_proj:
        gs, bs = padded_vec("gs"), padded_vec("bs")
        ss, bbs = _bn_scale_bias(sts, tile_rows, gs, bs)
    else:
        ss = jnp.ones((1, c_p), jnp.float32)
        bbs = jnp.zeros((1, c_p), jnp.float32)

    # ---- out1 = relu(bn1(conv1(x)))  (stored bf16) ----
    out1 = _bn_apply_call(y1, s1, bb1, tile_rows, MATMUL_DTYPE)

    # ---- conv2 (always stride 1, banded path) ----
    out1_nhwc = out1[:, :planes].reshape(n, ho, wo, planes)
    k2p = _round_up(3 * planes, 128)
    taps2 = _banded_rowtaps(out1_nhwc, band_out, k2p, MATMUL_DTYPE)
    w2_k = jnp.transpose(params["w2"], (2, 3, 1, 0)).reshape(3, 3 * planes, planes)
    w2_k = jnp.pad(w2_k, ((0, 0), (0, k2p - 3 * planes), (0, c_p - planes)))
    w2_k = w2_k.reshape(3 * k2p, c_p).astype(MATMUL_DTYPE)
    y2, st2 = _conv_banded_call(taps2, w2_k, band_out, wo, False, m, c_p)
    s2, bb2 = _bn_scale_bias(st2, tile_rows, g2, b2)

    # ---- out = relu(bn2(conv2(out1)) + bn_s(shortcut)) ----
    out = _bn_apply_call(y2, s2, bb2, tile_rows, jnp.float32,
                         res=ys, rscale=ss, rbias=bbs)
    out = out[:, :planes].reshape(n, ho, wo, planes)
    return jnp.transpose(out, (0, 3, 1, 2))                          # NCHW


# ----------------------------------------------------------------------------
# Pure-JAX references (sanity check only).
#   quantized=False -> exact f32 reference of the PyTorch module
#   quantized=True  -> same bf16 quantization points as the kernel pipeline
# ----------------------------------------------------------------------------
def _reference_forward(x, p, stride, quantized=False):
    qd = jnp.bfloat16 if quantized else None

    def conv(t, wgt, s, pad):
        if qd is not None:
            t = t.astype(qd)
            wgt = wgt.astype(qd)
        return lax.conv_general_dilated(
            t, wgt, (s, s), ((pad, pad), (pad, pad)),
            dimension_numbers=("NCHW", "OIHW", "NCHW"),
            preferred_element_type=jnp.float32)

    def bn(t, g, b):
        mean = jnp.mean(t, axis=(0, 2, 3), keepdims=True)
        var = jnp.mean((t - mean) ** 2, axis=(0, 2, 3), keepdims=True)
        scale = g[None, :, None, None] * lax.rsqrt(var + BN_EPS)
        bias = b[None, :, None, None] - mean * scale
        tq = t.astype(qd).astype(jnp.float32) if qd is not None else t
        return tq * scale + bias

    planes = p["w1"].shape[0]
    out = jax.nn.relu(bn(conv(x, p["w1"], stride, 1), p["g1"], p["b1"]))
    if qd is not None:                       # intermediate activation is bf16
        out = out.astype(qd).astype(jnp.float32)
    out = bn(conv(out, p["w2"], 1, 1), p["g2"], p["b2"])
    if stride != 1 or x.shape[1] != planes:
        sc = bn(conv(x, p["ws"], stride, 0), p["gs"], p["bs"])
    else:
        sc = x.astype(qd).astype(jnp.float32) if qd is not None else x
    return jax.nn.relu(out + sc)


def _make_params(key, c_in, planes, with_proj):
    ks = jax.random.split(key, 9)
    p = {
        "w1": 0.1 * jax.random.normal(ks[0], (planes, c_in, 3, 3), jnp.float32),
        "w2": 0.1 * jax.random.normal(ks[1], (planes, planes, 3, 3), jnp.float32),
        "g1": 1.0 + 0.1 * jax.random.normal(ks[2], (planes,), jnp.float32),
        "b1": 0.1 * jax.random.normal(ks[3], (planes,), jnp.float32),
        "g2": 1.0 + 0.1 * jax.random.normal(ks[4], (planes,), jnp.float32),
        "b2": 0.1 * jax.random.normal(ks[5], (planes,), jnp.float32),
    }
    if with_proj:
        p["ws"] = 0.1 * jax.random.normal(ks[6], (planes, c_in, 1, 1), jnp.float32)
        p["gs"] = 1.0 + 0.1 * jax.random.normal(ks[7], (planes,), jnp.float32)
        p["bs"] = 0.1 * jax.random.normal(ks[8], (planes,), jnp.float32)
    return p


if __name__ == "__main__":
    key = jax.random.PRNGKey(0)
    # (name, N, C_in, H, W, planes, stride): exercises projection (channel
    # change), projection (stride 2) and identity shortcut branches.
    configs = [
        ("proj_stride1", 2, 4, 16, 16, 8, 1),
        ("proj_stride2", 2, 8, 16, 16, 8, 2),
        ("identity", 2, 8, 16, 16, 8, 1),
    ]
    for name, n, c_in, h, w, planes, stride in configs:
        key, kx, kp = jax.random.split(key, 3)
        x = jax.random.normal(kx, (n, c_in, h, w), jnp.float32)
        with_proj = (stride != 1) or (c_in != planes)
        params = _make_params(kp, c_in, planes, with_proj)

        fwd = jax.jit(functools.partial(basic_block_forward, stride=stride))
        out = jax.block_until_ready(fwd(x, params))

        ho = (h + 2 - 3) // stride + 1
        wo = (w + 2 - 3) // stride + 1
        assert out.shape == (n, planes, ho, wo), (name, out.shape)

        # Tight check vs a reference with identical bf16 quantization points.
        ref_q = _reference_forward(x, params, stride, quantized=True)
        err_q = float(jnp.max(jnp.abs(out - ref_q)))
        assert err_q < 5e-3, f"{name}: mismatch vs bf16-matmul reference: {err_q}"

        # Looser sanity check vs the exact f32 reference (bf16 matmul inputs
        # legitimately introduce ~1e-2 level error at these magnitudes).
        ref_f32 = _reference_forward(x, params, stride)
        err_f = float(jnp.max(jnp.abs(out - ref_f32)))
        assert err_f < 1e-1, f"{name}: mismatch vs f32 reference: {err_f}"

    print("KERNEL_OK")
</pallas_src>

<mosaic_0001>
module attributes {stable_mosaic.version = 11 : i64} {
  func.func @_conv_banded_kernel(%arg0: i32, %arg1: memref<288x128xbf16, #tpu.memory_space<vmem>>, %arg2: memref<512x128xbf16, #tpu.memory_space<vmem>>, %arg3: memref<256x128xbf16, #tpu.memory_space<vmem>>, %arg4: memref<256x128xbf16, #tpu.memory_space<vmem>>, %arg5: memref<8x128xf32, #tpu.memory_space<vmem>>, %arg6: memref<8x128xf32, #tpu.memory_space<vmem>>) attributes {dimension_semantics = [#tpu.dimension_semantics<parallel>], iteration_bounds = array<i64: 2>, scalar_prefetch = 0 : i64, scratch_operands = 0 : i64, tpu.core_type = #tpu.core_type<tc>, window_params = [{transform_indices = @transform_0, window_bounds = array<i64: 288, 128>}, {pipeline_mode = #tpu.pipeline_mode<synchronous>, transform_indices = @transform_1, window_bounds = array<i64: 512, 128>}, {transform_indices = @transform_2, window_bounds = array<i64: 256, 128>}, {transform_indices = @transform_3, window_bounds = array<i64: 256, 128>}, {transform_indices = @transform_4, window_bounds = array<i64: 8, 128>}, {transform_indices = @transform_5, window_bounds = array<i64: 8, 128>}]} {
    %c16 = arith.constant 16 : index
    %c0 = arith.constant 0 : index
    %0 = vector.load %arg1[%c16, %c0] : memref<288x128xbf16, #tpu.memory_space<vmem>>, vector<256x128xbf16>
    %c0_0 = arith.constant 0 : index
    %c0_1 = arith.constant 0 : index
    %1 = vector.load %arg1[%c0_0, %c0_1] : memref<288x128xbf16, #tpu.memory_space<vmem>>, vector<256x128xbf16>
    %c0_2 = arith.constant 0 : index
    %c0_3 = arith.constant 0 : index
    %2 = vector.load %arg2[%c0_2, %c0_3] : memref<512x128xbf16, #tpu.memory_space<vmem>>, vector<128x128xbf16>
    %cst = arith.constant dense<0.000000e+00> : vector<256x128xf32>
    %3 = tpu.matmul %1, %2, %cst {dimension_numbers = #tpu.dot_dimension_numbers<[1], [0], [0], [1], [0, 0, 1, 1], [], []>} : vector<256x128xbf16>, vector<128x128xbf16>, vector<256x128xf32> -> vector<256x128xf32>
    %c128 = arith.constant 128 : index
    %c0_4 = arith.constant 0 : index
    %4 = vector.load %arg2[%c128, %c0_4] : memref<512x128xbf16, #tpu.memory_space<vmem>>, vector<128x128xbf16>
    %cst_5 = arith.constant dense<0.000000e+00> : vector<256x128xf32>
    %5 = tpu.matmul %0, %4, %cst_5 {dimension_numbers = #tpu.dot_dimension_numbers<[1], [0], [0], [1], [0, 0, 1, 1], [], []>} : vector<256x128xbf16>, vector<128x128xbf16>, vector<256x128xf32> -> vector<256x128xf32>
    %6 = arith.addf %3, %5 : vector<256x128xf32>
    %c32 = arith.constant 32 : index
    %c0_6 = arith.constant 0 : index
    %7 = vector.load %arg1[%c32, %c0_6] : memref<288x128xbf16, #tpu.memory_space<vmem>>, vector<256x128xbf16>
    %c256 = arith.constant 256 : index
    %c0_7 = arith.constant 0 : index
    %8 = vector.load %arg2[%c256, %c0_7] : memref<512x128xbf16, #tpu.memory_space<vmem>>, vector<128x128xbf16>
    %cst_8 = arith.constant dense<0.000000e+00> : vector<256x128xf32>
    %9 = tpu.matmul %7, %8, %cst_8 {dimension_numbers = #tpu.dot_dimension_numbers<[1], [0], [0], [1], [0, 0, 1, 1], [], []>} : vector<256x128xbf16>, vector<128x128xbf16>, vector<256x128xf32> -> vector<256x128xf32>
    %10 = arith.addf %6, %9 : vector<256x128xf32>
    %11 = arith.truncf %10 : vector<256x128xf32> to vector<256x128xbf16>
    %c0_9 = arith.constant 0 : index
    %c0_10 = arith.constant 0 : index
    %12 = vector.load %arg3[%c0_9, %c0_10] : memref<256x128xbf16, #tpu.memory_space<vmem>>, vector<256x128xbf16>
    tpu.vector_store %arg3[%c0_9, %c0_10], %11 {strides = array<i32>} : memref<256x128xbf16, #tpu.memory_space<vmem>>, vector<256x128xbf16>,
    %cst_11 = arith.constant dense<0.000000e+00> : vector<128xf32>
    %13 = vector.multi_reduction <add>, %10, %cst_11 [0] : vector<256x128xf32> to vector<128xf32>
    %14 = vector.shape_cast %13 : vector<128xf32> to vector<1x128xf32>
    %cst_12 = arith.constant 3.906250e-03 : f32
    %15 = vector.broadcast %cst_12 : f32 to vector<1x128xf32>
    %16 = arith.mulf %14, %15 : vector<1x128xf32>
    %17 = vector.broadcast %16 : vector<1x128xf32> to vector<256x128xf32>
    %18 = arith.subf %10, %17 : vector<256x128xf32>
    %19 = arith.mulf %18, %18 : vector<256x128xf32>
    %cst_13 = arith.constant dense<0.000000e+00> : vector<128xf32>
    %20 = vector.multi_reduction <add>, %19, %cst_13 [0] : vector<256x128xf32> to vector<128xf32>
    %21 = vector.shape_cast %20 : vector<128xf32> to vector<1x128xf32>
    %c0_14 = arith.constant 0 : index
    %c0_15 = arith.constant 0 : index
    %22 = vector.load %arg5[%c0_14, %c0_15] : memref<8x128xf32, #tpu.memory_space<vmem>>, vector<1x128xf32>
    tpu.vector_store %arg5[%c0_14, %c0_15], %14 {strides = array<i32>} : memref<8x128xf32, #tpu.memory_space<vmem>>, vector<1x128xf32>,
    %c1 = arith.constant 1 : index
    %c0_16 = arith.constant 0 : index
    %23 = vector.load %arg5[%c1, %c0_16] : memref<8x128xf32, #tpu.memory_space<vmem>>, vector<1x128xf32>
    tpu.vector_store %arg5[%c1, %c0_16], %21 {strides = array<i32>} : memref<8x128xf32, #tpu.memory_space<vmem>>, vector<1x128xf32>,
    %c384 = arith.constant 384 : index
    %c0_17 = arith.constant 0 : index
    %24 = vector.load %arg2[%c384, %c0_17] : memref<512x128xbf16, #tpu.memory_space<vmem>>, vector<128x128xbf16>
    %cst_18 = arith.constant dense<0.000000e+00> : vector<256x128xf32>
    %25 = tpu.matmul %0, %24, %cst_18 {dimension_numbers = #tpu.dot_dimension_numbers<[1], [0], [0], [1], [0, 0, 1, 1], [], []>} : vector<256x128xbf16>, vector<128x128xbf16>, vector<256x128xf32> -> vector<256x128xf32>
    %26 = arith.truncf %25 : vector<256x128xf32> to vector<256x128xbf16>
    %c0_19 = arith.constant 0 : index
    %c0_20 = arith.constant 0 : index
    %27 = vector.load %arg4[%c0_19, %c0_20] : memref<256x128xbf16, #tpu.memory_space<vmem>>, vector<256x128xbf16>
    tpu.vector_store %arg4[%c0_19, %c0_20], %26 {strides = array<i32>} : memref<256x128xbf16, #tpu.memory_space<vmem>>, vector<256x128xbf16>,
    %cst_21 = arith.constant dense<0.000000e+00> : vector<128xf32>
    %28 = vector.multi_reduction <add>, %25, %cst_21 [0] : vector<256x128xf32> to vector<128xf32>
    %29 = vector.shape_cast %28 : vector<128xf32> to vector<1x128xf32>
    %cst_22 = arith.constant 3.906250e-03 : f32
    %30 = vector.broadcast %cst_22 : f32 to vector<1x128xf32>
    %31 = arith.mulf %29, %30 : vector<1x128xf32>
    %32 = vector.broadcast %31 : vector<1x128xf32> to vector<256x128xf32>
    %33 = arith.subf %25, %32 : vector<256x128xf32>
    %34 = arith.mulf %33, %33 : vector<256x128xf32>
    %cst_23 = arith.constant dense<0.000000e+00> : vector<128xf32>
    %35 = vector.multi_reduction <add>, %34, %cst_23 [0] : vector<256x128xf32> to vector<128xf32>
    %36 = vector.shape_cast %35 : vector<128xf32> to vector<1x128xf32>
    %c0_24 = arith.constant 0 : index
    %c0_25 = arith.constant 0 : index
    %37 = vector.load %arg6[%c0_24, %c0_25] : memref<8x128xf32, #tpu.memory_space<vmem>>, vector<1x128xf32>
    tpu.vector_store %arg6[%c0_24, %c0_25], %29 {strides = array<i32>} : memref<8x128xf32, #tpu.memory_space<vmem>>, vector<1x128xf32>,
    %c1_26 = arith.constant 1 : index
    %c0_27 = arith.constant 0 : index
    %38 = vector.load %arg6[%c1_26, %c0_27] : memref<8x128xf32, #tpu.memory_space<vmem>>, vector<1x128xf32>
    tpu.vector_store %arg6[%c1_26, %c0_27], %36 {strides = array<i32>} : memref<8x128xf32, #tpu.memory_space<vmem>>, vector<1x128xf32>,
    return
  }
  func.func @transform_0(%arg0: i32) -> (i32, i32) {
    %c0_i32 = arith.constant 0 : i32
    %c0_i32_0 = arith.constant 0 : i32
    return %arg0, %c0_i32 : i32, i32
  }
  func.func @transform_1(%arg0: i32) -> (i32, i32) {
    %c0_i32 = arith.constant 0 : i32
    %c0_i32_0 = arith.constant 0 : i32
    %c0_i32_1 = arith.constant 0 : i32
    return %c0_i32, %c0_i32_0 : i32, i32
  }
  func.func @transform_2(%arg0: i32) -> (i32, i32) {
    %c0_i32 = arith.constant 0 : i32
    %c0_i32_0 = arith.constant 0 : i32
    return %arg0, %c0_i32 : i32, i32
  }
  func.func @transform_3(%arg0: i32) -> (i32, i32) {
    %c0_i32 = arith.constant 0 : i32
    %c0_i32_0 = arith.constant 0 : i32
    return %arg0, %c0_i32 : i32, i32
  }
  func.func @transform_4(%arg0: i32) -> (i32, i32) {
    %c0_i32 = arith.constant 0 : i32
    %c0_i32_0 = arith.constant 0 : i32
    return %arg0, %c0_i32 : i32, i32
  }
  func.func @transform_5(%arg0: i32) -> (i32, i32) {
    %c0_i32 = arith.constant 0 : i32
    %c0_i32_0 = arith.constant 0 : i32
    return %arg0, %c0_i32 : i32, i32
  }
}

module attributes {stable_mosaic.version = 11 : i64} {
  func.func @_bn_apply_kernel(%arg0: i32, %arg1: memref<256x128xbf16, #tpu.memory_space<vmem>>, %arg2: memref<1x128xf32, #tpu.memory_space<vmem>>, %arg3: memref<1x128xf32, #tpu.memory_space<vmem>>, %arg4: memref<256x128xbf16, #tpu.memory_space<vmem>>) attributes {dimension_semantics = [#tpu.dimension_semantics<parallel>], iteration_bounds = array<i64: 2>, scalar_prefetch = 0 : i64, scratch_operands = 0 : i64, tpu.core_type = #tpu.core_type<tc>, window_params = [{transform_indices = @transform_0, window_bounds = array<i64: 256, 128>}, {pipeline_mode = #tpu.pipeline_mode<synchronous>, transform_indices = @transform_1, window_bounds = array<i64: 1, 128>}, {pipeline_mode = #tpu.pipeline_mode<synchronous>, transform_indices = @transform_2, window_bounds = array<i64: 1, 128>}, {transform_indices = @transform_3, window_bounds = array<i64: 256, 128>}]} {
    %c0 = arith.constant 0 : index
    %c0_0 = arith.constant 0 : index
    %0 = vector.load %arg1[%c0, %c0_0] : memref<256x128xbf16, #tpu.memory_space<vmem>>, vector<256x128xbf16>
    %1 = arith.extf %0 : vector<256x128xbf16> to vector<256x128xf32>
    %c0_1 = arith.constant 0 : index
    %c0_2 = arith.constant 0 : index
    %2 = vector.load %arg2[%c0_1, %c0_2] : memref<1x128xf32, #tpu.memory_space<vmem>>, vector<1x128xf32>
    %3 = vector.broadcast %2 : vector<1x128xf32> to vector<256x128xf32>
    %4 = arith.mulf %1, %3 : vector<256x128xf32>
    %c0_3 = arith.constant 0 : index
    %c0_4 = arith.constant 0 : index
    %5 = vector.load %arg3[%c0_3, %c0_4] : memref<1x128xf32, #tpu.memory_space<vmem>>, vector<1x128xf32>
    %6 = vector.broadcast %5 : vector<1x128xf32> to vector<256x128xf32>
    %7 = arith.addf %4, %6 : vector<256x128xf32>
    %cst = arith.constant 0.000000e+00 : f32
    %8 = vector.broadcast %cst : f32 to vector<256x128xf32>
    %9 = arith.maximumf %7, %8 : vector<256x128xf32>
    %10 = arith.truncf %9 : vector<256x128xf32> to vector<256x128xbf16>
    %c0_5 = arith.constant 0 : index
    %c0_6 = arith.constant 0 : index
    %11 = vector.load %arg4[%c0_5, %c0_6] : memref<256x128xbf16, #tpu.memory_space<vmem>>, vector<256x128xbf16>
    tpu.vector_store %arg4[%c0_5, %c0_6], %10 {strides = array<i32>} : memref<256x128xbf16, #tpu.memory_space<vmem>>, vector<256x128xbf16>,
    return
  }
  func.func @transform_0(%arg0: i32) -> (i32, i32) {
    %c0_i32 = arith.constant 0 : i32
    %c0_i32_0 = arith.constant 0 : i32
    return %arg0, %c0_i32 : i32, i32
  }
  func.func @transform_1(%arg0: i32) -> (i32, i32) {
    %c0_i32 = arith.constant 0 : i32
    %c0_i32_0 = arith.constant 0 : i32
    %c0_i32_1 = arith.constant 0 : i32
    return %c0_i32, %c0_i32_0 : i32, i32
  }
  func.func @transform_2(%arg0: i32) -> (i32, i32) {
    %c0_i32 = arith.constant 0 : i32
    %c0_i32_0 = arith.constant 0 : i32
    %c0_i32_1 = arith.constant 0 : i32
    return %c0_i32, %c0_i32_0 : i32, i32
  }
  func.func @transform_3(%arg0: i32) -> (i32, i32) {
    %c0_i32 = arith.constant 0 : i32
    %c0_i32_0 = arith.constant 0 : i32
    return %arg0, %c0_i32 : i32, i32
  }
}

module attributes {stable_mosaic.version = 11 : i64} {
  func.func @_conv_banded_kernel(%arg0: i32, %arg1: memref<288x128xbf16, #tpu.memory_space<vmem>>, %arg2: memref<384x128xbf16, #tpu.memory_space<vmem>>, %arg3: memref<256x128xbf16, #tpu.memory_space<vmem>>, %arg4: memref<8x128xf32, #tpu.memory_space<vmem>>) attributes {dimension_semantics = [#tpu.dimension_semantics<parallel>], iteration_bounds = array<i64: 2>, scalar_prefetch = 0 : i64, scratch_operands = 0 : i64, tpu.core_type = #tpu.core_type<tc>, window_params = [{transform_indices = @transform_0, window_bounds = array<i64: 288, 128>}, {pipeline_mode = #tpu.pipeline_mode<synchronous>, transform_indices = @transform_1, window_bounds = array<i64: 384, 128>}, {transform_indices = @transform_2, window_bounds = array<i64: 256, 128>}, {transform_indices = @transform_3, window_bounds = array<i64: 8, 128>}]} {
    %c16 = arith.constant 16 : index
    %c0 = arith.constant 0 : index
    %0 = vector.load %arg1[%c16, %c0] : memref<288x128xbf16, #tpu.memory_space<vmem>>, vector<256x128xbf16>
    %c0_0 = arith.constant 0 : index
    %c0_1 = arith.constant 0 : index
    %1 = vector.load %arg1[%c0_0, %c0_1] : memref<288x128xbf16, #tpu.memory_space<vmem>>, vector<256x128xbf16>
    %c0_2 = arith.constant 0 : index
    %c0_3 = arith.constant 0 : index
    %2 = vector.load %arg2[%c0_2, %c0_3] : memref<384x128xbf16, #tpu.memory_space<vmem>>, vector<128x128xbf16>
    %cst = arith.constant dense<0.000000e+00> : vector<256x128xf32>
    %3 = tpu.matmul %1, %2, %cst {dimension_numbers = #tpu.dot_dimension_numbers<[1], [0], [0], [1], [0, 0, 1, 1], [], []>} : vector<256x128xbf16>, vector<128x128xbf16>, vector<256x128xf32> -> vector<256x128xf32>
    %c128 = arith.constant 128 : index
    %c0_4 = arith.constant 0 : index
    %4 = vector.load %arg2[%c128, %c0_4] : memref<384x128xbf16, #tpu.memory_space<vmem>>, vector<128x128xbf16>
    %cst_5 = arith.constant dense<0.000000e+00> : vector<256x128xf32>
    %5 = tpu.matmul %0, %4, %cst_5 {dimension_numbers = #tpu.dot_dimension_numbers<[1], [0], [0], [1], [0, 0, 1, 1], [], []>} : vector<256x128xbf16>, vector<128x128xbf16>, vector<256x128xf32> -> vector<256x128xf32>
    %6 = arith.addf %3, %5 : vector<256x128xf32>
    %c32 = arith.constant 32 : index
    %c0_6 = arith.constant 0 : index
    %7 = vector.load %arg1[%c32, %c0_6] : memref<288x128xbf16, #tpu.memory_space<vmem>>, vector<256x128xbf16>
    %c256 = arith.constant 256 : index
    %c0_7 = arith.constant 0 : index
    %8 = vector.load %arg2[%c256, %c0_7] : memref<384x128xbf16, #tpu.memory_space<vmem>>, vector<128x128xbf16>
    %cst_8 = arith.constant dense<0.000000e+00> : vector<256x128xf32>
    %9 = tpu.matmul %7, %8, %cst_8 {dimension_numbers = #tpu.dot_dimension_numbers<[1], [0], [0], [1], [0, 0, 1, 1], [], []>} : vector<256x128xbf16>, vector<128x128xbf16>, vector<256x128xf32> -> vector<256x128xf32>
    %10 = arith.addf %6, %9 : vector<256x128xf32>
    %11 = arith.truncf %10 : vector<256x128xf32> to vector<256x128xbf16>
    %c0_9 = arith.constant 0 : index
    %c0_10 = arith.constant 0 : index
    %12 = vector.load %arg3[%c0_9, %c0_10] : memref<256x128xbf16, #tpu.memory_space<vmem>>, vector<256x128xbf16>
    tpu.vector_store %arg3[%c0_9, %c0_10], %11 {strides = array<i32>} : memref<256x128xbf16, #tpu.memory_space<vmem>>, vector<256x128xbf16>,
    %cst_11 = arith.constant dense<0.000000e+00> : vector<128xf32>
    %13 = vector.multi_reduction <add>, %10, %cst_11 [0] : vector<256x128xf32> to vector<128xf32>
    %14 = vector.shape_cast %13 : vector<128xf32> to vector<1x128xf32>
    %cst_12 = arith.constant 3.906250e-03 : f32
    %15 = vector.broadcast %cst_12 : f32 to vector<1x128xf32>
    %16 = arith.mulf %14, %15 : vector<1x128xf32>
    %17 = vector.broadcast %16 : vector<1x128xf32> to vector<256x128xf32>
    %18 = arith.subf %10, %17 : vector<256x128xf32>
    %19 = arith.mulf %18, %18 : vector<256x128xf32>
    %cst_13 = arith.constant dense<0.000000e+00> : vector<128xf32>
    %20 = vector.multi_reduction <add>, %19, %cst_13 [0] : vector<256x128xf32> to vector<128xf32>
    %21 = vector.shape_cast %20 : vector<128xf32> to vector<1x128xf32>
    %c0_14 = arith.constant 0 : index
    %c0_15 = arith.constant 0 : index
    %22 = vector.load %arg4[%c0_14, %c0_15] : memref<8x128xf32, #tpu.memory_space<vmem>>, vector<1x128xf32>
    tpu.vector_store %arg4[%c0_14, %c0_15], %14 {strides = array<i32>} : memref<8x128xf32, #tpu.memory_space<vmem>>, vector<1x128xf32>,
    %c1 = arith.constant 1 : index
    %c0_16 = arith.constant 0 : index
    %23 = vector.load %arg4[%c1, %c0_16] : memref<8x128xf32, #tpu.memory_space<vmem>>, vector<1x128xf32>
    tpu.vector_store %arg4[%c1, %c0_16], %21 {strides = array<i32>} : memref<8x128xf32, #tpu.memory_space<vmem>>, vector<1x128xf32>,
    return
  }
  func.func @transform_0(%arg0: i32) -> (i32, i32) {
    %c0_i32 = arith.constant 0 : i32
    %c0_i32_0 = arith.constant 0 : i32
    return %arg0, %c0_i32 : i32, i32
  }
  func.func @transform_1(%arg0: i32) -> (i32, i32) {
    %c0_i32 = arith.constant 0 : i32
    %c0_i32_0 = arith.constant 0 : i32
    %c0_i32_1 = arith.constant 0 : i32
    return %c0_i32, %c0_i32_0 : i32, i32
  }
  func.func @transform_2(%arg0: i32) -> (i32, i32) {
    %c0_i32 = arith.constant 0 : i32
    %c0_i32_0 = arith.constant 0 : i32
    return %arg0, %c0_i32 : i32, i32
  }
  func.func @transform_3(%arg0: i32) -> (i32, i32) {
    %c0_i32 = arith.constant 0 : i32
    %c0_i32_0 = arith.constant 0 : i32
    return %arg0, %c0_i32 : i32, i32
  }
}

module attributes {stable_mosaic.version = 11 : i64} {
  func.func @_bn_apply_kernel(%arg0: i32, %arg1: memref<256x128xbf16, #tpu.memory_space<vmem>>, %arg2: memref<1x128xf32, #tpu.memory_space<vmem>>, %arg3: memref<1x128xf32, #tpu.memory_space<vmem>>, %arg4: memref<256x128xbf16, #tpu.memory_space<vmem>>, %arg5: memref<1x128xf32, #tpu.memory_space<vmem>>, %arg6: memref<1x128xf32, #tpu.memory_space<vmem>>, %arg7: memref<256x128xf32, #tpu.memory_space<vmem>>) attributes {dimension_semantics = [#tpu.dimension_semantics<parallel>], iteration_bounds = array<i64: 2>, scalar_prefetch = 0 : i64, scratch_operands = 0 : i64, tpu.core_type = #tpu.core_type<tc>, window_params = [{transform_indices = @transform_0, window_bounds = array<i64: 256, 128>}, {pipeline_mode = #tpu.pipeline_mode<synchronous>, transform_indices = @transform_1, window_bounds = array<i64: 1, 128>}, {pipeline_mode = #tpu.pipeline_mode<synchronous>, transform_indices = @transform_2, window_bounds = array<i64: 1, 128>}, {transform_indices = @transform_3, window_bounds = array<i64: 256, 128>}, {pipeline_mode = #tpu.pipeline_mode<synchronous>, transform_indices = @transform_4, window_bounds = array<i64: 1, 128>}, {pipeline_mode = #tpu.pipeline_mode<synchronous>, transform_indices = @transform_5, window_bounds = array<i64: 1, 128>}, {transform_indices = @transform_6, window_bounds = array<i64: 256, 128>}]} {
    %c0 = arith.constant 0 : index
    %c0_0 = arith.constant 0 : index
    %0 = vector.load %arg1[%c0, %c0_0] : memref<256x128xbf16, #tpu.memory_space<vmem>>, vector<256x128xbf16>
    %1 = arith.extf %0 : vector<256x128xbf16> to vector<256x128xf32>
    %c0_1 = arith.constant 0 : index
    %c0_2 = arith.constant 0 : index
    %2 = vector.load %arg2[%c0_1, %c0_2] : memref<1x128xf32, #tpu.memory_space<vmem>>, vector<1x128xf32>
    %3 = vector.broadcast %2 : vector<1x128xf32> to vector<256x128xf32>
    %4 = arith.mulf %1, %3 : vector<256x128xf32>
    %c0_3 = arith.constant 0 : index
    %c0_4 = arith.constant 0 : index
    %5 = vector.load %arg3[%c0_3, %c0_4] : memref<1x128xf32, #tpu.memory_space<vmem>>, vector<1x128xf32>
    %6 = vector.broadcast %5 : vector<1x128xf32> to vector<256x128xf32>
    %7 = arith.addf %4, %6 : vector<256x128xf32>
    %c0_5 = arith.constant 0 : index
    %c0_6 = arith.constant 0 : index
    %8 = vector.load %arg4[%c0_5, %c0_6] : memref<256x128xbf16, #tpu.memory_space<vmem>>, vector<256x128xbf16>
    %9 = arith.extf %8 : vector<256x128xbf16> to vector<256x128xf32>
    %c0_7 = arith.constant 0 : index
    %c0_8 = arith.constant 0 : index
    %10 = vector.load %arg5[%c0_7, %c0_8] : memref<1x128xf32, #tpu.memory_space<vmem>>, vector<1x128xf32>
    %11 = vector.broadcast %10 : vector<1x128xf32> to vector<256x128xf32>
    %12 = arith.mulf %9, %11 : vector<256x128xf32>
    %13 = arith.addf %7, %12 : vector<256x128xf32>
    %c0_9 = arith.constant 0 : index
    %c0_10 = arith.constant 0 : index
    %14 = vector.load %arg6[%c0_9, %c0_10] : memref<1x128xf32, #tpu.memory_space<vmem>>, vector<1x128xf32>
    %15 = vector.broadcast %14 : vector<1x128xf32> to vector<256x128xf32>
    %16 = arith.addf %13, %15 : vector<256x128xf32>
    %cst = arith.constant 0.000000e+00 : f32
    %17 = vector.broadcast %cst : f32 to vector<256x128xf32>
    %18 = arith.maximumf %16, %17 : vector<256x128xf32>
    %c0_11 = arith.constant 0 : index
    %c0_12 = arith.constant 0 : index
    %19 = vector.load %arg7[%c0_11, %c0_12] : memref<256x128xf32, #tpu.memory_space<vmem>>, vector<256x128xf32>
    tpu.vector_store %arg7[%c0_11, %c0_12], %18 {strides = array<i32>} : memref<256x128xf32, #tpu.memory_space<vmem>>, vector<256x128xf32>,
    return
  }
  func.func @transform_0(%arg0: i32) -> (i32, i32) {
    %c0_i32 = arith.constant 0 : i32
    %c0_i32_0 = arith.constant 0 : i32
    return %arg0, %c0_i32 : i32, i32
  }
  func.func @transform_1(%arg0: i32) -> (i32, i32) {
    %c0_i32 = arith.constant 0 : i32
    %c0_i32_0 = arith.constant 0 : i32
    %c0_i32_1 = arith.constant 0 : i32
    return %c0_i32, %c0_i32_0 : i32, i32
  }
  func.func @transform_2(%arg0: i32) -> (i32, i32) {
    %c0_i32 = arith.constant 0 : i32
    %c0_i32_0 = arith.constant 0 : i32
    %c0_i32_1 = arith.constant 0 : i32
    return %c0_i32, %c0_i32_0 : i32, i32
  }
  func.func @transform_3(%arg0: i32) -> (i32, i32) {
    %c0_i32 = arith.constant 0 : i32
    %c0_i32_0 = arith.constant 0 : i32
    return %arg0, %c0_i32 : i32, i32
  }
  func.func @transform_4(%arg0: i32) -> (i32, i32) {
    %c0_i32 = arith.constant 0 : i32
    %c0_i32_0 = arith.constant 0 : i32
    %c0_i32_1 = arith.constant 0 : i32
    return %c0_i32, %c0_i32_0 : i32, i32
  }
  func.func @transform_5(%arg0: i32) -> (i32, i32) {
    %c0_i32 = arith.constant 0 : i32
    %c0_i32_0 = arith.constant 0 : i32
    %c0_i32_1 = arith.constant 0 : i32
    return %c0_i32, %c0_i32_0 : i32, i32
  }
  func.func @transform_6(%arg0: i32) -> (i32, i32) {
    %c0_i32 = arith.constant 0 : i32
    %c0_i32_0 = arith.constant 0 : i32
    return %arg0, %c0_i32 : i32, i32
  }
}

</mosaic_0001>

<bundles_post_ra>
// kernel: basic_block_forward.5
= control target key start
LH: loop header
LB: loop body
LE: loop exit
PB: predicated region body
PF: predicated region fallthrough
CT: control target
= control target key end

     0   :  { %s685_s12 = smov 0   ;;  %s819_s0 = inlined_call_operand.vmem [shape: bf16[512,128], index: 0, kind: input, shape index: {}]   ;;  %s820_s1 = inlined_call_operand.vmem [shape: f32[1,128], index: 1, kind: input, shape index: {}]   ;;  %s821_s2 = inlined_call_operand.vmem [shape: f32[1,128], index: 2, kind: input, shape index: {}]   ;;  %s822_s3 = inlined_call_operand.vmem [shape: bf16[512,128], index: 3, kind: output, shape index: {}]  }
   0x1 LB: > { %s462_s13 = sadd.s32 4294967295, %s663_s12   ;;  %p466_p0 = scmp.ge.s32.totalorder %s663_s12, 1  ;;  %s663_s12 = sphi %s685_s12, %s13_s12  }
   0x2   : > { %p138_p1 = scmp.lt.s32.totalorder %s663_s12, 3 }
   0x4   : > { %p139_p2 = pnand %p466_p0, %p138_p1 }
   0x5   : > { %s467_s14 = sshll.u32 (!%p139_p2), %s462_s13, 5 }
   0x6   : > { %142 = sbr.rel (%p139_p2) target bundleno = 57 (0x39), region = 32  ;;  %p163_p3 = scmp.lt.s32.totalorder (!%p139_p2), %s467_s14, 63 }
   0xb   : > { %s824_s14 = smov (!%p163_p3, %s467_s14), 63  ;;  %v706_v0 = vld [vmem:[%s820_s1] ss:$0 sm:$0xff] }
   0xc   : > { %s468_s15 = sshll.u32 %s824_s14, 2  ;;  %v714_v6 = vld [vmem:[%s821_s2] ss:$0 sm:$0xff] }
   0xd   : > { %s701_s18 = scalar_lea.vmem %s819_s0, %s468_s15  ;;  %s740_s25 = scalar_lea.vmem %s822_s3, %s468_s15 }
   0xe   : > { %v474_v1 = vld [vmem:[%s701_s18] sm:$0xff]   ;;  %v617_v2 = vld [vmem:[%s701_s18 + $0x8] sm:$0xff]   ;;  %v618_v3 = vld [vmem:[%s701_s18 + $0x10] sm:$0xff]  }
   0xf   : > { %v475_v4 = vunpack.c.l.bf16 %v474_v1  ;;  %v476_v5 = vunpack.c.h.bf16 %v474_v1  ;;  %v479_v7 = vunpack.c.l.bf16 %v617_v2  ;;  %v480_v8 = vunpack.c.h.bf16 %v617_v2  ;;  %v619_v9 = vld [vmem:[%s701_s18 + $0x18] sm:$0xff]   ;;  %v620_v30 = vld [vmem:[%s701_s18 + $0x20] sm:$0xff]   ;;  %v621_v35 = vld [vmem:[%s701_s18 + $0x28] sm:$0xff]  }
  0x10   : > { %v483_v10 = vunpack.c.l.bf16 %v618_v3  ;;  %v484_v11 = vunpack.c.h.bf16 %v618_v3  ;;  %v487_v12 = vunpack.c.l.bf16 %v619_v9  ;;  %v488_v13 = vunpack.c.h.bf16 %v619_v9  ;;  %v622_v40 = vld [vmem:[%s701_s18 + $0x30] sm:$0xff]   ;;  %v623_v45 = vld [vmem:[%s701_s18 + $0x38] sm:$0xff]   ;;  %v624_v3 = vld [vmem:[%s701_s18 + $0x40] sm:$0xff]  }
  0x11   : > { %v242_v14 = vmul.f32 %v706_v0, %v475_v4  ;;  %v243_v15 = vmul.f32 %v706_v0, %v476_v5  ;;  %v244_v16 = vmul.f32 %v706_v0, %v479_v7  ;;  %v245_v17 = vmul.f32 %v706_v0, %v480_v8 }
  0x12   : > { %v246_v18 = vmul.f32 %v706_v0, %v483_v10  ;;  %v247_v19 = vmul.f32 %v706_v0, %v484_v11  ;;  %v248_v20 = vmul.f32 %v706_v0, %v487_v12  ;;  %v249_v21 = vmul.f32 %v706_v0, %v488_v13  ;;  %v625_v13 = vld [vmem:[%s701_s18 + $0x48] sm:$0xff]  }
  0x13   : > { %v278_v22 = vadd.f32 %v714_v6, %v242_v14  ;;  %v279_v23 = vadd.f32 %v714_v6, %v243_v15  ;;  %v280_v24 = vadd.f32 %v714_v6, %v244_v16  ;;  %v281_v25 = vadd.f32 %v714_v6, %v245_v17 }
  0x14   : > { %v282_v26 = vadd.f32 %v714_v6, %v246_v18  ;;  %v283_v27 = vadd.f32 %v714_v6, %v247_v19  ;;  %v284_v28 = vadd.f32 %v714_v6, %v248_v20  ;;  %v285_v29 = vadd.f32 %v714_v6, %v249_v21  ;;  %v626_v18 = vld [vmem:[%s701_s18 + $0x50] sm:$0xff]  }
  0x15   : > { %v310_v31 = vmax.f32 %v278_v22, 0.0  ;;  %v311_v32 = vmax.f32 %v279_v23, 0.0  ;;  %v312_v33 = vmax.f32 %v280_v24, 0.0  ;;  %v313_v34 = vmax.f32 %v281_v25, 0.0  ;;  %v627_v23 = vld [vmem:[%s701_s18 + $0x58] sm:$0xff]  }
  0x16   : > { %v314_v36 = vmax.f32 %v282_v26, 0.0  ;;  %v315_v37 = vmax.f32 %v283_v27, 0.0  ;;  %v316_v38 = vmax.f32 %v284_v28, 0.0  ;;  %v317_v39 = vmax.f32 %v285_v29, 0.0 }
  0x17   : > { %v540_v41 = vpack.c.bf16 %v311_v32, %v310_v31  ;;  %v545_v42 = vpack.c.bf16 %v313_v34, %v312_v33  ;;  %v491_v43 = vunpack.c.l.bf16 %v620_v30  ;;  %v492_v44 = vunpack.c.h.bf16 %v620_v30 }
  0x18   : > { %v550_v46 = vpack.c.bf16 %v315_v37, %v314_v36  ;;  %v555_v47 = vpack.c.bf16 %v317_v39, %v316_v38  ;;  %v495_v48 = vunpack.c.l.bf16 %v621_v35  ;;  %v496_v49 = vunpack.c.h.bf16 %v621_v35 }
  0x19   : > { %541 = vst [vmem:[%s740_s25] sm:$0xff] %v540_v41   ;;  %v250_v50 = vmul.f32 %v706_v0, %v491_v43  ;;  %v251_v51 = vmul.f32 %v706_v0, %v492_v44  ;;  %v499_v52 = vunpack.c.l.bf16 %v622_v40  ;;  %v500_v53 = vunpack.c.h.bf16 %v622_v40  ;;  %v628_v40 = vld [vmem:[%s701_s18 + $0x60] sm:$0xff]  }
  0x1a   : > { %632 = vst [vmem:[%s740_s25 + $0x8] sm:$0xff] %v545_v42   ;;  %v252_v54 = vmul.f32 %v706_v0, %v495_v48  ;;  %v253_v55 = vmul.f32 %v706_v0, %v496_v49  ;;  %v503_v56 = vunpack.c.l.bf16 %v623_v45  ;;  %v504_v57 = vunpack.c.h.bf16 %v623_v45 }
  0x1b   : > { %633 = vst [vmem:[%s740_s25 + $0x10] sm:$0xff] %v550_v46   ;;  %v286_v58 = vadd.f32 %v714_v6, %v250_v50  ;;  %v287_v59 = vadd.f32 %v714_v6, %v251_v51  ;;  %v254_v60 = vmul.f32 %v706_v0, %v499_v52  ;;  %v255_v61 = vmul.f32 %v706_v0, %v500_v53  ;;  %v629_v53 = vld [vmem:[%s701_s18 + $0x68] sm:$0xff]  }
  0x1c   : > { %634 = vst [vmem:[%s740_s25 + $0x18] sm:$0xff] %v555_v47   ;;  %v288_v62 = vadd.f32 %v714_v6, %v252_v54  ;;  %v289_v63 = vadd.f32 %v714_v6, %v253_v55  ;;  %v256_v1 = vmul.f32 %v706_v0, %v503_v56  ;;  %v257_v2 = vmul.f32 %v706_v0, %v504_v57 }
  0x1d   : > { %v318_v4 = vmax.f32 %v286_v58, 0.0  ;;  %v319_v5 = vmax.f32 %v287_v59, 0.0  ;;  %v290_v7 = vadd.f32 %v714_v6, %v254_v60  ;;  %v291_v8 = vadd.f32 %v714_v6, %v255_v61  ;;  %v630_v58 = vld [vmem:[%s701_s18 + $0x70] sm:$0xff]  }
  0x1e   : > { %v320_v9 = vmax.f32 %v288_v62, 0.0  ;;  %v321_v10 = vmax.f32 %v289_v63, 0.0  ;;  %v292_v11 = vadd.f32 %v714_v6, %v256_v1  ;;  %v293_v12 = vadd.f32 %v714_v6, %v257_v2  ;;  %v631_v63 = vld [vmem:[%s701_s18 + $0x78] sm:$0xff]  }
  0x1f   : > { %v560_v14 = vpack.c.bf16 %v319_v5, %v318_v4  ;;  %v322_v15 = vmax.f32 %v290_v7, 0.0  ;;  %v323_v16 = vmax.f32 %v291_v8, 0.0  ;;  %v507_v17 = vunpack.c.l.bf16 %v624_v3 }
  0x20   : > { %v565_v19 = vpack.c.bf16 %v321_v10, %v320_v9  ;;  %v324_v20 = vmax.f32 %v292_v11, 0.0  ;;  %v325_v21 = vmax.f32 %v293_v12, 0.0  ;;  %v508_v22 = vunpack.c.h.bf16 %v624_v3 }
  0x21   : > { %635 = vst [vmem:[%s740_s25 + $0x20] sm:$0xff] %v560_v14   ;;  %v570_v24 = vpack.c.bf16 %v323_v16, %v322_v15  ;;  %v258_v25 = vmul.f32 %v706_v0, %v507_v17  ;;  %v511_v26 = vunpack.c.l.bf16 %v625_v13  ;;  %v512_v27 = vunpack.c.h.bf16 %v625_v13 }
  0x22   : > { %636 = vst [vmem:[%s740_s25 + $0x28] sm:$0xff] %v565_v19   ;;  %v575_v28 = vpack.c.bf16 %v325_v21, %v324_v20  ;;  %v259_v29 = vmul.f32 %v706_v0, %v508_v22  ;;  %v515_v30 = vunpack.c.l.bf16 %v626_v18  ;;  %v516_v31 = vunpack.c.h.bf16 %v626_v18 }
  0x23   : > { %637 = vst [vmem:[%s740_s25 + $0x30] sm:$0xff] %v570_v24   ;;  %v294_v32 = vadd.f32 %v714_v6, %v258_v25  ;;  %v260_v33 = vmul.f32 %v706_v0, %v511_v26  ;;  %v261_v34 = vmul.f32 %v706_v0, %v512_v27  ;;  %v519_v35 = vunpack.c.l.bf16 %v627_v23 }
  0x24   : > { %638 = vst [vmem:[%s740_s25 + $0x38] sm:$0xff] %v575_v28   ;;  %v295_v36 = vadd.f32 %v714_v6, %v259_v29  ;;  %v262_v37 = vmul.f32 %v706_v0, %v515_v30  ;;  %v263_v38 = vmul.f32 %v706_v0, %v516_v31  ;;  %v520_v39 = vunpack.c.h.bf16 %v627_v23 }
  0x25   : > { %v326_v41 = vmax.f32 %v294_v32, 0.0  ;;  %v296_v42 = vadd.f32 %v714_v6, %v260_v33  ;;  %v297_v43 = vadd.f32 %v714_v6, %v261_v34  ;;  %v264_v44 = vmul.f32 %v706_v0, %v519_v35 }
  0x26   : > { %v327_v45 = vmax.f32 %v295_v36, 0.0  ;;  %v298_v46 = vadd.f32 %v714_v6, %v262_v37  ;;  %v299_v47 = vadd.f32 %v714_v6, %v263_v38  ;;  %v265_v48 = vmul.f32 %v706_v0, %v520_v39 }
  0x27   : > { %v328_v49 = vmax.f32 %v296_v42, 0.0  ;;  %v329_v50 = vmax.f32 %v297_v43, 0.0  ;;  %v300_v51 = vadd.f32 %v714_v6, %v264_v44  ;;  %v523_v52 = vunpack.c.l.bf16 %v628_v40 }
  0x28   : > { %v580_v54 = vpack.c.bf16 %v327_v45, %v326_v41  ;;  %v330_v55 = vmax.f32 %v298_v46, 0.0  ;;  %v331_v56 = vmax.f32 %v299_v47, 0.0  ;;  %v301_v57 = vadd.f32 %v714_v6, %v265_v48 }
  0x29   : > { %v585_v59 = vpack.c.bf16 %v329_v50, %v328_v49  ;;  %v332_v60 = vmax.f32 %v300_v51, 0.0  ;;  %v524_v61 = vunpack.c.h.bf16 %v628_v40  ;;  %v266_v62 = vmul.f32 %v706_v0, %v523_v52 }
  0x2a   : > { %639 = vst [vmem:[%s740_s25 + $0x40] sm:$0xff] %v580_v54   ;;  %v590_v1 = vpack.c.bf16 %v331_v56, %v330_v55  ;;  %v333_v2 = vmax.f32 %v301_v57, 0.0  ;;  %v527_v3 = vunpack.c.l.bf16 %v629_v53  ;;  %v528_v4 = vunpack.c.h.bf16 %v629_v53 }
  0x2b   : > { %640 = vst [vmem:[%s740_s25 + $0x48] sm:$0xff] %v585_v59   ;;  %v267_v5 = vmul.f32 %v706_v0, %v524_v61  ;;  %v302_v7 = vadd.f32 %v714_v6, %v266_v62  ;;  %v531_v8 = vunpack.c.l.bf16 %v630_v58  ;;  %v532_v9 = vunpack.c.h.bf16 %v630_v58 }
  0x2c   : > { %641 = vst [vmem:[%s740_s25 + $0x50] sm:$0xff] %v590_v1   ;;  %v595_v10 = vpack.c.bf16 %v333_v2, %v332_v60  ;;  %v268_v11 = vmul.f32 %v706_v0, %v527_v3  ;;  %v269_v12 = vmul.f32 %v706_v0, %v528_v4  ;;  %v535_v13 = vunpack.c.l.bf16 %v631_v63 }
  0x2d   : > { %v303_v14 = vadd.f32 %v714_v6, %v267_v5  ;;  %v334_v15 = vmax.f32 %v302_v7, 0.0  ;;  %v270_v16 = vmul.f32 %v706_v0, %v531_v8  ;;  %v271_v17 = vmul.f32 %v706_v0, %v532_v9 }
  0x2e   : > { %642 = vst [vmem:[%s740_s25 + $0x58] sm:$0xff] %v595_v10   ;;  %v304_v18 = vadd.f32 %v714_v6, %v268_v11  ;;  %v305_v19 = vadd.f32 %v714_v6, %v269_v12  ;;  %v536_v20 = vunpack.c.h.bf16 %v631_v63  ;;  %v272_v21 = vmul.f32 %v706_v0, %v535_v13 }
  0x2f   : > { %v335_v22 = vmax.f32 %v303_v14, 0.0  ;;  %v306_v23 = vadd.f32 %v714_v6, %v270_v16  ;;  %v307_v24 = vadd.f32 %v714_v6, %v271_v17 }
  0x30   : > { %v336_v25 = vmax.f32 %v304_v18, 0.0  ;;  %v337_v26 = vmax.f32 %v305_v19, 0.0  ;;  %v273_v27 = vmul.f32 %v706_v0, %v536_v20  ;;  %v308_v28 = vadd.f32 %v714_v6, %v272_v21 }
  0x31   : > { %v600_v29 = vpack.c.bf16 %v335_v22, %v334_v15  ;;  %v338_v30 = vmax.f32 %v306_v23, 0.0  ;;  %v339_v31 = vmax.f32 %v307_v24, 0.0 }
  0x32   : > { %v605_v32 = vpack.c.bf16 %v337_v26, %v336_v25  ;;  %v309_v33 = vadd.f32 %v714_v6, %v273_v27  ;;  %v340_v34 = vmax.f32 %v308_v28, 0.0 }
  0x33   : > { %643 = vst [vmem:[%s740_s25 + $0x60] sm:$0xff] %v600_v29   ;;  %v610_v35 = vpack.c.bf16 %v339_v31, %v338_v30 }
  0x34   : > { %644 = vst [vmem:[%s740_s25 + $0x68] sm:$0xff] %v605_v32   ;;  %v341_v36 = vmax.f32 %v309_v33, 0.0 }
  0x35   : > { %645 = vst [vmem:[%s740_s25 + $0x70] sm:$0xff] %v610_v35  }
  0x36   : > { %v615_v37 = vpack.c.bf16 %v341_v36, %v340_v34 }
  0x38   : > { %646 = vst [vmem:[%s740_s25 + $0x78] sm:$0xff] %v615_v37  }
  0x39 PF: > { %s13_s12 = sadd.s32 1, %s663_s12  }
  0x3a   : > { %p10_p4 = scmp.ge.s32.totalorder %s13_s12, 4  }
  0x3c   :  { %12 = sbr.rel (!%p10_p4) target bundleno = 1 (0x1), region = 62 }

// kernel: basic_block_forward.4
= control target key start
LH: loop header
LB: loop body
LE: loop exit
PB: predicated region body
PF: predicated region fallthrough
CT: control target
= control target key end

     0   :  { %s2307_s18 = smov 0   ;;  %s2902_s0 = inlined_call_operand.vmem [shape: bf16[576,128], index: 0, kind: input, shape index: {}]   ;;  %s2903_s1 = inlined_call_operand.vmem [shape: bf16[512,128], index: 1, kind: input, shape index: {}]   ;;  %s2904_s2 = inlined_call_operand.vmem [shape: bf16[512,128], index: 2, kind: output, shape index: {0}]   ;;  %s2905_s3 = inlined_call_operand.vmem [shape: bf16[512,128], index: 3, kind: output, shape index: {1}]   ;;  %s2906_s4 = inlined_call_operand.vmem [shape: f32[16,128], index: 4, kind: output, shape index: {2}]   ;;  %s2907_s5 = inlined_call_operand.vmem [shape: f32[16,128], index: 5, kind: output, shape index: {3}]  }
   0x1 LB: > { %s2313_s19 = sadd.s32 4294967295, %s2275_s18   ;;  %p1736_p0 = scmp.ge.s32.totalorder %s2275_s18, 1  ;;  %s2275_s18 = sphi %s2307_s18, %s16_s18  }
   0x2   : > { %p195_p1 = scmp.lt.s32.totalorder %s2275_s18, 3 }
   0x4   : > { %p196_p2 = pnand %p1736_p0, %p195_p1 }
   0x6   : > { %199 = sbr.rel (%p196_p2) target bundleno = 532 (0x214), region = 28 }
   0xb   : > { %v2038_v0 = vld [vmem:[%s2903_s1 + $0x78] sm:$0xff]  ;;  %v2037_v4 = vld [vmem:[%s2903_s1 + $0x70] sm:$0xff]  ;;  %v2036_v8 = vld [vmem:[%s2903_s1 + $0x68] sm:$0xff]  ;;  %s236_s29 = smul.u32 36, %s2313_s19  ;;  %s1738_s20 = sshll.u32 %s2313_s19, 5 }
   0xc   : > { %v2030_v1 = vld [vmem:[%s2903_s1 + $0x38] sm:$0xff]  ;;  %472 = vmatpush.bf16.msra.mxu0 %v2038_v0  ;;  %v2029_v5 = vld [vmem:[%s2903_s1 + $0x30] sm:$0xff]  ;;  %v2028_v9 = vld [vmem:[%s2903_s1 + $0x28] sm:$0xff]  ;;  %p243_p4 = scmp.lt.s32.totalorder %s1738_s20, 63  ;;  %p254_p5 = scmp.lt.s32.totalorder %s2313_s19, 1 }
   0xd   : > { %v2062_v2 = vld [vmem:[%s2903_s1 + $0xb8] sm:$0xff]  ;;  %615 = vmatpush.bf16.msra.mxu1 %v2030_v1  ;;  %v2061_v6 = vld [vmem:[%s2903_s1 + $0xb0] sm:$0xff]  ;;  %v2060_v10 = vld [vmem:[%s2903_s1 + $0xa8] sm:$0xff]  ;;  %p237_p3 = scmp.lt.s32.totalorder %s236_s29, 71 }
   0xe   : > { %v2070_v3 = vld [vmem:[%s2903_s1 + $0xf8] sm:$0xff]  ;;  %896 = vmatpush.bf16.msra.mxu2 %v2062_v2  ;;  %v2069_v7 = vld [vmem:[%s2903_s1 + $0xf0] sm:$0xff]  ;;  %v2068_v11 = vld [vmem:[%s2903_s1 + $0xe8] sm:$0xff]  ;;  %s2956_s20 = smov (!%p243_p4, %s1738_s20), 63  ;;  %s2958_s19 = smov (!%p254_p5, %s2313_s19), 1 }
   0xf   : > { %1286 = vmatpush.bf16.msra.mxu3 %v2070_v3  ;;  %v2035_v12 = vld [vmem:[%s2903_s1 + $0x60] sm:$0xff]  ;;  %v2034_v16 = vld [vmem:[%s2903_s1 + $0x58] sm:$0xff]  ;;  %v2033_v20 = vld [vmem:[%s2903_s1 + $0x50] sm:$0xff]  ;;  %s2954_s29 = smov (!%p237_p3, %s236_s29), 71  ;;  %s1739_s21 = sshll.u32 %s2956_s20, 2 }
  0x10   : > { %473 = vmatpush.bf16.msra.mxu0 %v2037_v4  ;;  %v2027_v13 = vld [vmem:[%s2903_s1 + $0x20] sm:$0xff]  ;;  %v2026_v17 = vld [vmem:[%s2903_s1 + $0x18] sm:$0xff]  ;;  %v2025_v21 = vld [vmem:[%s2903_s1 + $0x10] sm:$0xff]  ;;  %s1737_s7 = sshll.u32 %s2954_s29, 2  ;;  %s2444_s24 = scalar_lea.vmem %s2905_s3, %s1739_s21 }
  0x11   : > { %616 = vmatpush.bf16.msra.mxu1 %v2029_v5  ;;  %v2059_v14 = vld [vmem:[%s2903_s1 + $0xa0] sm:$0xff]  ;;  %v2058_v18 = vld [vmem:[%s2903_s1 + $0x98] sm:$0xff]  ;;  %v2057_v22 = vld [vmem:[%s2903_s1 + $0x90] sm:$0xff]  ;;  %s2411_s14 = scalar_lea.vmem %s2902_s0, %s1737_s7  ;;  %s2459_s27 = scalar_lea.vmem %s2904_s2, %s1739_s21 }
  0x12   : > { %897 = vmatpush.bf16.msra.mxu2 %v2061_v6  ;;  %v2067_v15 = vld [vmem:[%s2903_s1 + $0xe0] sm:$0xff]  ;;  %v2066_v19 = vld [vmem:[%s2903_s1 + $0xd8] sm:$0xff]  ;;  %v2065_v23 = vld [vmem:[%s2903_s1 + $0xd0] sm:$0xff]  ;;  %s1742_s28 = sshll.u32 %s2958_s19, 3 }
  0x13   : > { %1287 = vmatpush.bf16.msra.mxu3 %v2069_v7  ;;  %v2032_v24 = vld [vmem:[%s2903_s1 + $0x48] sm:$0xff]  ;;  %v2031_v28 = vld [vmem:[%s2903_s1 + $0x40] sm:$0xff]  ;;  %v2039_v34 = vld [vmem:[%s2411_s14 + $0x10] sm:$0xff]  ;;  %s2756_s7 = scalar_lea.vmem %s2907_s5, %s1742_s28  ;;  %s2761_s10 = scalar_lea.vmem %s2906_s4, %s1742_s28 }
  0x14   : > { %474 = vmatpush.bf16.msra.mxu0 %v2036_v8  ;;  %v2024_v25 = vld [vmem:[%s2903_s1 + $0x8] sm:$0xff]  ;;  %v2023_v29 = vld [vmem:[%s2903_s1] sm:$0xff]  ;;  %v2007_v35 = vld [vmem:[%s2411_s14 + $0x10] sm:$0xff] }
  0x15   : > { %617 = vmatpush.bf16.msra.mxu1 %v2028_v9  ;;  %v2056_v26 = vld [vmem:[%s2903_s1 + $0x88] sm:$0xff]  ;;  %v2055_v30 = vld [vmem:[%s2903_s1 + $0x80] sm:$0xff]  ;;  %v2040_v36 = vld [vmem:[%s2411_s14 + $0x18] sm:$0xff] }
  0x16   : > { %898 = vmatpush.bf16.msra.mxu2 %v2060_v10  ;;  %v2064_v27 = vld [vmem:[%s2903_s1 + $0xc8] sm:$0xff]  ;;  %v2063_v31 = vld [vmem:[%s2903_s1 + $0xc0] sm:$0xff]  ;;  %v2008_v37 = vld [vmem:[%s2411_s14 + $0x18] sm:$0xff] }
  0x17   : > { %1288 = vmatpush.bf16.msra.mxu3 %v2068_v11  ;;  %v2006_v32 = vld [vmem:[%s2411_s14 + $0x8] sm:$0xff]  ;;  %v2022_v33 = vld [vmem:[%s2411_s14] sm:$0xff]  ;;  %v2043_v42 = vld [vmem:[%s2411_s14 + $0x30] sm:$0xff] }
  0x18   : > { %475 = vmatpush.bf16.msra.mxu0 %v2035_v12  ;;  %v2041_v38 = vld [vmem:[%s2411_s14 + $0x20] sm:$0xff]  ;;  %v2042_v40 = vld [vmem:[%s2411_s14 + $0x28] sm:$0xff]  ;;  %v2011_v43 = vld [vmem:[%s2411_s14 + $0x30] sm:$0xff] }
  0x19   : > { %618 = vmatpush.bf16.msra.mxu1 %v2027_v13  ;;  %v2009_v39 = vld [vmem:[%s2411_s14 + $0x20] sm:$0xff]  ;;  %v2010_v41 = vld [vmem:[%s2411_s14 + $0x28] sm:$0xff]  ;;  %v2044_v44 = vld [vmem:[%s2411_s14 + $0x38] sm:$0xff] }
  0x1a   : > { %899 = vmatpush.bf16.msra.mxu2 %v2059_v14  ;;  %v2012_v45 = vld [vmem:[%s2411_s14 + $0x38] sm:$0xff]  ;;  %v2045_v46 = vld [vmem:[%s2411_s14 + $0x40] sm:$0xff]  ;;  %v2046_v48 = vld [vmem:[%s2411_s14 + $0x48] sm:$0xff] }
  0x1b   : > { %1289 = vmatpush.bf16.msra.mxu3 %v2067_v15  ;;  %v2013_v47 = vld [vmem:[%s2411_s14 + $0x40] sm:$0xff]  ;;  %v2014_v49 = vld [vmem:[%s2411_s14 + $0x48] sm:$0xff]  ;;  %v2047_v52 = vld [vmem:[%s2411_s14 + $0x50] sm:$0xff] }
  0x1c   : > { %476 = vmatpush.bf16.msra.mxu0 %v2034_v16  ;;  %v2015_v61 = vld [vmem:[%s2411_s14 + $0x50] sm:$0xff]  ;;  %v2048_v3 = vld [vmem:[%s2411_s14 + $0x58] sm:$0xff] }
  0x1d   : > { %619 = vmatpush.bf16.msra.mxu1 %v2026_v17  ;;  %v2016_v13 = vld [vmem:[%s2411_s14 + $0x58] sm:$0xff] }
  0x1e   : > { %900 = vmatpush.bf16.msra.mxu2 %v2058_v18 }
  0x1f   : > { %1290 = vmatpush.bf16.msra.mxu3 %v2066_v19  ;;  %v2049_v19 = vld [vmem:[%s2411_s14 + $0x60] sm:$0xff] }
  0x20   : > { %477 = vmatpush.bf16.msra.mxu0 %v2033_v20 }
  0x21   : > { %620 = vmatpush.bf16.msra.mxu1 %v2025_v21 }
  0x22   : > { %901 = vmatpush.bf16.msra.mxu2 %v2057_v22 }
  0x23   : > { %1291 = vmatpush.bf16.msra.mxu3 %v2065_v23 }
  0x24   : > { %478 = vmatpush.bf16.msra.mxu0 %v2032_v24 }
  0x25   : > { %621 = vmatpush.bf16.msra.mxu1 %v2024_v25 }
  0x26   : > { %902 = vmatpush.bf16.msra.mxu2 %v2056_v26 }
  0x27   : > { %1292 = vmatpush.bf16.msra.mxu3 %v2064_v27 }
  0x28   : > { %479 = vmatpush.bf16.msra.mxu0 %v2031_v28 }
  0x29   : > { %622 = vmatpush.bf16.msra.mxu1 %v2023_v29  ;;  %v2017_v29 = vld [vmem:[%s2411_s14 + $0x60] sm:$0xff] }
  0x2a   : > { %903 = vmatpush.bf16.msra.mxu2 %v2055_v30 }
  0x2b   : > { %1293 = vmatpush.bf16.msra.mxu3 %v2063_v31  ;;  %480 = vmatmul.bf16.vlgmr.msra.gmra.mxu0 %v2006_v32 }
  0x2c   : > { %623 = vmatmul.bf16.vlgmr.msra.gmra.mxu1 %v2022_v33 }
  0x2d   : > { %904 = vmatmul.bf16.vlgmr.msra.gmra.mxu2 %v2039_v34 }
  0x2e   : > { %1294 = vmatmul.bf16.vlgmr.msra.gmra.mxu3 %v2006_v32 }
  0x3b   : > { %485 = vmatmul.bf16.gmra.mxu0 %v2007_v35 }
  0x3c   : > { %628 = vmatmul.bf16.gmra.mxu1 %v2006_v32 }
  0x3d   : > { %909 = vmatmul.bf16.gmra.mxu2 %v2040_v36 }
  0x3e   : > { %1299 = vmatmul.bf16.gmra.mxu3 %v2007_v35 }
  0x4b   : > { %490 = vmatmul.bf16.gmra.mxu0 %v2008_v37 }
  0x4c   : > { %633 = vmatmul.bf16.gmra.mxu1 %v2007_v35  ;;  %v2050_v35 = vld [vmem:[%s2411_s14 + $0x68] sm:$0xff] }
  0x4d   : > { %914 = vmatmul.bf16.gmra.mxu2 %v2041_v38 }
  0x4e   : > { %1304 = vmatmul.bf16.gmra.mxu3 %v2008_v37 }
  0x5b   : > { %495 = vmatmul.bf16.gmra.mxu0 %v2009_v39 }
  0x5c   : > { %638 = vmatmul.bf16.gmra.mxu1 %v2008_v37 }
  0x5d   : > { %919 = vmatmul.bf16.gmra.mxu2 %v2042_v40 }
  0x5e   : > { %1309 = vmatmul.bf16.gmra.mxu3 %v2009_v39 }
  0x6b   : > { %500 = vmatmul.bf16.gmra.mxu0 %v2010_v41 }
  0x6c   : > { %643 = vmatmul.bf16.gmra.mxu1 %v2009_v39 }
  0x6d   : > { %924 = vmatmul.bf16.gmra.mxu2 %v2043_v42 }
  0x6e   : > { %1314 = vmatmul.bf16.gmra.mxu3 %v2010_v41 }
  0x7b   : > { %505 = vmatmul.bf16.gmra.mxu0 %v2011_v43 }
  0x7c   : > { %648 = vmatmul.bf16.gmra.mxu1 %v2010_v41 }
  0x7d   : > { %929 = vmatmul.bf16.gmra.mxu2 %v2044_v44 }
  0x7e   : > { %1319 = vmatmul.bf16.gmra.mxu3 %v2011_v43 }
  0x8b   : > { %510 = vmatmul.bf16.gmra.mxu0 %v2012_v45 }
  0x8c   : > { %653 = vmatmul.bf16.gmra.mxu1 %v2011_v43 }
  0x8d   : > { %934 = vmatmul.bf16.gmra.mxu2 %v2045_v46 }
  0x8e   : > { %1324 = vmatmul.bf16.gmra.mxu3 %v2012_v45 }
  0x9b   : > { %515 = vmatmul.bf16.gmra.mxu0 %v2013_v47 }
  0x9c   : > { %658 = vmatmul.bf16.gmra.mxu1 %v2012_v45  ;;  %v2018_v45 = vld [vmem:[%s2411_s14 + $0x68] sm:$0xff] }
  0x9d   : > { %939 = vmatmul.bf16.gmra.mxu2 %v2046_v48 }
  0x9e   : > { %1329 = vmatmul.bf16.gmra.mxu3 %v2013_v47 }
  0xa8   : > { %v481_v50 = vpop.f32.mrf.mxu0 }
  0xa9   : > { %v624_v51 = vpop.f32.mrf.mxu1 }
  0xaa   : > { %v625_v57 = vadd.f32 %v624_v51, %v481_v50  ;;  %v2051_v51 = vld [vmem:[%s2411_s14 + $0x70] sm:$0xff] }
  0xab   : > { %520 = vmatmul.bf16.gmra.mxu0 %v2014_v49 }
  0xac   : > { %663 = vmatmul.bf16.gmra.mxu1 %v2013_v47 }
  0xad   : > { %944 = vmatmul.bf16.gmra.mxu2 %v2047_v52 }
  0xae   : > { %1334 = vmatmul.bf16.gmra.mxu3 %v2014_v49 }
  0xb0   : > { %v905_v53 = vpop.f32.mrf.mxu2  ;;  %v483_v55 = vpop.f32.mrf.mxu0 }
  0xb1   : > { %v2439_v54 = vpop.f32.mrf.mxu3  ;;  %v626_v56 = vpop.f32.mrf.mxu1  ;;  %v2449_v62 = vadd.f32 %v905_v53, %v625_v57 }
  0xb2   : > { %v627_v58 = vadd.f32 %v626_v56, %v483_v55 }
  0xb8   : > { %v907_v59 = vpop.f32.mrf.mxu2  ;;  %v486_v1 = vpop.f32.mrf.mxu0 }
  0xb9   : > { %v2446_v60 = vpop.f32.mrf.mxu3  ;;  %v2451_v63 = vadd.f32 %v907_v59, %v627_v58  ;;  %v629_v2 = vpop.f32.mrf.mxu1 }
  0xba   : > { %2923 = vst [vmem:[#allocation2_spill] sm:$0xff] %v2446_v60  ;;  %v2154_v0 = vpack.c.bf16 %v2446_v60, %v2439_v54  ;;  %v630_v9 = vadd.f32 %v629_v2, %v486_v1  ;;  %v2019_v1 = vld [vmem:[%s2411_s14 + $0x70] sm:$0xff] }
  0xbb   : > { %v2074_v4 = vpack.c.bf16 %v2451_v63, %v2449_v62  ;;  %525 = vmatmul.bf16.gmra.mxu0 %v2015_v61 }
  0xbc   : > { %2155 = vst [vmem:[%s2444_s24] sm:$0xff] %v2154_v0   ;;  %668 = vmatmul.bf16.gmra.mxu1 %v2014_v49 }
  0xbd   : > { %2075 = vst [vmem:[%s2459_s27] sm:$0xff] %v2074_v4   ;;  %949 = vmatmul.bf16.gmra.mxu2 %v2048_v3 }
  0xbe   : > { %1339 = vmatmul.bf16.gmra.mxu3 %v2015_v61 }
  0xc0   : > { %v910_v5 = vpop.f32.mrf.mxu2  ;;  %v488_v7 = vpop.f32.mrf.mxu0 }
  0xc1   : > { %v2465_v6 = vpop.f32.mrf.mxu3  ;;  %v631_v8 = vpop.f32.mrf.mxu1  ;;  %v2470_v14 = vadd.f32 %v910_v5, %v630_v9 }
  0xc2   : > { %2924 = vst [vmem:[#allocation3_spill] sm:$0xff] %v2465_v6  ;;  %v632_v10 = vadd.f32 %v631_v8, %v488_v7  ;;  %v2052_v8 = vld [vmem:[%s2411_s14 + $0x78] sm:$0xff] }
  0xc8   : > { %v912_v11 = vpop.f32.mrf.mxu2  ;;  %v491_v17 = vpop.f32.mrf.mxu0 }
  0xc9   : > { %v2467_v12 = vpop.f32.mrf.mxu3  ;;  %v2472_v15 = vadd.f32 %v912_v11, %v632_v10  ;;  %v634_v18 = vpop.f32.mrf.mxu1 }
  0xca   : > { %2925 = vst [vmem:[#allocation4_spill] sm:$0xff] %v2467_v12  ;;  %v2159_v16 = vpack.c.bf16 %v2467_v12, %v2465_v6  ;;  %v635_v25 = vadd.f32 %v634_v18, %v491_v17 }
  0xcb   : > { %v2079_v20 = vpack.c.bf16 %v2472_v15, %v2470_v14  ;;  %530 = vmatmul.bf16.gmra.mxu0 %v2016_v13 }
  0xcc   : > { %2246 = vst [vmem:[%s2444_s24 + $0x8] sm:$0xff] %v2159_v16   ;;  %673 = vmatmul.bf16.gmra.mxu1 %v2015_v61 }
  0xcd   : > { %2231 = vst [vmem:[%s2459_s27 + $0x8] sm:$0xff] %v2079_v20   ;;  %954 = vmatmul.bf16.gmra.mxu2 %v2049_v19 }
  0xce   : > { %1344 = vmatmul.bf16.gmra.mxu3 %v2016_v13 }
  0xd0   : > { %v915_v21 = vpop.f32.mrf.mxu2  ;;  %v493_v23 = vpop.f32.mrf.mxu0 }
  0xd1   : > { %v2481_v22 = vpop.f32.mrf.mxu3  ;;  %v636_v24 = vpop.f32.mrf.mxu1  ;;  %v2486_v30 = vadd.f32 %v915_v21, %v635_v25  ;;  %v2020_v21 = vld [vmem:[%s2411_s14 + $0x78] sm:$0xff] }
  0xd2   : > { %v637_v26 = vadd.f32 %v636_v24, %v493_v23 }
  0xd8   : > { %v917_v27 = vpop.f32.mrf.mxu2  ;;  %v496_v33 = vpop.f32.mrf.mxu0 }
  0xd9   : > { %v2483_v28 = vpop.f32.mrf.mxu3  ;;  %v2488_v31 = vadd.f32 %v917_v27, %v637_v26  ;;  %v639_v34 = vpop.f32.mrf.mxu1 }
  0xda   : > { %v2164_v32 = vpack.c.bf16 %v2483_v28, %v2481_v22  ;;  %v640_v41 = vadd.f32 %v639_v34, %v496_v33 }
  0xdb   : > { %v2084_v36 = vpack.c.bf16 %v2488_v31, %v2486_v30  ;;  %535 = vmatmul.bf16.gmra.mxu0 %v2017_v29 }
  0xdc   : > { %2247 = vst [vmem:[%s2444_s24 + $0x10] sm:$0xff] %v2164_v32   ;;  %678 = vmatmul.bf16.gmra.mxu1 %v2016_v13 }
  0xdd   : > { %2232 = vst [vmem:[%s2459_s27 + $0x10] sm:$0xff] %v2084_v36   ;;  %959 = vmatmul.bf16.gmra.mxu2 %v2050_v35 }
  0xde   : > { %1349 = vmatmul.bf16.gmra.mxu3 %v2017_v29 }
  0xe0   : > { %v920_v37 = vpop.f32.mrf.mxu2  ;;  %v498_v39 = vpop.f32.mrf.mxu0 }
  0xe1   : > { %v2497_v38 = vpop.f32.mrf.mxu3  ;;  %v641_v40 = vpop.f32.mrf.mxu1  ;;  %v2502_v46 = vadd.f32 %v920_v37, %v640_v41 }
  0xe2   : > { %v642_v42 = vadd.f32 %v641_v40, %v498_v39 }
  0xe8   : > { %v922_v43 = vpop.f32.mrf.mxu2  ;;  %v501_v49 = vpop.f32.mrf.mxu0 }
  0xe9   : > { %v2499_v44 = vpop.f32.mrf.mxu3  ;;  %v2504_v47 = vadd.f32 %v922_v43, %v642_v42  ;;  %v644_v50 = vpop.f32.mrf.mxu1  ;;  %v2021_v42 = vld [vmem:[%s2411_s14 + $0x80] sm:$0xff] }
  0xea   : > { %v2169_v48 = vpack.c.bf16 %v2499_v44, %v2497_v38  ;;  %v645_v58 = vadd.f32 %v644_v50, %v501_v49 }
  0xeb   : > { %v2089_v52 = vpack.c.bf16 %v2504_v47, %v2502_v46  ;;  %540 = vmatmul.bf16.gmra.mxu0 %v2018_v45 }
  0xec   : > { %2248 = vst [vmem:[%s2444_s24 + $0x18] sm:$0xff] %v2169_v48   ;;  %683 = vmatmul.bf16.gmra.mxu1 %v2017_v29  ;;  %v2053_v29 = vld [vmem:[%s2411_s14 + $0x80] sm:$0xff] }
  0xed   : > { %2233 = vst [vmem:[%s2459_s27 + $0x18] sm:$0xff] %v2089_v52   ;;  %964 = vmatmul.bf16.gmra.mxu2 %v2051_v51  ;;  %v2054_v51 = vld [vmem:[%s2411_s14 + $0x88] sm:$0xff] }
  0xee   : > { %1354 = vmatmul.bf16.gmra.mxu3 %v2018_v45 }
  0xf0   : > { %v925_v53 = vpop.f32.mrf.mxu2  ;;  %v503_v56 = vpop.f32.mrf.mxu0 }
  0xf1   : > { %v2513_v55 = vpop.f32.mrf.mxu3  ;;  %v646_v57 = vpop.f32.mrf.mxu1  ;;  %v2518_v2 = vadd.f32 %v925_v53, %v645_v58 }
  0xf2   : > { %2926 = vst [vmem:[#allocation5_spill] sm:$0xff] %v2513_v55  ;;  %v647_v59 = vadd.f32 %v646_v57, %v503_v56 }
  0xf8   : > { %v927_v61 = vpop.f32.mrf.mxu2  ;;  %v506_v5 = vpop.f32.mrf.mxu0 }
  0xf9   : > { %v2515_v0 = vpop.f32.mrf.mxu3  ;;  %v2520_v3 = vadd.f32 %v927_v61, %v647_v59  ;;  %v649_v7 = vpop.f32.mrf.mxu1 }
  0xfa   : > { %2927 = vst [vmem:[#allocation6_spill] sm:$0xff] %v2515_v0  ;;  %v2174_v4 = vpack.c.bf16 %v2515_v0, %v2513_v55  ;;  %v650_v17 = vadd.f32 %v649_v7, %v506_v5 }
  0xfb   : > { %v2094_v9 = vpack.c.bf16 %v2520_v3, %v2518_v2  ;;  %545 = vmatmul.bf16.gmra.mxu0 %v2019_v1 }
  0xfc   : > { %2249 = vst [vmem:[%s2444_s24 + $0x20] sm:$0xff] %v2174_v4   ;;  %688 = vmatmul.bf16.gmra.mxu1 %v2018_v45 }
  0xfd   : > { %2234 = vst [vmem:[%s2459_s27 + $0x20] sm:$0xff] %v2094_v9   ;;  %969 = vmatmul.bf16.gmra.mxu2 %v2052_v8 }
  0xfe   : > { %1359 = vmatmul.bf16.gmra.mxu3 %v2019_v1 }
 0x100   : > { %v930_v10 = vpop.f32.mrf.mxu2  ;;  %v508_v13 = vpop.f32.mrf.mxu0 }
 0x101   : > { %v2529_v11 = vpop.f32.mrf.mxu3  ;;  %v651_v16 = vpop.f32.mrf.mxu1  ;;  %v2534_v23 = vadd.f32 %v930_v10, %v650_v17 }
 0x102   : > { %2928 = vst [vmem:[#allocation7_spill] sm:$0xff] %v2529_v11  ;;  %v652_v18 = vadd.f32 %v651_v16, %v508_v13 }
 0x108   : > { %v932_v19 = vpop.f32.mrf.mxu2  ;;  %v511_v26 = vpop.f32.mrf.mxu0 }
 0x109   : > { %v2531_v20 = vpop.f32.mrf.mxu3  ;;  %v2536_v24 = vadd.f32 %v932_v19, %v652_v18  ;;  %v654_v27 = vpop.f32.mrf.mxu1 }
 0x10a   : > { %2929 = vst [vmem:[#allocation8_spill] sm:$0xff] %v2531_v20  ;;  %v2179_v25 = vpack.c.bf16 %v2531_v20, %v2529_v11  ;;  %v655_v37 = vadd.f32 %v654_v27, %v511_v26 }
 0x10b   : > { %v2099_v32 = vpack.c.bf16 %v2536_v24, %v2534_v23  ;;  %550 = vmatmul.bf16.gmra.mxu0 %v2020_v21 }
 0x10c   : > { %2250 = vst [vmem:[%s2444_s24 + $0x28] sm:$0xff] %v2179_v25   ;;  %693 = vmatmul.bf16.gmra.mxu1 %v2019_v1 }
 0x10d   : > { %2235 = vst [vmem:[%s2459_s27 + $0x28] sm:$0xff] %v2099_v32   ;;  %974 = vmatmul.bf16.gmra.mxu2 %v2053_v29 }
 0x10e   : > { %1364 = vmatmul.bf16.gmra.mxu3 %v2020_v21 }
 0x110   : > { %v935_v33 = vpop.f32.mrf.mxu2  ;;  %v513_v35 = vpop.f32.mrf.mxu0 }
 0x111   : > { %v2545_v34 = vpop.f32.mrf.mxu3  ;;  %v656_v36 = vpop.f32.mrf.mxu1  ;;  %v2550_v43 = vadd.f32 %v935_v33, %v655_v37 }
 0x112   : > { %v657_v39 = vadd.f32 %v656_v36, %v513_v35 }
 0x118   : > { %v937_v40 = vpop.f32.mrf.mxu2  ;;  %v516_v49 = vpop.f32.mrf.mxu0 }
 0x119   : > { %v2547_v41 = vpop.f32.mrf.mxu3  ;;  %v2552_v45 = vadd.f32 %v937_v40, %v657_v39  ;;  %v659_v50 = vpop.f32.mrf.mxu1 }
 0x11a   : > { %v2184_v48 = vpack.c.bf16 %v2547_v41, %v2545_v34  ;;  %v660_v59 = vadd.f32 %v659_v50, %v516_v49 }
 0x11b   : > { %v2104_v52 = vpack.c.bf16 %v2552_v45, %v2550_v43  ;;  %555 = vmatmul.bf16.gmra.mxu0 %v2021_v42 }
 0x11c   : > { %2251 = vst [vmem:[%s2444_s24 + $0x30] sm:$0xff] %v2184_v48   ;;  %698 = vmatmul.bf16.gmra.mxu1 %v2020_v21 }
 0x11d   : > { %2236 = vst [vmem:[%s2459_s27 + $0x30] sm:$0xff] %v2104_v52   ;;  %979 = vmatmul.bf16.gmra.mxu2 %v2054_v51 }
 0x11e   : > { %1369 = vmatmul.bf16.gmra.mxu3 %v2021_v42 }
 0x120   : > { %v940_v53 = vpop.f32.mrf.mxu2  ;;  %v518_v57 = vpop.f32.mrf.mxu0 }
 0x121   : > { %v2561_v56 = vpop.f32.mrf.mxu3  ;;  %v661_v58 = vpop.f32.mrf.mxu1  ;;  %v2565_v5 = vadd.f32 %v940_v53, %v660_v59 }
 0x122   : > { %v662_v61 = vadd.f32 %v661_v58, %v518_v57 }
 0x128   : > { %v942_v1 = vpop.f32.mrf.mxu2  ;;  %v521_v9 = vpop.f32.mrf.mxu0 }
 0x129   : > { %v2563_v4 = vpop.f32.mrf.mxu3  ;;  %v2567_v7 = vadd.f32 %v942_v1, %v662_v61  ;;  %v664_v10 = vpop.f32.mrf.mxu1 }
 0x12a   : > { %v2189_v8 = vpack.c.bf16 %v2563_v4, %v2561_v56  ;;  %v665_v21 = vadd.f32 %v664_v10, %v521_v9 }
 0x12b   : > { %v2109_v13 = vpack.c.bf16 %v2567_v7, %v2565_v5 }
 0x12c   : > { %2252 = vst [vmem:[%s2444_s24 + $0x38] sm:$0xff] %v2189_v8  }
 0x12d   : > { %2237 = vst [vmem:[%s2459_s27 + $0x38] sm:$0xff] %v2109_v13  }
 0x130   : > { %v945_v16 = vpop.f32.mrf.mxu2  ;;  %v523_v18 = vpop.f32.mrf.mxu0 }
 0x131   : > { %v2575_v17 = vpop.f32.mrf.mxu3  ;;  %v666_v19 = vpop.f32.mrf.mxu1  ;;  %v2579_v29 = vadd.f32 %v945_v16, %v665_v21 }
 0x132   : > { %2930 = vst [vmem:[#allocation9_spill] sm:$0xff] %v2575_v17  ;;  %v667_v25 = vadd.f32 %v666_v19, %v523_v18 }
 0x138   : > { %v947_v26 = vpop.f32.mrf.mxu2  ;;  %v526_v35 = vpop.f32.mrf.mxu0 }
 0x139   : > { %v2577_v27 = vpop.f32.mrf.mxu3  ;;  %v2581_v32 = vadd.f32 %v947_v26, %v667_v25  ;;  %v669_v36 = vpop.f32.mrf.mxu1 }
 0x13a   : > { %2931 = vst [vmem:[#allocation10_spill] sm:$0xff] %v2577_v27  ;;  %v2194_v33 = vpack.c.bf16 %v2577_v27, %v2575_v17  ;;  %v670_v49 = vadd.f32 %v669_v36, %v526_v35 }
 0x13b   : > { %v2114_v37 = vpack.c.bf16 %v2581_v32, %v2579_v29 }
 0x13c   : > { %2253 = vst [vmem:[%s2444_s24 + $0x40] sm:$0xff] %v2194_v33  }
 0x13d   : > { %2238 = vst [vmem:[%s2459_s27 + $0x40] sm:$0xff] %v2114_v37  }
 0x140   : > { %v950_v39 = vpop.f32.mrf.mxu2  ;;  %v528_v42 = vpop.f32.mrf.mxu0 }
 0x141   : > { %v2589_v40 = vpop.f32.mrf.mxu3  ;;  %v671_v48 = vpop.f32.mrf.mxu1  ;;  %v2593_v53 = vadd.f32 %v950_v39, %v670_v49 }
 0x142   : > { %2932 = vst [vmem:[#allocation11_spill] sm:$0xff] %v2589_v40  ;;  %v672_v50 = vadd.f32 %v671_v48, %v528_v42 }
 0x148   : > { %v952_v51 = vpop.f32.mrf.mxu2  ;;  %v531_v59 = vpop.f32.mrf.mxu0 }
 0x149   : > { %v2591_v52 = vpop.f32.mrf.mxu3  ;;  %v2595_v57 = vadd.f32 %v952_v51, %v672_v50  ;;  %v674_v61 = vpop.f32.mrf.mxu1 }
 0x14a   : > { %2933 = vst [vmem:[#allocation12_spill] sm:$0xff] %v2591_v52  ;;  %v2199_v58 = vpack.c.bf16 %v2591_v52, %v2589_v40  ;;  %v675_v16 = vadd.f32 %v674_v61, %v531_v59 }
 0x14b   : > { %v2119_v1 = vpack.c.bf16 %v2595_v57, %v2593_v53 }
 0x14c   : > { %2254 = vst [vmem:[%s2444_s24 + $0x48] sm:$0xff] %v2199_v58  }
 0x14d   : > { %2239 = vst [vmem:[%s2459_s27 + $0x48] sm:$0xff] %v2119_v1  }
 0x150   : > { %v955_v8 = vpop.f32.mrf.mxu2  ;;  %v533_v10 = vpop.f32.mrf.mxu0 }
 0x151   : > { %v2603_v9 = vpop.f32.mrf.mxu3  ;;  %v676_v13 = vpop.f32.mrf.mxu1  ;;  %v2607_v25 = vadd.f32 %v955_v8, %v675_v16 }
 0x152   : > { %v677_v18 = vadd.f32 %v676_v13, %v533_v10 }
 0x158   : > { %v957_v19 = vpop.f32.mrf.mxu2  ;;  %v536_v35 = vpop.f32.mrf.mxu0 }
 0x159   : > { %v2605_v21 = vpop.f32.mrf.mxu3  ;;  %v2609_v26 = vadd.f32 %v957_v19, %v677_v18  ;;  %v679_v36 = vpop.f32.mrf.mxu1  ;;  %v1439_v18 = vadd.f32 %v2446_v60, %v2439_v54  ;;  %v1081_v19 = vadd.f32 %v2451_v63, %v2449_v62 }
 0x15a   : > { %v2204_v33 = vpack.c.bf16 %v2605_v21, %v2603_v9  ;;  %v680_v50 = vadd.f32 %v679_v36, %v536_v35 }
 0x15b   : > { %v2124_v37 = vpack.c.bf16 %v2609_v26, %v2607_v25  ;;  %v1082_v35 = vadd.f32 %v1081_v19, %v2470_v14 }
 0x15c   : > { %2255 = vst [vmem:[%s2444_s24 + $0x50] sm:$0xff] %v2204_v33   ;;  %v1440_v33 = vadd.f32 %v1439_v18, %v2465_v6 }
 0x15d   : > { %2240 = vst [vmem:[%s2459_s27 + $0x50] sm:$0xff] %v2124_v37  }
 0x160   : > { %v960_v39 = vpop.f32.mrf.mxu2  ;;  %v538_v48 = vpop.f32.mrf.mxu0 }
 0x161   : > { %v2617_v42 = vpop.f32.mrf.mxu3  ;;  %v681_v49 = vpop.f32.mrf.mxu1  ;;  %v2621_v61 = vadd.f32 %v960_v39, %v680_v50  ;;  %v1441_v39 = vadd.f32 %v1440_v33, %v2467_v12  ;;  %v1083_v50 = vadd.f32 %v1082_v35, %v2472_v15 }
 0x162   : > { %v682_v51 = vadd.f32 %v681_v49, %v538_v48 }
 0x168   : > { %v962_v58 = vpop.f32.mrf.mxu2  ;;  %v541_v10 = vpop.f32.mrf.mxu0 }
 0x169   : > { %v2619_v59 = vpop.f32.mrf.mxu3  ;;  %v2623_v1 = vadd.f32 %v962_v58, %v682_v51  ;;  %v684_v13 = vpop.f32.mrf.mxu1  ;;  %v1442_v51 = vadd.f32 %v1441_v39, %v2481_v22  ;;  %v1084_v58 = vadd.f32 %v1083_v50, %v2486_v30 }
 0x16a   : > { %v2209_v8 = vpack.c.bf16 %v2619_v59, %v2617_v42 }
 0x16b   : > { %v2129_v16 = vpack.c.bf16 %v2623_v1, %v2621_v61  ;;  %v1085_v18 = vadd.f32 %v1084_v58, %v2488_v31 }
 0x16c   : > { %2256 = vst [vmem:[%s2444_s24 + $0x58] sm:$0xff] %v2209_v8   ;;  %v1443_v8 = vadd.f32 %v1442_v51, %v2483_v28 }
 0x16d   : > { %2241 = vst [vmem:[%s2459_s27 + $0x58] sm:$0xff] %v2129_v16   ;;  %v685_v16 = vadd.f32 %v684_v13, %v541_v10  ;;  %v1086_v33 = vadd.f32 %v1085_v18, %v2502_v46 }
 0x16e   : > { %v1444_v19 = vadd.f32 %v1443_v8, %v2497_v38 }
 0x16f   : > { %v1087_v58 = vadd.f32 %v1086_v33, %v2504_v47 }
 0x170   : > { %v965_v36 = vpop.f32.mrf.mxu2  ;;  %v543_v48 = vpop.f32.mrf.mxu0  ;;  %v1445_v35 = vadd.f32 %v1444_v19, %v2499_v44 }
 0x171   : > { %v2637_v37 = vpop.f32.mrf.mxu3  ;;  %v686_v49 = vpop.f32.mrf.mxu1  ;;  %v2650_v39 = vadd.f32 %v965_v36, %v685_v16  ;;  %v1088_v8 = vadd.f32 %v1087_v58, %v2518_v2 }
 0x172   : > { %2934 = vst [vmem:[#allocation13_spill] sm:$0xff] %v2637_v37  ;;  %v687_v6 = vadd.f32 %v686_v49, %v543_v48  ;;  %v1446_v48 = vadd.f32 %v1445_v35, %v2513_v55 }
 0x174   : > { %v1447_v36 = vadd.f32 %v1446_v48, %v2515_v0 }
 0x178   : > { %v967_v12 = vpop.f32.mrf.mxu2  ;;  %v546_v13 = vpop.f32.mrf.mxu0 }
 0x179   : > { %v2647_v60 = vpop.f32.mrf.mxu3  ;;  %v2652_v50 = vadd.f32 %v967_v12, %v687_v6  ;;  %v689_v51 = vpop.f32.mrf.mxu1  ;;  %v1089_v6 = vadd.f32 %v1088_v8, %v2520_v3  ;;  %v1448_v12 = vadd.f32 %v1447_v36, %v2529_v11 }
 0x17a   : > { %v2214_v10 = vpack.c.bf16 %v2647_v60, %v2637_v37  ;;  %v690_v8 = vadd.f32 %v689_v51, %v546_v13 }
 0x17b   : > { %v2134_v49 = vpack.c.bf16 %v2652_v50, %v2650_v39  ;;  %v1090_v16 = vadd.f32 %v1089_v6, %v2534_v23  ;;  %v1449_v33 = vadd.f32 %v1448_v12, %v2531_v20 }
 0x17c   : > { %2257 = vst [vmem:[%s2444_s24 + $0x60] sm:$0xff] %v2214_v10  }
 0x17d   : > { %2242 = vst [vmem:[%s2459_s27 + $0x60] sm:$0xff] %v2134_v49   ;;  %v1091_v10 = vadd.f32 %v1090_v16, %v2536_v24  ;;  %v1450_v58 = vadd.f32 %v1449_v33, %v2545_v34 }
 0x17f   : > { %v1092_v48 = vadd.f32 %v1091_v10, %v2550_v43  ;;  %v1451_v49 = vadd.f32 %v1450_v58, %v2547_v41 }
 0x180   : > { %v970_v18 = vpop.f32.mrf.mxu2  ;;  %v548_v35 = vpop.f32.mrf.mxu0 }
 0x181   : > { %v2667_v19 = vpop.f32.mrf.mxu3  ;;  %v691_v55 = vpop.f32.mrf.mxu1  ;;  %v1093_v36 = vadd.f32 %v1092_v48, %v2552_v45  ;;  %v1452_v6 = vadd.f32 %v1451_v49, %v2561_v56  ;;  %v2680_v33 = vadd.f32 %v970_v18, %v690_v8 }
 0x182   : > { %v692_v11 = vadd.f32 %v691_v55, %v548_v35 }
 0x183   : > { %v1094_v12 = vadd.f32 %v1093_v36, %v2565_v5  ;;  %v1453_v16 = vadd.f32 %v1452_v6, %v2563_v4 }
 0x185   : > { %v1095_v48 = vadd.f32 %v1094_v12, %v2567_v7  ;;  %v1454_v55 = vadd.f32 %v1453_v16, %v2575_v17 }
 0x187   : > { %v1096_v49 = vadd.f32 %v1095_v48, %v2579_v29  ;;  %v1455_v18 = vadd.f32 %v1454_v55, %v2577_v27 }
 0x188   : > { %v972_v20 = vpop.f32.mrf.mxu2  ;;  %v551_v51 = vpop.f32.mrf.mxu0 }
 0x189   : > { %v2677_v0 = vpop.f32.mrf.mxu3  ;;  %v2682_v10 = vadd.f32 %v972_v20, %v692_v11  ;;  %v694_v58 = vpop.f32.mrf.mxu1  ;;  %v1097_v11 = vadd.f32 %v1096_v49, %v2581_v32  ;;  %v1456_v20 = vadd.f32 %v1455_v18, %v2589_v40 }
 0x18a   : > { %v2219_v13 = vpack.c.bf16 %v2677_v0, %v2667_v19  ;;  %v695_v49 = vadd.f32 %v694_v58, %v551_v51 }
 0x18b   : > { %v2139_v35 = vpack.c.bf16 %v2682_v10, %v2680_v33  ;;  %v1098_v8 = vadd.f32 %v1097_v11, %v2593_v53  ;;  %v1457_v12 = vadd.f32 %v1456_v20, %v2591_v52 }
 0x18c   : > { %2258 = vst [vmem:[%s2444_s24 + $0x68] sm:$0xff] %v2219_v13  }
 0x18d   : > { %2243 = vst [vmem:[%s2459_s27 + $0x68] sm:$0xff] %v2139_v35   ;;  %v1099_v13 = vadd.f32 %v1098_v8, %v2595_v57  ;;  %v1458_v48 = vadd.f32 %v1457_v12, %v2603_v9 }
 0x18f   : > { %v1100_v55 = vadd.f32 %v1099_v13, %v2607_v25  ;;  %v1459_v35 = vadd.f32 %v1458_v48, %v2605_v21 }
 0x190   : > { %v975_v36 = vpop.f32.mrf.mxu2  ;;  %v553_v16 = vpop.f32.mrf.mxu0 }
 0x191   : > { %v2697_v6 = vpop.f32.mrf.mxu3  ;;  %v696_v17 = vpop.f32.mrf.mxu1  ;;  %v1101_v18 = vadd.f32 %v1100_v55, %v2609_v26  ;;  %v1460_v11 = vadd.f32 %v1459_v35, %v2617_v42  ;;  %v2710_v12 = vadd.f32 %v975_v36, %v695_v49 }
 0x192   : > { %2935 = vst [vmem:[#allocation14_spill] sm:$0xff] %v2697_v6  ;;  %v697_v40 = vadd.f32 %v696_v17, %v553_v16 }
 0x193   : > { %v1102_v20 = vadd.f32 %v1101_v18, %v2621_v61  ;;  %v1461_v8 = vadd.f32 %v1460_v11, %v2619_v59 }
 0x195   : > { %v1103_v55 = vadd.f32 %v1102_v20, %v2623_v1  ;;  %v1462_v17 = vadd.f32 %v1461_v8, %v2637_v37 }
 0x197   : > { %v1104_v35 = vadd.f32 %v1103_v55, %v2650_v39  ;;  %v1463_v36 = vadd.f32 %v1462_v17, %v2647_v60 }
 0x198   : > { %v977_v52 = vpop.f32.mrf.mxu2  ;;  %v556_v58 = vpop.f32.mrf.mxu0 }
 0x199   : > { %v2707_v27 = vpop.f32.mrf.mxu3  ;;  %v2712_v13 = vadd.f32 %v977_v52, %v697_v40  ;;  %v699_v48 = vpop.f32.mrf.mxu1  ;;  %v1105_v40 = vadd.f32 %v1104_v35, %v2652_v50  ;;  %v1464_v52 = vadd.f32 %v1463_v36, %v2667_v19 }
 0x19a   : > { %2936 = vst [vmem:[#allocation15_spill] sm:$0xff] %v2707_v27  ;;  %v2224_v51 = vpack.c.bf16 %v2707_v27, %v2697_v6  ;;  %v700_v8 = vadd.f32 %v699_v48, %v556_v58 }
 0x19b   : > { %v2144_v16 = vpack.c.bf16 %v2712_v13, %v2710_v12  ;;  %v1106_v11 = vadd.f32 %v1105_v40, %v2680_v33  ;;  %v1465_v20 = vadd.f32 %v1464_v52, %v2677_v0 }
 0x19c   : > { %2259 = vst [vmem:[%s2444_s24 + $0x70] sm:$0xff] %v2224_v51  }
 0x19d   : > { %2244 = vst [vmem:[%s2459_s27 + $0x70] sm:$0xff] %v2144_v16   ;;  %v1107_v51 = vadd.f32 %v1106_v11, %v2682_v10  ;;  %v1466_v55 = vadd.f32 %v1465_v20, %v2697_v6 }
 0x19f   : > { %v1108_v16 = vadd.f32 %v1107_v51, %v2710_v12  ;;  %v1467_v35 = vadd.f32 %v1466_v55, %v2707_v27 }
 0x1a0   : > { %v980_v49 = vpop.f32.mrf.mxu2  ;;  %v558_v37 = vpop.f32.mrf.mxu0 }
 0x1a1   : > { %v2726_v18 = vpop.f32.mrf.mxu3  ;;  %v701_v17 = vpop.f32.mrf.mxu1  ;;  %v2734_v36 = vadd.f32 %v980_v49, %v700_v8  ;;  %v1109_v40 = vadd.f32 %v1108_v16, %v2712_v13 }
 0x1a2   : > { %2937 = vst [vmem:[#allocation16_spill] sm:$0xff] %v2726_v18  ;;  %v1468_v52 = vadd.f32 %v1467_v35, %v2726_v18  ;;  %v702_v58 = vadd.f32 %v701_v17, %v558_v37 }
 0x1a3   : > { %v1110_v20 = vadd.f32 %v1109_v40, %v2734_v36 }
 0x1a8   : > { %v982_v48 = vpop.f32.mrf.mxu2 }
 0x1a9   : > { %v2738_v11 = vpop.f32.mrf.mxu3  ;;  %v2741_v6 = vadd.f32 %v982_v48, %v702_v58 }
 0x1aa   : > { %v2229_v51 = vpack.c.bf16 %v2738_v11, %v2726_v18  ;;  %v1469_v49 = vadd.f32 %v1468_v52, %v2738_v11 }
 0x1ab   : > { %v2149_v8 = vpack.c.bf16 %v2741_v6, %v2734_v36  ;;  %v1111_v55 = vadd.f32 %v1110_v20, %v2741_v6 }
 0x1ac   : > { %2260 = vst [vmem:[%s2444_s24 + $0x78] sm:$0xff] %v2229_v51   ;;  %v1470_v37 = vrot.slane %v1469_v49, 4 }
 0x1ad   : > { %2245 = vst [vmem:[%s2459_s27 + $0x78] sm:$0xff] %v2149_v8   ;;  %v1112_v17 = vrot.slane %v1111_v55, 4 }
 0x1ae   : > { %v1471_v16 = vadd.f32 %v1470_v37, %v1469_v49 }
 0x1af   : > { %v1113_v35 = vadd.f32 %v1112_v17, %v1111_v55 }
 0x1b0   : > { %v1472_v40 = vrot.slane %v1471_v16, 2 }
 0x1b1   : > { %v1114_v58 = vrot.slane %v1113_v35, 2 }
 0x1b2   : > { %v1473_v48 = vadd.f32 %v1472_v40, %v1471_v16 }
 0x1b3   : > { %v1115_v27 = vadd.f32 %v1114_v58, %v1113_v35 }
 0x1b4   : > { %v1474_v18 = vrot.slane %v1473_v48, 1 }
 0x1b5   : > { %v1116_v52 = vrot.slane %v1115_v27, 1 }
 0x1b6   : > { %v1475_v20 = vadd.f32 %v1474_v18, %v1473_v48 }
 0x1b7   : > { %v1117_v51 = vadd.f32 %v1116_v52, %v1115_v27 }
 0x1b8   : > { %1578 = vst [vmem:[%s2756_s7] sm:$0x1] %v1475_v20  ;;  %v2779_v52 = vmul.f32 0.00390625, %v1475_v20  ;;  %v2938_v20 = vld [vmem:[#allocation2_spill] sm:$0xff] }
 0x1b9   : > { %1220 = vst [vmem:[%s2761_s10] sm:$0x1] %v1117_v51  ;;  %v2765_v49 = vmul.f32 0.00390625, %v1117_v51 }
 0x1bb   : > { %v1119_v8 = vsub.f32 %v2449_v62, %v2765_v49  ;;  %v1120_v55 = vsub.f32 %v2451_v63, %v2765_v49  ;;  %v1121_v18 = vsub.f32 %v2470_v14, %v2765_v49  ;;  %v1122_v16 = vsub.f32 %v2472_v15, %v2765_v49 }
 0x1bc   : > { %v1123_v27 = vsub.f32 %v2486_v30, %v2765_v49  ;;  %v1124_v58 = vsub.f32 %v2488_v31, %v2765_v49  ;;  %v1125_v63 = vsub.f32 %v2502_v46, %v2765_v49  ;;  %v1126_v15 = vsub.f32 %v2504_v47, %v2765_v49 }
 0x1bd   : > { %v1151_v37 = vmul.f32 %v1119_v8, %v1119_v8  ;;  %v1152_v17 = vmul.f32 %v1120_v55, %v1120_v55  ;;  %v1153_v35 = vmul.f32 %v1121_v18, %v1121_v18  ;;  %v1154_v62 = vmul.f32 %v1122_v16, %v1122_v16 }
 0x1be   : > { %v1155_v14 = vmul.f32 %v1123_v27, %v1123_v27  ;;  %v1156_v8 = vmul.f32 %v1124_v58, %v1124_v58  ;;  %v1477_v30 = vsub.f32 %v2439_v54, %v2779_v52  ;;  %v1127_v31 = vsub.f32 %v2518_v2, %v2765_v49 }
 0x1bf   : > { %v1183_v40 = vadd.f32 %v1152_v17, %v1151_v37  ;;  %v1157_v18 = vmul.f32 %v1125_v63, %v1125_v63  ;;  %v1478_v17 = vsub.f32 %v2938_v20, %v2779_v52  ;;  %v1128_v46 = vsub.f32 %v2520_v3, %v2765_v49 }
 0x1c0   : > { %v1158_v16 = vmul.f32 %v1126_v15, %v1126_v15  ;;  %v1129_v47 = vsub.f32 %v2534_v23, %v2765_v49  ;;  %v1159_v54 = vmul.f32 %v1127_v31, %v1127_v31  ;;  %v1131_v15 = vsub.f32 %v2550_v43, %v2765_v49 }
 0x1c1   : > { %v1184_v48 = vadd.f32 %v1183_v40, %v1153_v35  ;;  %v2939_v35 = vld [vmem:[#allocation3_spill] sm:$0xff]  ;;  %v1510_v2 = vmul.f32 %v1478_v17, %v1478_v17  ;;  %v1160_v63 = vmul.f32 %v1128_v46, %v1128_v46  ;;  %v1481_v23 = vsub.f32 %v2481_v22, %v2779_v52 }
 0x1c2   : > { %v1479_v40 = vsub.f32 %v2939_v35, %v2779_v52  ;;  %v1133_v43 = vsub.f32 %v2565_v5, %v2765_v49  ;;  %v1483_v22 = vsub.f32 %v2497_v38, %v2779_v52  ;;  %v1135_v5 = vsub.f32 %v2579_v29, %v2765_v49  ;;  %v2941_v38 = vld [vmem:[#allocation5_spill] sm:$0xff] }
 0x1c3   : > { %v1185_v51 = vadd.f32 %v1184_v48, %v1154_v62  ;;  %v1509_v62 = vmul.f32 %v1477_v30, %v1477_v30  ;;  %v1130_v48 = vsub.f32 %v2536_v24, %v2765_v49  ;;  %v1132_v30 = vsub.f32 %v2552_v45, %v2765_v49 }
 0x1c4   : > { %v1511_v31 = vmul.f32 %v1479_v40, %v1479_v40  ;;  %v1482_v24 = vsub.f32 %v2483_v28, %v2779_v52  ;;  %v1134_v45 = vsub.f32 %v2567_v7, %v2765_v49  ;;  %v1484_v28 = vsub.f32 %v2499_v44, %v2779_v52 }
 0x1c5   : > { %v1186_v55 = vadd.f32 %v1185_v51, %v1155_v14  ;;  %v2940_v51 = vld [vmem:[#allocation4_spill] sm:$0xff]  ;;  %v1164_v40 = vmul.f32 %v1132_v30, %v1132_v30  ;;  %v1136_v7 = vsub.f32 %v2581_v32, %v2765_v49  ;;  %v1137_v29 = vsub.f32 %v2593_v53, %v2765_v49  ;;  %v2943_v30 = vld [vmem:[#allocation7_spill] sm:$0xff] }
 0x1c6   : > { %v1480_v3 = vsub.f32 %v2940_v51, %v2779_v52  ;;  %v1138_v32 = vsub.f32 %v2595_v57, %v2765_v49  ;;  %v1139_v53 = vsub.f32 %v2607_v25, %v2765_v49  ;;  %v1140_v57 = vsub.f32 %v2609_v26, %v2765_v49 }
 0x1c7   : > { %v1187_v37 = vadd.f32 %v1186_v55, %v1156_v8  ;;  %v1161_v8 = vmul.f32 %v1129_v47, %v1129_v47  ;;  %v1513_v47 = vmul.f32 %v1481_v23, %v1481_v23  ;;  %v2942_v23 = vld [vmem:[#allocation6_spill] sm:$0xff]  ;;  %v1141_v25 = vsub.f32 %v2621_v61, %v2765_v49 }
 0x1c8   : > { %v1512_v17 = vmul.f32 %v1480_v3, %v1480_v3  ;;  %v1166_v3 = vmul.f32 %v1134_v45, %v1134_v45  ;;  %v1486_v44 = vsub.f32 %v2942_v23, %v2779_v52  ;;  %v1489_v45 = vsub.f32 %v2545_v34, %v2779_v52 }
 0x1c9   : > { %v1188_v27 = vadd.f32 %v1187_v37, %v1157_v18  ;;  %v1541_v18 = vadd.f32 %v1510_v2, %v1509_v62  ;;  %v1162_v37 = vmul.f32 %v1130_v48, %v1130_v48  ;;  %v1165_v2 = vmul.f32 %v1133_v43, %v1133_v43  ;;  %v2944_v43 = vld [vmem:[#allocation8_spill] sm:$0xff] }
 0x1ca   : > { %v1491_v34 = vsub.f32 %v2561_v56, %v2779_v52  ;;  %v1142_v26 = vsub.f32 %v2623_v1, %v2765_v49  ;;  %v1143_v61 = vsub.f32 %v2650_v39, %v2765_v49  ;;  %v1173_v23 = vmul.f32 %v1141_v25, %v1141_v25 }
 0x1cb   : > { %v1189_v58 = vadd.f32 %v1188_v27, %v1158_v16  ;;  %v1542_v46 = vadd.f32 %v1541_v18, %v1511_v31  ;;  %v1163_v16 = vmul.f32 %v1131_v15, %v1131_v15  ;;  %v1167_v31 = vmul.f32 %v1135_v5, %v1135_v5 }
 0x1cc   : > { %v1144_v1 = vsub.f32 %v2652_v50, %v2765_v49  ;;  %v1145_v39 = vsub.f32 %v2680_v33, %v2765_v49  ;;  %v1146_v50 = vsub.f32 %v2682_v10, %v2765_v49  ;;  %v1147_v33 = vsub.f32 %v2710_v12, %v2765_v49 }
 0x1cd   : > { %v1190_v14 = vadd.f32 %v1189_v58, %v1159_v54  ;;  %v1543_v35 = vadd.f32 %v1542_v46, %v1512_v17  ;;  %v1514_v58 = vmul.f32 %v1482_v24, %v1482_v24  ;;  %v1487_v24 = vsub.f32 %v2943_v30, %v2779_v52  ;;  %v2946_v30 = vld [vmem:[#allocation10_spill] sm:$0xff] }
 0x1ce   : > { %v1168_v17 = vmul.f32 %v1136_v7, %v1136_v7  ;;  %v1148_v10 = vsub.f32 %v2712_v13, %v2765_v49  ;;  %v1149_v12 = vsub.f32 %v2734_v36, %v2765_v49  ;;  %v1150_v13 = vsub.f32 %v2741_v6, %v2765_v49  ;;  %v2949_v36 = vld [vmem:[#allocation13_spill] sm:$0xff] }
 0x1cf   : > { %v1191_v55 = vadd.f32 %v1190_v14, %v1160_v63  ;;  %v1544_v62 = vadd.f32 %v1543_v35, %v1513_v47  ;;  %v1485_v63 = vsub.f32 %v2941_v38, %v2779_v52  ;;  %v1515_v14 = vmul.f32 %v1483_v22, %v1483_v22 }
 0x1d0   : > { %v1488_v22 = vsub.f32 %v2944_v43, %v2779_v52  ;;  %v1169_v47 = vmul.f32 %v1137_v29, %v1137_v29 }
 0x1d1   : > { %v1192_v20 = vadd.f32 %v1191_v55, %v1161_v8  ;;  %v1545_v51 = vadd.f32 %v1544_v62, %v1514_v58  ;;  %v1516_v8 = vmul.f32 %v1484_v28, %v1484_v28  ;;  %v1170_v28 = vmul.f32 %v1138_v32, %v1138_v32 }
 0x1d2   : > { %v1490_v62 = vsub.f32 %v2547_v41, %v2779_v52  ;;  %v1520_v5 = vmul.f32 %v1488_v22, %v1488_v22  ;;  %v1492_v41 = vsub.f32 %v2563_v4, %v2779_v52  ;;  %v1494_v4 = vsub.f32 %v2946_v30, %v2779_v52 }
 0x1d3   : > { %v1193_v27 = vadd.f32 %v1192_v20, %v1162_v37  ;;  %v1546_v55 = vadd.f32 %v1545_v51, %v1515_v14  ;;  %v1517_v37 = vmul.f32 %v1485_v63, %v1485_v63  ;;  %v1521_v63 = vmul.f32 %v1489_v45, %v1489_v45 }
 0x1d4   : > { %v1172_v51 = vmul.f32 %v1140_v57, %v1140_v57  ;;  %v1497_v57 = vsub.f32 %v2603_v9, %v2779_v52  ;;  %v1499_v9 = vsub.f32 %v2617_v42, %v2779_v52  ;;  %v1182_v42 = vmul.f32 %v1150_v13, %v1150_v13 }
 0x1d5   : > { %v1194_v54 = vadd.f32 %v1193_v27, %v1163_v16  ;;  %v1547_v20 = vadd.f32 %v1546_v55, %v1516_v8  ;;  %v1518_v16 = vmul.f32 %v1486_v44, %v1486_v44  ;;  %v2945_v8 = vld [vmem:[#allocation9_spill] sm:$0xff]  ;;  %v1523_v55 = vmul.f32 %v1491_v34, %v1491_v34 }
 0x1d6   : > { %v1493_v56 = vsub.f32 %v2945_v8, %v2779_v52 }
 0x1d7   : > { %v1195_v48 = vadd.f32 %v1194_v54, %v1164_v40  ;;  %v1548_v27 = vadd.f32 %v1547_v20, %v1517_v37  ;;  %v1519_v40 = vmul.f32 %v1487_v24, %v1487_v24  ;;  %v1524_v24 = vmul.f32 %v1492_v41, %v1492_v41 }
 0x1d8   : > { %v1175_v20 = vmul.f32 %v1143_v61, %v1143_v61  ;;  %v1525_v43 = vmul.f32 %v1493_v56, %v1493_v56  ;;  %v1501_v61 = vsub.f32 %v2949_v36, %v2779_v52  ;;  %v1502_v56 = vsub.f32 %v2647_v60, %v2779_v52 }
 0x1d9   : > { %v1196_v15 = vadd.f32 %v1195_v48, %v1165_v2  ;;  %v1549_v54 = vadd.f32 %v1548_v27, %v1518_v16  ;;  %v1171_v48 = vmul.f32 %v1139_v53, %v1139_v53  ;;  %v1176_v16 = vmul.f32 %v1144_v1, %v1144_v1  ;;  %v2948_v53 = vld [vmem:[#allocation12_spill] sm:$0xff] }
 0x1da   : > { %v1534_v30 = vmul.f32 %v1502_v56, %v1502_v56 }
 0x1db   : > { %v1197_v18 = vadd.f32 %v1196_v15, %v1166_v3  ;;  %v1550_v2 = vadd.f32 %v1549_v54, %v1519_v40  ;;  %v1522_v3 = vmul.f32 %v1490_v62, %v1490_v62  ;;  %v1177_v40 = vmul.f32 %v1145_v39, %v1145_v39 }
 0x1dc   : > { %v1178_v62 = vmul.f32 %v1146_v50, %v1146_v50  ;;  %v2952_v50 = vld [vmem:[#allocation16_spill] sm:$0xff] }
 0x1dd   : > { %v1198_v46 = vadd.f32 %v1197_v18, %v1167_v31  ;;  %v1551_v14 = vadd.f32 %v1550_v2, %v1520_v5  ;;  %v1174_v31 = vmul.f32 %v1142_v26, %v1142_v26  ;;  %v1498_v2 = vsub.f32 %v2605_v21, %v2779_v52 }
 0x1de   : > { %v1180_v26 = vmul.f32 %v1148_v10, %v1148_v10  ;;  %v1500_v21 = vsub.f32 %v2619_v59, %v2779_v52  ;;  %v1503_v59 = vsub.f32 %v2667_v19, %v2779_v52 }
 0x1df   : > { %v1199_v35 = vadd.f32 %v1198_v46, %v1168_v17  ;;  %v1552_v15 = vadd.f32 %v1551_v14, %v1521_v63  ;;  %v2947_v17 = vld [vmem:[#allocation11_spill] sm:$0xff]  ;;  %v1529_v63 = vmul.f32 %v1497_v57, %v1497_v57 }
 0x1e0   : > { %v1495_v46 = vsub.f32 %v2947_v17, %v2779_v52  ;;  %v1532_v6 = vmul.f32 %v1500_v21, %v1500_v21  ;;  %v2951_v17 = vld [vmem:[#allocation15_spill] sm:$0xff] }
 0x1e1   : > { %v1200_v58 = vadd.f32 %v1199_v35, %v1169_v47  ;;  %v1553_v29 = vadd.f32 %v1552_v15, %v1522_v3  ;;  %v1496_v47 = vsub.f32 %v2948_v53, %v2779_v52  ;;  %v1526_v35 = vmul.f32 %v1494_v4, %v1494_v4 }
 0x1e2   : > { %v1181_v3 = vmul.f32 %v1149_v12, %v1149_v12 }
 0x1e3   : > { %v1201_v38 = vadd.f32 %v1200_v58, %v1170_v28  ;;  %v1554_v37 = vadd.f32 %v1553_v29, %v1523_v55  ;;  %v1527_v28 = vmul.f32 %v1495_v46, %v1495_v46  ;;  %v1528_v25 = vmul.f32 %v1496_v47, %v1496_v47 }
 0x1e4   : > { %v1533_v29 = vmul.f32 %v1501_v61, %v1501_v61  ;;  %v1506_v46 = vsub.f32 %v2951_v17, %v2779_v52  ;;  %v1508_v47 = vsub.f32 %v2738_v11, %v2779_v52 }
 0x1e5   : > { %v1202_v7 = vadd.f32 %v1201_v38, %v1171_v48  ;;  %v1555_v22 = vadd.f32 %v1554_v37, %v1524_v24  ;;  %v1179_v38 = vmul.f32 %v1147_v33, %v1147_v33  ;;  %v2950_v37 = vld [vmem:[#allocation14_spill] sm:$0xff] }
 0x1e6   : > { %v1505_v39 = vsub.f32 %v2950_v37, %v2779_v52  ;;  %v1540_v57 = vmul.f32 %v1508_v47, %v1508_v47 }
 0x1e7   : > { %v1203_v44 = vadd.f32 %v1202_v7, %v1172_v51  ;;  %v1556_v45 = vadd.f32 %v1555_v22, %v1525_v43  ;;  %v1530_v7 = vmul.f32 %v1498_v2, %v1498_v2 }
 0x1e9   : > { %v1204_v18 = vadd.f32 %v1203_v44, %v1173_v23  ;;  %v1557_v58 = vadd.f32 %v1556_v45, %v1526_v35  ;;  %v1531_v23 = vmul.f32 %v1499_v9, %v1499_v9  ;;  %v1538_v35 = vmul.f32 %v1506_v46, %v1506_v46 }
 0x1eb   : > { %v1205_v32 = vadd.f32 %v1204_v18, %v1174_v31  ;;  %v1558_v48 = vadd.f32 %v1557_v58, %v1527_v28  ;;  %v1504_v18 = vsub.f32 %v2677_v0, %v2779_v52  ;;  %v1537_v0 = vmul.f32 %v1505_v39, %v1505_v39 }
 0x1ed   : > { %v1206_v27 = vadd.f32 %v1205_v32, %v1175_v20  ;;  %v1559_v14 = vadd.f32 %v1558_v48, %v1528_v25  ;;  %v1535_v20 = vmul.f32 %v1503_v59, %v1503_v59  ;;  %v1536_v19 = vmul.f32 %v1504_v18, %v1504_v18 }
 0x1ef   : > { %v1207_v54 = vadd.f32 %v1206_v27, %v1176_v16  ;;  %v1560_v41 = vadd.f32 %v1559_v14, %v1529_v63  ;;  %v1507_v16 = vsub.f32 %v2952_v50, %v2779_v52 }
 0x1f1   : > { %v1208_v5 = vadd.f32 %v1207_v54, %v1177_v40  ;;  %v1561_v44 = vadd.f32 %v1560_v41, %v1530_v7  ;;  %v1539_v40 = vmul.f32 %v1507_v16, %v1507_v16 }
 0x1f3   : > { %v1209_v34 = vadd.f32 %v1208_v5, %v1178_v62  ;;  %v1562_v49 = vadd.f32 %v1561_v44, %v1531_v23 }
 0x1f5   : > { %v1210_v51 = vadd.f32 %v1209_v34, %v1179_v38  ;;  %v1563_v1 = vadd.f32 %v1562_v49, %v1532_v6 }
 0x1f7   : > { %v1211_v15 = vadd.f32 %v1210_v51, %v1180_v26  ;;  %v1564_v4 = vadd.f32 %v1563_v1, %v1533_v29 }
 0x1f9   : > { %v1212_v8 = vadd.f32 %v1211_v15, %v1181_v3  ;;  %v1565_v60 = vadd.f32 %v1564_v4, %v1534_v30 }
 0x1fb   : > { %v1213_v55 = vadd.f32 %v1212_v8, %v1182_v42  ;;  %v1566_v43 = vadd.f32 %v1565_v60, %v1535_v20 }
 0x1fd   : > { %v1214_v31 = vrot.slane %v1213_v55, 4  ;;  %v1567_v27 = vadd.f32 %v1566_v43, %v1536_v19 }
 0x1ff   : > { %v1215_v24 = vadd.f32 %v1214_v31, %v1213_v55  ;;  %v1568_v45 = vadd.f32 %v1567_v27, %v1537_v0 }
 0x201   : > { %v1216_v32 = vrot.slane %v1215_v24, 2  ;;  %v1569_v54 = vadd.f32 %v1568_v45, %v1538_v35 }
 0x203   : > { %v1217_v22 = vadd.f32 %v1216_v32, %v1215_v24  ;;  %v1570_v28 = vadd.f32 %v1569_v54, %v1539_v40 }
 0x205   : > { %v1218_v53 = vrot.slane %v1217_v22, 1  ;;  %v1571_v58 = vadd.f32 %v1570_v28, %v1540_v57 }
 0x207   : > { %v1219_v33 = vadd.f32 %v1218_v53, %v1217_v22  ;;  %v1572_v10 = vrot.slane %v1571_v58, 4 }
 0x209   : > { %1221 = vst [vmem:[%s2761_s10 + $0x1] sm:$0x1] %v1219_v33  ;;  %v1573_v62 = vadd.f32 %v1572_v10, %v1571_v58 }
 0x20b   : > { %v1574_v5 = vrot.slane %v1573_v62, 2 }
 0x20d   : > { %v1575_v2 = vadd.f32 %v1574_v5, %v1573_v62 }
 0x20f   : > { %v1576_v25 = vrot.slane %v1575_v2, 1 }
 0x211   : > { %v1577_v48 = vadd.f32 %v1576_v25, %v1575_v2 }
 0x213   : > { %1579 = vst [vmem:[%s2756_s7 + $0x1] sm:$0x1] %v1577_v48 }
 0x214 PF: > { %s16_s18 = sadd.s32 1, %s2275_s18  }
 0x215   : > { %p13_p6 = scmp.ge.s32.totalorder %s16_s18, 4  }
 0x217   :  { %15 = sbr.rel (!%p13_p6) target bundleno = 1 (0x1), region = 94 }

// kernel: basic_block_forward.7
= control target key start
LH: loop header
LB: loop body
LE: loop exit
PB: predicated region body
PF: predicated region fallthrough
CT: control target
= control target key end

     0   :  { %s939_s21 = smov 0   ;;  %s1181_s0 = inlined_call_operand.vmem [shape: bf16[512,128], index: 0, kind: input, shape index: {}]   ;;  %s1182_s1 = inlined_call_operand.vmem [shape: f32[1,128], index: 1, kind: input, shape index: {}]   ;;  %s1183_s2 = inlined_call_operand.vmem [shape: f32[1,128], index: 2, kind: input, shape index: {}]   ;;  %s1184_s3 = inlined_call_operand.vmem [shape: bf16[512,128], index: 3, kind: input, shape index: {}]   ;;  %s1185_s4 = inlined_call_operand.vmem [shape: f32[1,128], index: 4, kind: input, shape index: {}]   ;;  %s1186_s5 = inlined_call_operand.vmem [shape: f32[1,128], index: 5, kind: input, shape index: {}]   ;;  %s1187_s6 = inlined_call_operand.vmem [shape: f32[512,128], index: 6, kind: output, shape index: {}]  }
   0x1 LB: > { %s713_s22 = sadd.s32 4294967295, %s902_s21   ;;  %p717_p0 = scmp.ge.s32.totalorder %s902_s21, 1  ;;  %s902_s21 = sphi %s939_s21, %s16_s21  }
   0x2   : > { %p224_p1 = scmp.lt.s32.totalorder %s902_s21, 3 }
   0x4   : > { %p225_p2 = pnand %p717_p0, %p224_p1 }
   0x5   : > { %s718_s23 = sshll.u32 (!%p225_p2), %s713_s22, 5 }
   0x6   : > { %228 = sbr.rel (%p225_p2) target bundleno = 87 (0x57), region = 44  ;;  %p260_p3 = scmp.lt.s32.totalorder (!%p225_p2), %s718_s23, 63 }
   0xb   : > { %s1189_s23 = smov (!%p260_p3, %s718_s23), 63  ;;  %v963_v0 = vld [vmem:[%s1182_s1] ss:$0 sm:$0xff] }
   0xc   : > { %s719_s24 = sshll.u32 %s1189_s23, 2  ;;  %v968_v1 = vld [vmem:[%s1185_s4] ss:$0 sm:$0xff]  ;;  %s723_s15 = sshll.u32 %s1189_s23, 3 }
   0xd   : > { %s953_s27 = scalar_lea.vmem %s1181_s0, %s719_s24  ;;  %s958_s30 = scalar_lea.vmem %s1184_s3, %s719_s24  ;;  %v976_v6 = vld [vmem:[%s1183_s2] ss:$0 sm:$0xff] }
   0xe   : > { %v727_v2 = vld [vmem:[%s953_s27] sm:$0xff]   ;;  %v854_v4 = vld [vmem:[%s953_s27 + $0x8] sm:$0xff]   ;;  %v855_v15 = vld [vmem:[%s953_s27 + $0x10] sm:$0xff]   ;;  %s1011_s18 = scalar_lea.vmem %s1187_s6, %s723_s15 }
   0xf   : > { %v791_v3 = vld [vmem:[%s958_s30] sm:$0xff]   ;;  %v728_v5 = vunpack.c.l.bf16 %v727_v2  ;;  %v729_v8 = vunpack.c.h.bf16 %v727_v2  ;;  %v869_v10 = vld [vmem:[%s958_s30 + $0x8] sm:$0xff]   ;;  %v732_v11 = vunpack.c.l.bf16 %v854_v4  ;;  %v733_v13 = vunpack.c.h.bf16 %v854_v4  ;;  %v870_v16 = vld [vmem:[%s958_s30 + $0x10] sm:$0xff]  }
  0x10   : > { %v792_v7 = vunpack.c.l.bf16 %v791_v3  ;;  %v793_v9 = vunpack.c.h.bf16 %v791_v3  ;;  %v796_v12 = vunpack.c.l.bf16 %v869_v10  ;;  %v797_v14 = vunpack.c.h.bf16 %v869_v10  ;;  %v993_v26 = vld [vmem:[%s1186_s5] ss:$0 sm:$0xff]  ;;  %v856_v34 = vld [vmem:[%s953_s27 + $0x18] sm:$0xff]  }
  0x11   : > { %v345_v17 = vmul.f32 %v963_v0, %v728_v5  ;;  %v346_v19 = vmul.f32 %v963_v0, %v729_v8  ;;  %v347_v21 = vmul.f32 %v963_v0, %v732_v11  ;;  %v348_v23 = vmul.f32 %v963_v0, %v733_v13  ;;  %v871_v39 = vld [vmem:[%s958_s30 + $0x18] sm:$0xff]   ;;  %v857_v56 = vld [vmem:[%s953_s27 + $0x20] sm:$0xff]  }
  0x12   : > { %v481_v18 = vmul.f32 %v968_v1, %v792_v7  ;;  %v482_v20 = vmul.f32 %v968_v1, %v793_v9  ;;  %v483_v22 = vmul.f32 %v968_v1, %v796_v12  ;;  %v484_v24 = vmul.f32 %v968_v1, %v797_v14  ;;  %v872_v57 = vld [vmem:[%s958_s30 + $0x20] sm:$0xff]   ;;  %v858_v9 = vld [vmem:[%s953_s27 + $0x28] sm:$0xff]  }
  0x13   : > { %v381_v25 = vadd.f32 %v976_v6, %v345_v17  ;;  %v382_v27 = vadd.f32 %v976_v6, %v346_v19  ;;  %v736_v28 = vunpack.c.l.bf16 %v855_v15  ;;  %v800_v29 = vunpack.c.l.bf16 %v870_v16  ;;  %v873_v14 = vld [vmem:[%s958_s30 + $0x28] sm:$0xff]  }
  0x14   : > { %v383_v30 = vadd.f32 %v976_v6, %v347_v21  ;;  %v384_v31 = vadd.f32 %v976_v6, %v348_v23  ;;  %v737_v32 = vunpack.c.h.bf16 %v855_v15  ;;  %v801_v33 = vunpack.c.h.bf16 %v870_v16 }
  0x15   : > { %v513_v35 = vadd.f32 %v481_v18, %v381_v25  ;;  %v514_v36 = vadd.f32 %v482_v20, %v382_v27  ;;  %v349_v37 = vmul.f32 %v963_v0, %v736_v28  ;;  %v485_v38 = vmul.f32 %v968_v1, %v800_v29  ;;  %v859_v28 = vld [vmem:[%s953_s27 + $0x30] sm:$0xff]  }
  0x16   : > { %v515_v40 = vadd.f32 %v483_v22, %v383_v30  ;;  %v516_v41 = vadd.f32 %v484_v24, %v384_v31  ;;  %v350_v42 = vmul.f32 %v963_v0, %v737_v32  ;;  %v486_v43 = vmul.f32 %v968_v1, %v801_v33  ;;  %v874_v33 = vld [vmem:[%s958_s30 + $0x30] sm:$0xff]  }
  0x17   : > { %v549_v44 = vadd.f32 %v993_v26, %v513_v35  ;;  %v550_v45 = vadd.f32 %v993_v26, %v514_v36  ;;  %v385_v46 = vadd.f32 %v976_v6, %v349_v37  ;;  %v740_v47 = vunpack.c.l.bf16 %v856_v34 }
  0x18   : > { %v551_v48 = vadd.f32 %v993_v26, %v515_v40  ;;  %v552_v49 = vadd.f32 %v993_v26, %v516_v41  ;;  %v386_v50 = vadd.f32 %v976_v6, %v350_v42  ;;  %v804_v51 = vunpack.c.l.bf16 %v871_v39 }
  0x19   : > { %v581_v52 = vmax.f32 %v549_v44, 0.0  ;;  %v582_v53 = vmax.f32 %v550_v45, 0.0  ;;  %v517_v54 = vadd.f32 %v485_v38, %v385_v46  ;;  %v351_v55 = vmul.f32 %v963_v0, %v740_v47 }
  0x1a   : > { %v583_v58 = vmax.f32 %v551_v48, 0.0  ;;  %v584_v59 = vmax.f32 %v552_v49, 0.0  ;;  %v518_v60 = vadd.f32 %v486_v43, %v386_v50  ;;  %v487_v61 = vmul.f32 %v968_v1, %v804_v51  ;;  %v860_v50 = vld [vmem:[%s953_s27 + $0x38] sm:$0xff]  }
  0x1b   : > { %613 = vst [vmem:[%s1011_s18] sm:$0xff] %v581_v52  ;;  %v553_v62 = vadd.f32 %v993_v26, %v517_v54  ;;  %v387_v63 = vadd.f32 %v976_v6, %v351_v55  ;;  %v741_v2 = vunpack.c.h.bf16 %v856_v34  ;;  %v805_v3 = vunpack.c.h.bf16 %v871_v39  ;;  %v875_v51 = vld [vmem:[%s958_s30 + $0x38] sm:$0xff]  }
  0x1c   : > { %614 = vst [vmem:[%s1011_s18 + $0x8] sm:$0xff] %v582_v53  ;;  %v554_v4 = vadd.f32 %v993_v26, %v518_v60  ;;  %v744_v5 = vunpack.c.l.bf16 %v857_v56  ;;  %v808_v7 = vunpack.c.l.bf16 %v872_v57  ;;  %v745_v8 = vunpack.c.h.bf16 %v857_v56 }
  0x1d   : > { %615 = vst [vmem:[%s1011_s18 + $0x10] sm:$0xff] %v583_v58  ;;  %v585_v10 = vmax.f32 %v553_v62, 0.0  ;;  %v519_v11 = vadd.f32 %v487_v61, %v387_v63  ;;  %v352_v12 = vmul.f32 %v963_v0, %v741_v2  ;;  %v488_v13 = vmul.f32 %v968_v1, %v805_v3  ;;  %v861_v2 = vld [vmem:[%s953_s27 + $0x40] sm:$0xff]  }
  0x1e   : > { %616 = vst [vmem:[%s1011_s18 + $0x18] sm:$0xff] %v584_v59  ;;  %v586_v15 = vmax.f32 %v554_v4, 0.0  ;;  %v353_v16 = vmul.f32 %v963_v0, %v744_v5  ;;  %v489_v17 = vmul.f32 %v968_v1, %v808_v7  ;;  %v354_v18 = vmul.f32 %v963_v0, %v745_v8  ;;  %v876_v8 = vld [vmem:[%s958_s30 + $0x40] sm:$0xff]  }
  0x1f   : > { %617 = vst [vmem:[%s1011_s18 + $0x20] sm:$0xff] %v585_v10  ;;  %v555_v19 = vadd.f32 %v993_v26, %v519_v11  ;;  %v388_v20 = vadd.f32 %v976_v6, %v352_v12  ;;  %v809_v21 = vunpack.c.h.bf16 %v872_v57  ;;  %v748_v22 = vunpack.c.l.bf16 %v858_v9 }
  0x20   : > { %618 = vst [vmem:[%s1011_s18 + $0x28] sm:$0xff] %v586_v15  ;;  %v389_v23 = vadd.f32 %v976_v6, %v353_v16  ;;  %v390_v24 = vadd.f32 %v976_v6, %v354_v18  ;;  %v812_v25 = vunpack.c.l.bf16 %v873_v14  ;;  %v749_v27 = vunpack.c.h.bf16 %v858_v9 }
  0x21   : > { %v587_v29 = vmax.f32 %v555_v19, 0.0  ;;  %v520_v30 = vadd.f32 %v488_v13, %v388_v20  ;;  %v490_v31 = vmul.f32 %v968_v1, %v809_v21  ;;  %v355_v32 = vmul.f32 %v963_v0, %v748_v22  ;;  %v862_v21 = vld [vmem:[%s953_s27 + $0x48] sm:$0xff]  }
  0x22   : > { %v521_v34 = vadd.f32 %v489_v17, %v389_v23  ;;  %v491_v35 = vmul.f32 %v968_v1, %v812_v25  ;;  %v356_v36 = vmul.f32 %v963_v0, %v749_v27  ;;  %v813_v37 = vunpack.c.h.bf16 %v873_v14  ;;  %v877_v27 = vld [vmem:[%s958_s30 + $0x48] sm:$0xff]  }
  0x23   : > { %619 = vst [vmem:[%s1011_s18 + $0x30] sm:$0xff] %v587_v29  ;;  %v556_v38 = vadd.f32 %v993_v26, %v520_v30  ;;  %v522_v39 = vadd.f32 %v490_v31, %v390_v24  ;;  %v391_v40 = vadd.f32 %v976_v6, %v355_v32  ;;  %v752_v41 = vunpack.c.l.bf16 %v859_v28 }
  0x24   : > { %v557_v42 = vadd.f32 %v993_v26, %v521_v34  ;;  %v392_v43 = vadd.f32 %v976_v6, %v356_v36  ;;  %v492_v44 = vmul.f32 %v968_v1, %v813_v37  ;;  %v816_v45 = vunpack.c.l.bf16 %v874_v33 }
  0x25   : > { %v588_v46 = vmax.f32 %v556_v38, 0.0  ;;  %v558_v47 = vadd.f32 %v993_v26, %v522_v39  ;;  %v523_v48 = vadd.f32 %v491_v35, %v391_v40  ;;  %v357_v49 = vmul.f32 %v963_v0, %v752_v41 }
  0x26   : > { %v589_v52 = vmax.f32 %v557_v42, 0.0  ;;  %v524_v53 = vadd.f32 %v492_v44, %v392_v43  ;;  %v493_v54 = vmul.f32 %v968_v1, %v816_v45  ;;  %v753_v55 = vunpack.c.h.bf16 %v859_v28  ;;  %v863_v44 = vld [vmem:[%s953_s27 + $0x50] sm:$0xff]  }
  0x27   : > { %620 = vst [vmem:[%s1011_s18 + $0x38] sm:$0xff] %v588_v46  ;;  %v590_v56 = vmax.f32 %v558_v47, 0.0  ;;  %v559_v57 = vadd.f32 %v993_v26, %v523_v48  ;;  %v393_v58 = vadd.f32 %v976_v6, %v357_v49  ;;  %v817_v59 = vunpack.c.h.bf16 %v874_v33  ;;  %v878_v45 = vld [vmem:[%s958_s30 + $0x50] sm:$0xff]  }
  0x28   : > { %621 = vst [vmem:[%s1011_s18 + $0x40] sm:$0xff] %v589_v52  ;;  %v560_v60 = vadd.f32 %v993_v26, %v524_v53  ;;  %v358_v61 = vmul.f32 %v963_v0, %v753_v55  ;;  %v756_v62 = vunpack.c.l.bf16 %v860_v50  ;;  %v820_v63 = vunpack.c.l.bf16 %v875_v51 }
  0x29   : > { %622 = vst [vmem:[%s1011_s18 + $0x48] sm:$0xff] %v590_v56  ;;  %v591_v3 = vmax.f32 %v559_v57, 0.0  ;;  %v525_v4 = vadd.f32 %v493_v54, %v393_v58  ;;  %v494_v5 = vmul.f32 %v968_v1, %v817_v59  ;;  %v757_v7 = vunpack.c.h.bf16 %v860_v50  ;;  %v864_v58 = vld [vmem:[%s953_s27 + $0x58] sm:$0xff]  }
  0x2a   : > { %v592_v9 = vmax.f32 %v560_v60, 0.0  ;;  %v394_v10 = vadd.f32 %v976_v6, %v358_v61  ;;  %v359_v11 = vmul.f32 %v963_v0, %v756_v62  ;;  %v495_v12 = vmul.f32 %v968_v1, %v820_v63  ;;  %v879_v63 = vld [vmem:[%s958_s30 + $0x58] sm:$0xff]  }
  0x2b   : > { %623 = vst [vmem:[%s1011_s18 + $0x50] sm:$0xff] %v591_v3  ;;  %v561_v13 = vadd.f32 %v993_v26, %v525_v4  ;;  %v360_v14 = vmul.f32 %v963_v0, %v757_v7  ;;  %v821_v15 = vunpack.c.h.bf16 %v875_v51  ;;  %v760_v16 = vunpack.c.l.bf16 %v861_v2 }
  0x2c   : > { %624 = vst [vmem:[%s1011_s18 + $0x58] sm:$0xff] %v592_v9  ;;  %v526_v17 = vadd.f32 %v494_v5, %v394_v10  ;;  %v395_v18 = vadd.f32 %v976_v6, %v359_v11  ;;  %v824_v19 = vunpack.c.l.bf16 %v876_v8  ;;  %v761_v20 = vunpack.c.h.bf16 %v861_v2 }
  0x2d   : > { %v593_v22 = vmax.f32 %v561_v13, 0.0  ;;  %v396_v23 = vadd.f32 %v976_v6, %v360_v14  ;;  %v496_v24 = vmul.f32 %v968_v1, %v821_v15  ;;  %v361_v25 = vmul.f32 %v963_v0, %v760_v16  ;;  %v865_v15 = vld [vmem:[%s953_s27 + $0x60] sm:$0xff]  }
  0x2e   : > { %v562_v28 = vadd.f32 %v993_v26, %v526_v17  ;;  %v527_v29 = vadd.f32 %v495_v12, %v395_v18  ;;  %v497_v30 = vmul.f32 %v968_v1, %v824_v19  ;;  %v362_v31 = vmul.f32 %v963_v0, %v761_v20  ;;  %v880_v20 = vld [vmem:[%s958_s30 + $0x60] sm:$0xff]  }
  0x2f   : > { %625 = vst [vmem:[%s1011_s18 + $0x60] sm:$0xff] %v593_v22  ;;  %v528_v32 = vadd.f32 %v496_v24, %v396_v23  ;;  %v397_v33 = vadd.f32 %v976_v6, %v361_v25  ;;  %v825_v34 = vunpack.c.h.bf16 %v876_v8  ;;  %v764_v35 = vunpack.c.l.bf16 %v862_v21 }
  0x30   : > { %v594_v36 = vmax.f32 %v562_v28, 0.0  ;;  %v563_v37 = vadd.f32 %v993_v26, %v527_v29  ;;  %v398_v38 = vadd.f32 %v976_v6, %v362_v31  ;;  %v828_v39 = vunpack.c.l.bf16 %v877_v27 }
  0x31   : > { %v564_v40 = vadd.f32 %v993_v26, %v528_v32  ;;  %v529_v41 = vadd.f32 %v497_v30, %v397_v33  ;;  %v498_v42 = vmul.f32 %v968_v1, %v825_v34  ;;  %v363_v43 = vmul.f32 %v963_v0, %v764_v35 }
  0x32   : > { %626 = vst [vmem:[%s1011_s18 + $0x68] sm:$0xff] %v594_v36  ;;  %v595_v46 = vmax.f32 %v563_v37, 0.0  ;;  %v499_v47 = vmul.f32 %v968_v1, %v828_v39  ;;  %v765_v48 = vunpack.c.h.bf16 %v862_v21  ;;  %v829_v49 = vunpack.c.h.bf16 %v877_v27  ;;  %v881_v39 = vld [vmem:[%s958_s30 + $0x68] sm:$0xff]  }
  0x33   : > { %v596_v50 = vmax.f32 %v564_v40, 0.0  ;;  %v565_v51 = vadd.f32 %v993_v26, %v529_v41  ;;  %v530_v52 = vadd.f32 %v498_v42, %v398_v38  ;;  %v399_v53 = vadd.f32 %v976_v6, %v363_v43  ;;  %v866_v38 = vld [vmem:[%s953_s27 + $0x68] sm:$0xff]  }
  0x34   : > { %627 = vst [vmem:[%s1011_s18 + $0x70] sm:$0xff] %v595_v46  ;;  %v364_v54 = vmul.f32 %v963_v0, %v765_v48  ;;  %v500_v55 = vmul.f32 %v968_v1, %v829_v49  ;;  %v768_v56 = vunpack.c.l.bf16 %v863_v44  ;;  %v832_v57 = vunpack.c.l.bf16 %v878_v45 }
  0x35   : > { %628 = vst [vmem:[%s1011_s18 + $0x78] sm:$0xff] %v596_v50  ;;  %v597_v59 = vmax.f32 %v565_v51, 0.0  ;;  %v566_v60 = vadd.f32 %v993_v26, %v530_v52  ;;  %v531_v61 = vadd.f32 %v499_v47, %v399_v53  ;;  %v769_v62 = vunpack.c.h.bf16 %v863_v44  ;;  %v867_v52 = vld [vmem:[%s953_s27 + $0x70] sm:$0xff]  }
  0x36   : > { %v400_v2 = vadd.f32 %v976_v6, %v364_v54  ;;  %v365_v3 = vmul.f32 %v963_v0, %v768_v56  ;;  %v501_v4 = vmul.f32 %v968_v1, %v832_v57  ;;  %v833_v5 = vunpack.c.h.bf16 %v878_v45  ;;  %v882_v57 = vld [vmem:[%s958_s30 + $0x70] sm:$0xff]  }
  0x37   : > { %629 = vst [vmem:[%s1011_s18 + $0x80] sm:$0xff] %v597_v59  ;;  %v598_v7 = vmax.f32 %v566_v60, 0.0  ;;  %v567_v8 = vadd.f32 %v993_v26, %v531_v61  ;;  %v366_v9 = vmul.f32 %v963_v0, %v769_v62  ;;  %v772_v10 = vunpack.c.l.bf16 %v864_v58 }
  0x38   : > { %v532_v11 = vadd.f32 %v500_v55, %v400_v2  ;;  %v401_v12 = vadd.f32 %v976_v6, %v365_v3  ;;  %v502_v13 = vmul.f32 %v968_v1, %v833_v5  ;;  %v836_v14 = vunpack.c.l.bf16 %v879_v63 }
  0x39   : > { %630 = vst [vmem:[%s1011_s18 + $0x88] sm:$0xff] %v598_v7  ;;  %v599_v16 = vmax.f32 %v567_v8, 0.0  ;;  %v402_v17 = vadd.f32 %v976_v6, %v366_v9  ;;  %v367_v18 = vmul.f32 %v963_v0, %v772_v10  ;;  %v773_v19 = vunpack.c.h.bf16 %v864_v58  ;;  %v868_v9 = vld [vmem:[%s953_s27 + $0x78] sm:$0xff]  }
  0x3a   : > { %v568_v21 = vadd.f32 %v993_v26, %v532_v11  ;;  %v533_v22 = vadd.f32 %v501_v4, %v401_v12  ;;  %v503_v23 = vmul.f32 %v968_v1, %v836_v14  ;;  %v837_v24 = vunpack.c.h.bf16 %v879_v63  ;;  %v883_v14 = vld [vmem:[%s958_s30 + $0x78] sm:$0xff]  }
  0x3b   : > { %631 = vst [vmem:[%s1011_s18 + $0x90] sm:$0xff] %v599_v16  ;;  %v534_v25 = vadd.f32 %v502_v13, %v402_v17  ;;  %v403_v27 = vadd.f32 %v976_v6, %v367_v18  ;;  %v368_v28 = vmul.f32 %v963_v0, %v773_v19  ;;  %v776_v29 = vunpack.c.l.bf16 %v865_v15 }
  0x3c   : > { %v600_v30 = vmax.f32 %v568_v21, 0.0  ;;  %v569_v31 = vadd.f32 %v993_v26, %v533_v22  ;;  %v504_v32 = vmul.f32 %v968_v1, %v837_v24  ;;  %v840_v33 = vunpack.c.l.bf16 %v880_v20 }
  0x3d   : > { %v570_v34 = vadd.f32 %v993_v26, %v534_v25  ;;  %v535_v35 = vadd.f32 %v503_v23, %v403_v27  ;;  %v404_v36 = vadd.f32 %v976_v6, %v368_v28  ;;  %v369_v37 = vmul.f32 %v963_v0, %v776_v29 }
  0x3e   : > { %632 = vst [vmem:[%s1011_s18 + $0x98] sm:$0xff] %v600_v30  ;;  %v601_v40 = vmax.f32 %v569_v31, 0.0  ;;  %v505_v41 = vmul.f32 %v968_v1, %v840_v33  ;;  %v777_v42 = vunpack.c.h.bf16 %v865_v15  ;;  %v841_v43 = vunpack.c.h.bf16 %v880_v20 }
  0x3f   : > { %v602_v44 = vmax.f32 %v570_v34, 0.0  ;;  %v571_v45 = vadd.f32 %v993_v26, %v535_v35  ;;  %v536_v46 = vadd.f32 %v504_v32, %v404_v36  ;;  %v405_v47 = vadd.f32 %v976_v6, %v369_v37 }
  0x40   : > { %633 = vst [vmem:[%s1011_s18 + $0xa0] sm:$0xff] %v601_v40  ;;  %v370_v48 = vmul.f32 %v963_v0, %v777_v42  ;;  %v506_v49 = vmul.f32 %v968_v1, %v841_v43  ;;  %v780_v50 = vunpack.c.l.bf16 %v866_v38  ;;  %v844_v51 = vunpack.c.l.bf16 %v881_v39 }
  0x41   : > { %634 = vst [vmem:[%s1011_s18 + $0xa8] sm:$0xff] %v602_v44  ;;  %v603_v53 = vmax.f32 %v571_v45, 0.0  ;;  %v572_v54 = vadd.f32 %v993_v26, %v536_v46  ;;  %v537_v55 = vadd.f32 %v505_v41, %v405_v47  ;;  %v781_v56 = vunpack.c.h.bf16 %v866_v38 }
  0x42   : > { %v406_v58 = vadd.f32 %v976_v6, %v370_v48  ;;  %v371_v59 = vmul.f32 %v963_v0, %v780_v50  ;;  %v507_v60 = vmul.f32 %v968_v1, %v844_v51  ;;  %v845_v61 = vunpack.c.h.bf16 %v881_v39 }
  0x43   : > { %635 = vst [vmem:[%s1011_s18 + $0xb0] sm:$0xff] %v603_v53  ;;  %v604_v62 = vmax.f32 %v572_v54, 0.0  ;;  %v573_v63 = vadd.f32 %v993_v26, %v537_v55  ;;  %v372_v2 = vmul.f32 %v963_v0, %v781_v56  ;;  %v784_v3 = vunpack.c.l.bf16 %v867_v52 }
  0x44   : > { %v538_v4 = vadd.f32 %v506_v49, %v406_v58  ;;  %v407_v5 = vadd.f32 %v976_v6, %v371_v59  ;;  %v508_v7 = vmul.f32 %v968_v1, %v845_v61  ;;  %v848_v8 = vunpack.c.l.bf16 %v882_v57 }
  0x45   : > { %636 = vst [vmem:[%s1011_s18 + $0xb8] sm:$0xff] %v604_v62  ;;  %v605_v10 = vmax.f32 %v573_v63, 0.0  ;;  %v408_v11 = vadd.f32 %v976_v6, %v372_v2  ;;  %v373_v12 = vmul.f32 %v963_v0, %v784_v3  ;;  %v785_v13 = vunpack.c.h.bf16 %v867_v52 }
  0x46   : > { %v574_v15 = vadd.f32 %v993_v26, %v538_v4  ;;  %v539_v16 = vadd.f32 %v507_v60, %v407_v5  ;;  %v509_v17 = vmul.f32 %v968_v1, %v848_v8  ;;  %v849_v18 = vunpack.c.h.bf16 %v882_v57 }
  0x47   : > { %637 = vst [vmem:[%s1011_s18 + $0xc0] sm:$0xff] %v605_v10  ;;  %v540_v19 = vadd.f32 %v508_v7, %v408_v11  ;;  %v409_v20 = vadd.f32 %v976_v6, %v373_v12  ;;  %v374_v21 = vmul.f32 %v963_v0, %v785_v13  ;;  %v788_v22 = vunpack.c.l.bf16 %v868_v9 }
  0x48   : > { %v606_v23 = vmax.f32 %v574_v15, 0.0  ;;  %v575_v24 = vadd.f32 %v993_v26, %v539_v16  ;;  %v510_v25 = vmul.f32 %v968_v1, %v849_v18  ;;  %v852_v27 = vunpack.c.l.bf16 %v883_v14 }
  0x49   : > { %v576_v28 = vadd.f32 %v993_v26, %v540_v19  ;;  %v541_v29 = vadd.f32 %v509_v17, %v409_v20  ;;  %v410_v30 = vadd.f32 %v976_v6, %v374_v21  ;;  %v375_v31 = vmul.f32 %v963_v0, %v788_v22 }
  0x4a   : > { %638 = vst [vmem:[%s1011_s18 + $0xc8] sm:$0xff] %v606_v23  ;;  %v607_v32 = vmax.f32 %v575_v24, 0.0  ;;  %v511_v33 = vmul.f32 %v968_v1, %v852_v27  ;;  %v789_v34 = vunpack.c.h.bf16 %v868_v9  ;;  %v853_v35 = vunpack.c.h.bf16 %v883_v14 }
  0x4b   : > { %v608_v36 = vmax.f32 %v576_v28, 0.0  ;;  %v577_v37 = vadd.f32 %v993_v26, %v541_v29  ;;  %v542_v38 = vadd.f32 %v510_v25, %v410_v30  ;;  %v411_v39 = vadd.f32 %v976_v6, %v375_v31 }
  0x4c   : > { %639 = vst [vmem:[%s1011_s18 + $0xd0] sm:$0xff] %v607_v32  ;;  %v376_v40 = vmul.f32 %v963_v0, %v789_v34  ;;  %v512_v41 = vmul.f32 %v968_v1, %v853_v35 }
  0x4d   : > { %640 = vst [vmem:[%s1011_s18 + $0xd8] sm:$0xff] %v608_v36  ;;  %v609_v42 = vmax.f32 %v577_v37, 0.0  ;;  %v578_v43 = vadd.f32 %v993_v26, %v542_v38  ;;  %v543_v44 = vadd.f32 %v511_v33, %v411_v39 }
  0x4e   : > { %v412_v45 = vadd.f32 %v976_v6, %v376_v40 }
  0x4f   : > { %641 = vst [vmem:[%s1011_s18 + $0xe0] sm:$0xff] %v609_v42  ;;  %v610_v46 = vmax.f32 %v578_v43, 0.0  ;;  %v579_v47 = vadd.f32 %v993_v26, %v543_v44 }
  0x50   : > { %v544_v48 = vadd.f32 %v512_v41, %v412_v45 }
  0x51   : > { %642 = vst [vmem:[%s1011_s18 + $0xe8] sm:$0xff] %v610_v46  ;;  %v611_v49 = vmax.f32 %v579_v47, 0.0 }
  0x52   : > { %v580_v50 = vadd.f32 %v993_v26, %v544_v48 }
  0x53   : > { %643 = vst [vmem:[%s1011_s18 + $0xf0] sm:$0xff] %v611_v49 }
  0x54   : > { %v612_v0 = vmax.f32 %v580_v50, 0.0 }
  0x56   : > { %644 = vst [vmem:[%s1011_s18 + $0xf8] sm:$0xff] %v612_v0 }
  0x57 PF: > { %s16_s21 = sadd.s32 1, %s902_s21  }
  0x58   : > { %p13_p4 = scmp.ge.s32.totalorder %s16_s21, 4  }
  0x5a   :  { %15 = sbr.rel (!%p13_p4) target bundleno = 1 (0x1), region = 77 }

// kernel: basic_block_forward.6
= control target key start
LH: loop header
LB: loop body
LE: loop exit
PB: predicated region body
PF: predicated region fallthrough
CT: control target
= control target key end

     0   :  { %s1683_s12 = smov 0   ;;  %s2098_s0 = inlined_call_operand.vmem [shape: bf16[576,128], index: 0, kind: input, shape index: {}]   ;;  %s2099_s1 = inlined_call_operand.vmem [shape: bf16[384,128], index: 1, kind: input, shape index: {}]   ;;  %s2100_s2 = inlined_call_operand.vmem [shape: bf16[512,128], index: 2, kind: output, shape index: {0}]   ;;  %s2101_s3 = inlined_call_operand.vmem [shape: f32[16,128], index: 3, kind: output, shape index: {1}]  }
   0x1 LB: > { %s1689_s13 = sadd.s32 4294967295, %s1661_s12   ;;  %p1236_p0 = scmp.ge.s32.totalorder %s1661_s12, 1  ;;  %s1661_s12 = sphi %s1683_s12, %s14_s12  }
   0x2   : > { %p141_p1 = scmp.lt.s32.totalorder %s1661_s12, 3 }
   0x4   : > { %p142_p2 = pnand %p1236_p0, %p141_p1 }
   0x5   : > { %s169_s11 = smul.u32 (!%p142_p2), 36, %s1689_s13  ;;  %s1238_s17 = sshll.u32 (!%p142_p2), %s1689_s13, 5 }
   0x6   : > { %145 = sbr.rel (%p142_p2) target bundleno = 476 (0x1dc), region = 28  ;;  %p176_p4 = scmp.lt.s32.totalorder (!%p142_p2), %s1238_s17, 63 }
   0x7   : > { %p170_p3 = scmp.lt.s32.totalorder (!%p142_p2), %s169_s11, 71  ;;  %p181_p5 = scmp.lt.s32.totalorder (!%p142_p2), %s1689_s13, 1 }
   0xb   : > { %v1503_v0 = vld [vmem:[%s2099_s1 + $0x78] sm:$0xff]  ;;  %v1502_v3 = vld [vmem:[%s2099_s1 + $0x70] sm:$0xff]  ;;  %v1501_v6 = vld [vmem:[%s2099_s1 + $0x68] sm:$0xff]  ;;  %s2103_s11 = smov (!%p170_p3, %s169_s11), 71  ;;  %s2105_s17 = smov (!%p176_p4, %s1238_s17), 63 }
   0xc   : > { %v1699_v1 = vld [vmem:[%s2099_s1 + $0x38] sm:$0xff]  ;;  %395 = vmatpush.bf16.msra.mxu0 %v1503_v0  ;;  %1623 = vmatpush.bf16.msra.mxu3 %v1503_v0  ;;  %v1494_v4 = vld [vmem:[%s2099_s1 + $0x30] sm:$0xff]  ;;  %v1493_v7 = vld [vmem:[%s2099_s1 + $0x28] sm:$0xff]  ;;  %s1237_s5 = sshll.u32 %s2103_s11, 2  ;;  %s1239_s18 = sshll.u32 %s2105_s17, 2 }
   0xd   : > { %v1704_v2 = vld [vmem:[%s2099_s1 + $0xb8] sm:$0xff]  ;;  %538 = vmatpush.bf16.msra.mxu1 %v1699_v1  ;;  %v1717_v5 = vld [vmem:[%s2099_s1 + $0xb0] sm:$0xff]  ;;  %v1729_v8 = vld [vmem:[%s2099_s1 + $0xa8] sm:$0xff]  ;;  %s1784_s10 = scalar_lea.vmem %s2098_s0, %s1237_s5  ;;  %s1842_s21 = scalar_lea.vmem %s2100_s2, %s1239_s18 }
   0xe   : > { %819 = vmatpush.bf16.msra.mxu2 %v1704_v2  ;;  %v1500_v9 = vld [vmem:[%s2099_s1 + $0x60] sm:$0xff]  ;;  %v1499_v12 = vld [vmem:[%s2099_s1 + $0x58] sm:$0xff]  ;;  %v1498_v15 = vld [vmem:[%s2099_s1 + $0x50] sm:$0xff]  ;;  %s2107_s13 = smov (!%p181_p5, %s1689_s13), 1 }
   0xf   : > { %v1492_v10 = vld [vmem:[%s2099_s1 + $0x20] sm:$0xff]  ;;  %v1491_v13 = vld [vmem:[%s2099_s1 + $0x18] sm:$0xff]  ;;  %v1490_v16 = vld [vmem:[%s2099_s1 + $0x10] sm:$0xff]  ;;  %s1240_s22 = sshll.u32 %s2107_s13, 3 }
  0x10   : > { %396 = vmatpush.bf16.msra.mxu0 %v1502_v3  ;;  %1624 = vmatpush.bf16.msra.mxu3 %v1502_v3  ;;  %v1741_v11 = vld [vmem:[%s2099_s1 + $0xa0] sm:$0xff]  ;;  %v1754_v14 = vld [vmem:[%s2099_s1 + $0x98] sm:$0xff]  ;;  %v1766_v17 = vld [vmem:[%s2099_s1 + $0x90] sm:$0xff]  ;;  %s2001_s25 = scalar_lea.vmem %s2101_s3, %s1240_s22 }
  0x11   : > { %539 = vmatpush.bf16.msra.mxu1 %v1494_v4  ;;  %v1497_v18 = vld [vmem:[%s2099_s1 + $0x48] sm:$0xff]  ;;  %v1496_v21 = vld [vmem:[%s2099_s1 + $0x40] sm:$0xff]  ;;  %v1504_v27 = vld [vmem:[%s1784_s10 + $0x10] sm:$0xff] }
  0x12   : > { %820 = vmatpush.bf16.msra.mxu2 %v1717_v5  ;;  %v1489_v19 = vld [vmem:[%s2099_s1 + $0x8] sm:$0xff]  ;;  %v1488_v22 = vld [vmem:[%s2099_s1] sm:$0xff]  ;;  %v1472_v28 = vld [vmem:[%s1784_s10 + $0x10] sm:$0xff] }
  0x13   : > { %v1521_v20 = vld [vmem:[%s2099_s1 + $0x88] sm:$0xff]  ;;  %v1520_v23 = vld [vmem:[%s2099_s1 + $0x80] sm:$0xff]  ;;  %v1484_v29 = vld [vmem:[%s1784_s10 + $0x70] sm:$0xff] }
  0x14   : > { %397 = vmatpush.bf16.msra.mxu0 %v1501_v6  ;;  %1625 = vmatpush.bf16.msra.mxu3 %v1501_v6  ;;  %v1471_v24 = vld [vmem:[%s1784_s10 + $0x8] sm:$0xff]  ;;  %v1487_v26 = vld [vmem:[%s1784_s10] sm:$0xff]  ;;  %v1505_v30 = vld [vmem:[%s1784_s10 + $0x18] sm:$0xff] }
  0x15   : > { %540 = vmatpush.bf16.msra.mxu1 %v1493_v7  ;;  %v1483_v25 = vld [vmem:[%s1784_s10 + $0x68] sm:$0xff]  ;;  %v1473_v31 = vld [vmem:[%s1784_s10 + $0x18] sm:$0xff]  ;;  %v1506_v33 = vld [vmem:[%s1784_s10 + $0x20] sm:$0xff] }
  0x16   : > { %821 = vmatpush.bf16.msra.mxu2 %v1729_v8  ;;  %v1485_v32 = vld [vmem:[%s1784_s10 + $0x78] sm:$0xff]  ;;  %v1474_v34 = vld [vmem:[%s1784_s10 + $0x20] sm:$0xff]  ;;  %v1507_v36 = vld [vmem:[%s1784_s10 + $0x28] sm:$0xff] }
  0x17   : > { %v1486_v35 = vld [vmem:[%s1784_s10 + $0x80] sm:$0xff]  ;;  %v1475_v37 = vld [vmem:[%s1784_s10 + $0x28] sm:$0xff]  ;;  %v1508_v39 = vld [vmem:[%s1784_s10 + $0x30] sm:$0xff] }
  0x18   : > { %398 = vmatpush.bf16.msra.mxu0 %v1500_v9  ;;  %1626 = vmatpush.bf16.msra.mxu3 %v1500_v9  ;;  %v1814_v38 = vld [vmem:[%s1784_s10 + $0x60] sm:$0xff]  ;;  %v1476_v40 = vld [vmem:[%s1784_s10 + $0x30] sm:$0xff]  ;;  %v1509_v41 = vld [vmem:[%s1784_s10 + $0x38] sm:$0xff] }
  0x19   : > { %541 = vmatpush.bf16.msra.mxu1 %v1492_v10  ;;  %v1477_v42 = vld [vmem:[%s1784_s10 + $0x38] sm:$0xff]  ;;  %v1510_v43 = vld [vmem:[%s1784_s10 + $0x40] sm:$0xff]  ;;  %v1511_v45 = vld [vmem:[%s1784_s10 + $0x48] sm:$0xff] }
  0x1a   : > { %822 = vmatpush.bf16.msra.mxu2 %v1741_v11  ;;  %v1478_v44 = vld [vmem:[%s1784_s10 + $0x40] sm:$0xff]  ;;  %v1479_v46 = vld [vmem:[%s1784_s10 + $0x48] sm:$0xff]  ;;  %v1516_v47 = vld [vmem:[%s1784_s10 + $0x70] sm:$0xff] }
  0x1b   : > { %v1512_v49 = vld [vmem:[%s1784_s10 + $0x50] sm:$0xff]  ;;  %v1517_v60 = vld [vmem:[%s1784_s10 + $0x78] sm:$0xff] }
  0x1c   : > { %399 = vmatpush.bf16.msra.mxu0 %v1499_v12  ;;  %1627 = vmatpush.bf16.msra.mxu3 %v1499_v12  ;;  %v1480_v59 = vld [vmem:[%s1784_s10 + $0x50] sm:$0xff]  ;;  %v1513_v0 = vld [vmem:[%s1784_s10 + $0x58] sm:$0xff]  ;;  %v1518_v12 = vld [vmem:[%s1784_s10 + $0x80] sm:$0xff] }
  0x1d   : > { %542 = vmatpush.bf16.msra.mxu1 %v1491_v13 }
  0x1e   : > { %823 = vmatpush.bf16.msra.mxu2 %v1754_v14 }
  0x20   : > { %400 = vmatpush.bf16.msra.mxu0 %v1498_v15  ;;  %1628 = vmatpush.bf16.msra.mxu3 %v1498_v15 }
  0x21   : > { %543 = vmatpush.bf16.msra.mxu1 %v1490_v16 }
  0x22   : > { %824 = vmatpush.bf16.msra.mxu2 %v1766_v17 }
  0x24   : > { %401 = vmatpush.bf16.msra.mxu0 %v1497_v18  ;;  %1629 = vmatpush.bf16.msra.mxu3 %v1497_v18 }
  0x25   : > { %544 = vmatpush.bf16.msra.mxu1 %v1489_v19 }
  0x26   : > { %825 = vmatpush.bf16.msra.mxu2 %v1521_v20 }
  0x28   : > { %402 = vmatpush.bf16.msra.mxu0 %v1496_v21  ;;  %1630 = vmatpush.bf16.msra.mxu3 %v1496_v21 }
  0x29   : > { %545 = vmatpush.bf16.msra.mxu1 %v1488_v22 }
  0x2a   : > { %826 = vmatpush.bf16.msra.mxu2 %v1520_v23 }
  0x2b   : > { %403 = vmatmul.bf16.vlgmr.msra.gmra.mxu0 %v1471_v24  ;;  %463 = vmatmul.bf16.vlgmr.msra.gmra.mxu3 %v1483_v25 }
  0x2c   : > { %1631 = vmatpush.bf16.msrb.mxu3 %v1699_v1  ;;  %546 = vmatmul.bf16.vlgmr.msra.gmra.mxu1 %v1487_v26 }
  0x2d   : > { %827 = vmatmul.bf16.vlgmr.msra.gmra.mxu2 %v1504_v27  ;;  %v1519_v27 = vld [vmem:[%s1784_s10 + $0x88] sm:$0xff] }
  0x30   : > { %1632 = vmatpush.bf16.msrb.mxu3 %v1494_v4 }
  0x34   : > { %1633 = vmatpush.bf16.msrb.mxu3 %v1493_v7 }
  0x38   : > { %1634 = vmatpush.bf16.msrb.mxu3 %v1492_v10 }
  0x3b   : > { %408 = vmatmul.bf16.gmra.mxu0 %v1472_v28  ;;  %468 = vmatmul.bf16.gmra.mxu3 %v1484_v29 }
  0x3c   : > { %1635 = vmatpush.bf16.msrb.mxu3 %v1491_v13  ;;  %551 = vmatmul.bf16.gmra.mxu1 %v1471_v24 }
  0x3d   : > { %832 = vmatmul.bf16.gmra.mxu2 %v1505_v30 }
  0x40   : > { %1636 = vmatpush.bf16.msrb.mxu3 %v1490_v16  ;;  %v1514_v16 = vld [vmem:[%s1784_s10 + $0x60] sm:$0xff] }
  0x44   : > { %1637 = vmatpush.bf16.msrb.mxu3 %v1489_v19 }
  0x48   : > { %1638 = vmatpush.bf16.msrb.mxu3 %v1488_v22 }
  0x4b   : > { %413 = vmatmul.bf16.gmra.mxu0 %v1473_v31  ;;  %473 = vmatmul.bf16.gmra.mxu3 %v1485_v32 }
  0x4c   : > { %1639 = vmatpush.bf16.msra.mxu3 %v1704_v2  ;;  %556 = vmatmul.bf16.gmra.mxu1 %v1472_v28 }
  0x4d   : > { %837 = vmatmul.bf16.gmra.mxu2 %v1506_v33 }
  0x50   : > { %1640 = vmatpush.bf16.msra.mxu3 %v1717_v5 }
  0x54   : > { %1641 = vmatpush.bf16.msra.mxu3 %v1729_v8 }
  0x58   : > { %1642 = vmatpush.bf16.msra.mxu3 %v1741_v11  ;;  %v1481_v11 = vld [vmem:[%s1784_s10 + $0x58] sm:$0xff] }
  0x5b   : > { %418 = vmatmul.bf16.gmra.mxu0 %v1474_v34  ;;  %478 = vmatmul.bf16.gmra.mxu3 %v1486_v35 }
  0x5c   : > { %1643 = vmatpush.bf16.msra.mxu3 %v1754_v14  ;;  %561 = vmatmul.bf16.gmra.mxu1 %v1473_v31  ;;  %v1515_v31 = vld [vmem:[%s1784_s10 + $0x68] sm:$0xff] }
  0x5d   : > { %842 = vmatmul.bf16.gmra.mxu2 %v1507_v36 }
  0x60   : > { %1644 = vmatpush.bf16.msra.mxu3 %v1766_v17 }
  0x64   : > { %1645 = vmatpush.bf16.msra.mxu3 %v1521_v20 }
  0x68   : > { %1646 = vmatpush.bf16.msra.mxu3 %v1520_v23 }
  0x6b   : > { %423 = vmatmul.bf16.gmra.mxu0 %v1475_v37  ;;  %606 = vmatmul.bf16.vlgmr.msrb.gmra.mxu3 %v1814_v38 }
  0x6c   : > { %566 = vmatmul.bf16.gmra.mxu1 %v1474_v34 }
  0x6d   : > { %847 = vmatmul.bf16.gmra.mxu2 %v1508_v39 }
  0x7b   : > { %428 = vmatmul.bf16.gmra.mxu0 %v1476_v40  ;;  %611 = vmatmul.bf16.gmra.mxu3 %v1483_v25 }
  0x7c   : > { %571 = vmatmul.bf16.gmra.mxu1 %v1475_v37 }
  0x7d   : > { %852 = vmatmul.bf16.gmra.mxu2 %v1509_v41 }
  0x8b   : > { %433 = vmatmul.bf16.gmra.mxu0 %v1477_v42  ;;  %616 = vmatmul.bf16.gmra.mxu3 %v1484_v29 }
  0x8c   : > { %576 = vmatmul.bf16.gmra.mxu1 %v1476_v40 }
  0x8d   : > { %857 = vmatmul.bf16.gmra.mxu2 %v1510_v43 }
  0x9b   : > { %438 = vmatmul.bf16.gmra.mxu0 %v1478_v44  ;;  %621 = vmatmul.bf16.gmra.mxu3 %v1485_v32 }
  0x9c   : > { %581 = vmatmul.bf16.gmra.mxu1 %v1477_v42 }
  0x9d   : > { %862 = vmatmul.bf16.gmra.mxu2 %v1511_v45 }
  0xa8   : > { %v404_v48 = vpop.f32.mrf.mxu0 }
  0xa9   : > { %v547_v50 = vpop.f32.mrf.mxu1 }
  0xaa   : > { %v548_v55 = vadd.f32 %v547_v50, %v404_v48 }
  0xab   : > { %443 = vmatmul.bf16.gmra.mxu0 %v1479_v46  ;;  %887 = vmatmul.bf16.vlgmr.msra.gmra.mxu3 %v1516_v47 }
  0xac   : > { %586 = vmatmul.bf16.gmra.mxu1 %v1478_v44 }
  0xad   : > { %867 = vmatmul.bf16.gmra.mxu2 %v1512_v49 }
  0xae   : > { %v1828_v51 = vpop.f32.mrf.mxu3 }
  0xb0   : > { %v828_v52 = vpop.f32.mrf.mxu2  ;;  %v406_v53 = vpop.f32.mrf.mxu0 }
  0xb1   : > { %v549_v54 = vpop.f32.mrf.mxu1  ;;  %v1834_v61 = vadd.f32 %v828_v52, %v548_v55 }
  0xb2   : > { %v550_v56 = vadd.f32 %v549_v54, %v406_v53 }
  0xb6   : > { %v1830_v57 = vpop.f32.mrf.mxu3 }
  0xb8   : > { %v830_v58 = vpop.f32.mrf.mxu2  ;;  %v409_v63 = vpop.f32.mrf.mxu0 }
  0xb9   : > { %v1836_v62 = vadd.f32 %v830_v58, %v550_v56  ;;  %v552_v1 = vpop.f32.mrf.mxu1 }
  0xba   : > { %v553_v7 = vadd.f32 %v552_v1, %v409_v63 }
  0xbb   : > { %v1531_v2 = vpack.c.bf16 %v1836_v62, %v1834_v61  ;;  %448 = vmatmul.bf16.gmra.mxu0 %v1480_v59  ;;  %892 = vmatmul.bf16.gmra.mxu3 %v1517_v60 }
  0xbc   : > { %591 = vmatmul.bf16.gmra.mxu1 %v1479_v46 }
  0xbd   : > { %1532 = vst [vmem:[%s1842_s21] sm:$0xff] %v1531_v2   ;;  %872 = vmatmul.bf16.gmra.mxu2 %v1513_v0 }
  0xbe   : > { %v1847_v3 = vpop.f32.mrf.mxu3 }
  0xc0   : > { %v833_v4 = vpop.f32.mrf.mxu2  ;;  %v411_v5 = vpop.f32.mrf.mxu0 }
  0xc1   : > { %v554_v6 = vpop.f32.mrf.mxu1  ;;  %v1853_v13 = vadd.f32 %v833_v4, %v553_v7 }
  0xc2   : > { %v555_v8 = vadd.f32 %v554_v6, %v411_v5 }
  0xc6   : > { %v1849_v9 = vpop.f32.mrf.mxu3 }
  0xc8   : > { %v835_v10 = vpop.f32.mrf.mxu2  ;;  %v414_v15 = vpop.f32.mrf.mxu0 }
  0xc9   : > { %v1855_v14 = vadd.f32 %v835_v10, %v555_v8  ;;  %v557_v17 = vpop.f32.mrf.mxu1 }
  0xca   : > { %v558_v23 = vadd.f32 %v557_v17, %v414_v15 }
  0xcb   : > { %v1536_v18 = vpack.c.bf16 %v1855_v14, %v1853_v13  ;;  %453 = vmatmul.bf16.gmra.mxu0 %v1481_v11  ;;  %897 = vmatmul.bf16.gmra.mxu3 %v1518_v12 }
  0xcc   : > { %596 = vmatmul.bf16.gmra.mxu1 %v1480_v59 }
  0xcd   : > { %1608 = vst [vmem:[%s1842_s21 + $0x8] sm:$0xff] %v1536_v18   ;;  %877 = vmatmul.bf16.gmra.mxu2 %v1514_v16 }
  0xce   : > { %v1861_v19 = vpop.f32.mrf.mxu3 }
  0xd0   : > { %v838_v20 = vpop.f32.mrf.mxu2  ;;  %v416_v21 = vpop.f32.mrf.mxu0 }
  0xd1   : > { %v559_v22 = vpop.f32.mrf.mxu1  ;;  %v1866_v28 = vadd.f32 %v838_v20, %v558_v23 }
  0xd2   : > { %v560_v24 = vadd.f32 %v559_v22, %v416_v21 }
  0xd6   : > { %v1863_v25 = vpop.f32.mrf.mxu3 }
  0xd8   : > { %v840_v26 = vpop.f32.mrf.mxu2  ;;  %v419_v30 = vpop.f32.mrf.mxu0 }
  0xd9   : > { %v1868_v29 = vadd.f32 %v840_v26, %v560_v24  ;;  %v562_v32 = vpop.f32.mrf.mxu1 }
  0xda   : > { %v563_v39 = vadd.f32 %v562_v32, %v419_v30 }
  0xdb   : > { %v1541_v33 = vpack.c.bf16 %v1868_v29, %v1866_v28  ;;  %458 = vmatmul.bf16.gmra.mxu0 %v1814_v38  ;;  %902 = vmatmul.bf16.gmra.mxu3 %v1519_v27 }
  0xdc   : > { %601 = vmatmul.bf16.gmra.mxu1 %v1481_v11 }
  0xdd   : > { %1609 = vst [vmem:[%s1842_s21 + $0x10] sm:$0xff] %v1541_v33   ;;  %882 = vmatmul.bf16.gmra.mxu2 %v1515_v31 }
  0xde   : > { %v479_v34 = vpop.f32.mrf.mxu3 }
  0xe0   : > { %v843_v35 = vpop.f32.mrf.mxu2  ;;  %v421_v36 = vpop.f32.mrf.mxu0 }
  0xe1   : > { %v564_v37 = vpop.f32.mrf.mxu1  ;;  %v1877_v43 = vadd.f32 %v843_v35, %v563_v39 }
  0xe2   : > { %v565_v40 = vadd.f32 %v564_v37, %v421_v36 }
  0xe6   : > { %v1875_v41 = vpop.f32.mrf.mxu3 }
  0xe8   : > { %v845_v42 = vpop.f32.mrf.mxu2  ;;  %v424_v45 = vpop.f32.mrf.mxu0 }
  0xe9   : > { %v1879_v44 = vadd.f32 %v845_v42, %v565_v40  ;;  %v567_v38 = vpop.f32.mrf.mxu1 }
  0xea   : > { %v568_v53 = vadd.f32 %v567_v38, %v424_v45 }
  0xeb   : > { %v1546_v46 = vpack.c.bf16 %v1879_v44, %v1877_v43 }
  0xed   : > { %1610 = vst [vmem:[%s1842_s21 + $0x18] sm:$0xff] %v1546_v46  }
  0xee   : > { %v607_v47 = vpop.f32.mrf.mxu3 }
  0xef   : > { %v1885_v48 = vadd.f32 %v607_v47, %v1828_v51 }
  0xf0   : > { %v848_v49 = vpop.f32.mrf.mxu2  ;;  %v426_v50 = vpop.f32.mrf.mxu0 }
  0xf1   : > { %v569_v52 = vpop.f32.mrf.mxu1  ;;  %v1887_v58 = vadd.f32 %v848_v49, %v568_v53 }
  0xf2   : > { %v570_v54 = vadd.f32 %v569_v52, %v426_v50 }
  0xf6   : > { %v609_v55 = vpop.f32.mrf.mxu3 }
  0xf8   : > { %v850_v56 = vpop.f32.mrf.mxu2  ;;  %v429_v60 = vpop.f32.mrf.mxu0 }
  0xf9   : > { %v1889_v59 = vadd.f32 %v850_v56, %v570_v54  ;;  %v572_v63 = vpop.f32.mrf.mxu1 }
  0xfa   : > { %v573_v6 = vadd.f32 %v572_v63, %v429_v60 }
  0xfb   : > { %v1551_v0 = vpack.c.bf16 %v1889_v59, %v1887_v58 }
  0xfd   : > { %1611 = vst [vmem:[%s1842_s21 + $0x20] sm:$0xff] %v1551_v0   ;;  %v610_v0 = vadd.f32 %v609_v55, %v1830_v57 }
  0xfe   : > { %v612_v51 = vpop.f32.mrf.mxu3 }
  0xff   : > { %v1895_v1 = vadd.f32 %v612_v51, %v1847_v3 }
 0x100   : > { %v853_v2 = vpop.f32.mrf.mxu2  ;;  %v431_v4 = vpop.f32.mrf.mxu0 }
 0x101   : > { %v574_v5 = vpop.f32.mrf.mxu1  ;;  %v1899_v11 = vadd.f32 %v853_v2, %v573_v6 }
 0x102   : > { %v575_v7 = vadd.f32 %v574_v5, %v431_v4 }
 0x106   : > { %v1897_v8 = vpop.f32.mrf.mxu3 }
 0x108   : > { %v855_v10 = vpop.f32.mrf.mxu2  ;;  %v434_v15 = vpop.f32.mrf.mxu0 }
 0x109   : > { %v1901_v12 = vadd.f32 %v855_v10, %v575_v7  ;;  %v577_v16 = vpop.f32.mrf.mxu1 }
 0x10a   : > { %v578_v23 = vadd.f32 %v577_v16, %v434_v15 }
 0x10b   : > { %v1556_v17 = vpack.c.bf16 %v1901_v12, %v1899_v11 }
 0x10d   : > { %1612 = vst [vmem:[%s1842_s21 + $0x28] sm:$0xff] %v1556_v17  }
 0x10e   : > { %v617_v3 = vpop.f32.mrf.mxu3 }
 0x10f   : > { %v1907_v18 = vadd.f32 %v617_v3, %v1861_v19 }
 0x110   : > { %v858_v20 = vpop.f32.mrf.mxu2  ;;  %v436_v21 = vpop.f32.mrf.mxu0 }
 0x111   : > { %v579_v22 = vpop.f32.mrf.mxu1  ;;  %v1911_v30 = vadd.f32 %v858_v20, %v578_v23 }
 0x112   : > { %v580_v24 = vadd.f32 %v579_v22, %v436_v21 }
 0x116   : > { %v1909_v26 = vpop.f32.mrf.mxu3 }
 0x118   : > { %v860_v27 = vpop.f32.mrf.mxu2  ;;  %v439_v32 = vpop.f32.mrf.mxu0 }
 0x119   : > { %v1913_v31 = vadd.f32 %v860_v27, %v580_v24  ;;  %v582_v33 = vpop.f32.mrf.mxu1 }
 0x11a   : > { %v583_v42 = vadd.f32 %v582_v33, %v439_v32  ;;  %v615_v32 = vadd.f32 %v1897_v8, %v1849_v9 }
 0x11b   : > { %v1561_v35 = vpack.c.bf16 %v1913_v31, %v1911_v30 }
 0x11d   : > { %1613 = vst [vmem:[%s1842_s21 + $0x30] sm:$0xff] %v1561_v35  }
 0x11e   : > { %v622_v19 = vpop.f32.mrf.mxu3 }
 0x11f   : > { %v1918_v36 = vadd.f32 %v622_v19, %v479_v34 }
 0x120   : > { %v863_v37 = vpop.f32.mrf.mxu2  ;;  %v441_v39 = vpop.f32.mrf.mxu0 }
 0x121   : > { %v584_v40 = vpop.f32.mrf.mxu1  ;;  %v1922_v47 = vadd.f32 %v863_v37, %v583_v42 }
 0x122   : > { %v585_v45 = vadd.f32 %v584_v40, %v441_v39 }
 0x126   : > { %v1920_v38 = vpop.f32.mrf.mxu3 }
 0x128   : > { %v865_v46 = vpop.f32.mrf.mxu2  ;;  %v444_v50 = vpop.f32.mrf.mxu0 }
 0x129   : > { %v1924_v49 = vadd.f32 %v865_v46, %v585_v45  ;;  %v587_v52 = vpop.f32.mrf.mxu1 }
 0x12a   : > { %v588_v63 = vadd.f32 %v587_v52, %v444_v50 }
 0x12b   : > { %v1566_v53 = vpack.c.bf16 %v1924_v49, %v1922_v47 }
 0x12d   : > { %1614 = vst [vmem:[%s1842_s21 + $0x38] sm:$0xff] %v1566_v53  }
 0x12e   : > { %v888_v34 = vpop.f32.mrf.mxu3 }
 0x12f   : > { %v1931_v4 = vadd.f32 %v888_v34, %v1885_v48  ;;  %v1004_v48 = vadd.f32 %v1836_v62, %v1834_v61 }
 0x130   : > { %v868_v54 = vpop.f32.mrf.mxu2  ;;  %v446_v56 = vpop.f32.mrf.mxu0 }
 0x131   : > { %v589_v60 = vpop.f32.mrf.mxu1  ;;  %v1935_v7 = vadd.f32 %v868_v54, %v588_v63  ;;  %v1005_v20 = vadd.f32 %v1004_v48, %v1853_v13 }
 0x132   : > { %v590_v51 = vadd.f32 %v589_v60, %v446_v56 }
 0x133   : > { %v1006_v23 = vadd.f32 %v1005_v20, %v1855_v14 }
 0x135   : > { %v1007_v24 = vadd.f32 %v1006_v23, %v1866_v28 }
 0x136   : > { %v890_v2 = vpop.f32.mrf.mxu3 }
 0x137   : > { %v1933_v6 = vadd.f32 %v890_v2, %v610_v0  ;;  %v1008_v33 = vadd.f32 %v1007_v24, %v1868_v29 }
 0x138   : > { %v870_v5 = vpop.f32.mrf.mxu2  ;;  %v449_v15 = vpop.f32.mrf.mxu0 }
 0x139   : > { %v1937_v10 = vadd.f32 %v870_v5, %v590_v51  ;;  %v1591_v16 = vpack.c.bf16 %v1933_v6, %v1931_v4  ;;  %v592_v17 = vpop.f32.mrf.mxu1  ;;  %v1009_v42 = vadd.f32 %v1008_v33, %v1877_v43 }
 0x13a   : > { %v593_v27 = vadd.f32 %v592_v17, %v449_v15  ;;  %v620_v15 = vadd.f32 %v1909_v26, %v1863_v25 }
 0x13b   : > { %v1571_v57 = vpack.c.bf16 %v1937_v10, %v1935_v7  ;;  %1619 = vst [vmem:[%s1842_s21 + $0x60] sm:$0xff] %v1591_v16   ;;  %v1010_v52 = vadd.f32 %v1009_v42, %v1879_v44 }
 0x13d   : > { %1615 = vst [vmem:[%s1842_s21 + $0x40] sm:$0xff] %v1571_v57   ;;  %v1011_v53 = vadd.f32 %v1010_v52, %v1887_v58 }
 0x13e   : > { %v893_v55 = vpop.f32.mrf.mxu3 }
 0x13f   : > { %v1954_v37 = vadd.f32 %v893_v55, %v1895_v1  ;;  %v1012_v34 = vadd.f32 %v1011_v53, %v1889_v59 }
 0x140   : > { %v873_v3 = vpop.f32.mrf.mxu2  ;;  %v451_v21 = vpop.f32.mrf.mxu0 }
 0x141   : > { %v594_v22 = vpop.f32.mrf.mxu1  ;;  %v1959_v45 = vadd.f32 %v873_v3, %v593_v27  ;;  %v1013_v60 = vadd.f32 %v1012_v34, %v1899_v11 }
 0x142   : > { %v595_v35 = vadd.f32 %v594_v22, %v451_v21 }
 0x143   : > { %v1014_v51 = vadd.f32 %v1013_v60, %v1901_v12 }
 0x145   : > { %v1015_v2 = vadd.f32 %v1014_v51, %v1911_v30 }
 0x146   : > { %v895_v19 = vpop.f32.mrf.mxu3 }
 0x147   : > { %v1956_v40 = vadd.f32 %v895_v19, %v615_v32  ;;  %v1016_v16 = vadd.f32 %v1015_v2, %v1913_v31 }
 0x148   : > { %v875_v39 = vpop.f32.mrf.mxu2  ;;  %v454_v50 = vpop.f32.mrf.mxu0 }
 0x149   : > { %v1961_v46 = vadd.f32 %v875_v39, %v595_v35  ;;  %v1596_v9 = vpack.c.bf16 %v1956_v40, %v1954_v37  ;;  %v597_v8 = vpop.f32.mrf.mxu1  ;;  %v1017_v20 = vadd.f32 %v1016_v16, %v1922_v47 }
 0x14a   : > { %v598_v5 = vadd.f32 %v597_v8, %v454_v50 }
 0x14b   : > { %v1576_v1 = vpack.c.bf16 %v1961_v46, %v1959_v45  ;;  %1620 = vst [vmem:[%s1842_s21 + $0x68] sm:$0xff] %v1596_v9   ;;  %v1018_v32 = vadd.f32 %v1017_v20, %v1924_v49 }
 0x14d   : > { %1616 = vst [vmem:[%s1842_s21 + $0x48] sm:$0xff] %v1576_v1   ;;  %v1019_v25 = vadd.f32 %v1018_v32, %v1935_v7  ;;  %v625_v1 = vadd.f32 %v1920_v38, %v1875_v41 }
 0x14e   : > { %v898_v54 = vpop.f32.mrf.mxu3 }
 0x14f   : > { %v936_v48 = vadd.f32 %v898_v54, %v1907_v18  ;;  %v1020_v26 = vadd.f32 %v1019_v25, %v1937_v10 }
 0x150   : > { %v878_v56 = vpop.f32.mrf.mxu2  ;;  %v456_v63 = vpop.f32.mrf.mxu0 }
 0x151   : > { %v599_v0 = vpop.f32.mrf.mxu1  ;;  %v928_v21 = vadd.f32 %v878_v56, %v598_v5  ;;  %v1021_v19 = vadd.f32 %v1020_v26, %v1959_v45 }
 0x152   : > { %v600_v17 = vadd.f32 %v599_v0, %v456_v63 }
 0x153   : > { %v1022_v42 = vadd.f32 %v1021_v19, %v1961_v46 }
 0x155   : > { %v1023_v8 = vadd.f32 %v1022_v42, %v928_v21 }
 0x156   : > { %v900_v57 = vpop.f32.mrf.mxu3 }
 0x157   : > { %v937_v3 = vadd.f32 %v900_v57, %v620_v15 }
 0x158   : > { %v880_v55 = vpop.f32.mrf.mxu2  ;;  %v459_v24 = vpop.f32.mrf.mxu0 }
 0x159   : > { %v929_v22 = vadd.f32 %v880_v55, %v600_v17  ;;  %v1601_v23 = vpack.c.bf16 %v937_v3, %v936_v48  ;;  %v602_v27 = vpop.f32.mrf.mxu1 }
 0x15a   : > { %v603_v39 = vadd.f32 %v602_v27, %v459_v24 }
 0x15b   : > { %v1581_v33 = vpack.c.bf16 %v929_v22, %v928_v21  ;;  %1621 = vst [vmem:[%s1842_s21 + $0x70] sm:$0xff] %v1601_v23   ;;  %v1024_v53 = vadd.f32 %v1023_v8, %v929_v22 }
 0x15d   : > { %1617 = vst [vmem:[%s1842_s21 + $0x50] sm:$0xff] %v1581_v33  }
 0x15e   : > { %v903_v35 = vpop.f32.mrf.mxu3 }
 0x15f   : > { %v938_v56 = vadd.f32 %v903_v35, %v1918_v36 }
 0x160   : > { %v883_v18 = vpop.f32.mrf.mxu2  ;;  %v461_v50 = vpop.f32.mrf.mxu0 }
 0x161   : > { %v604_v9 = vpop.f32.mrf.mxu1  ;;  %v930_v52 = vadd.f32 %v883_v18, %v603_v39 }
 0x162   : > { %v605_v34 = vadd.f32 %v604_v9, %v461_v50 }
 0x163   : > { %v1025_v0 = vadd.f32 %v1024_v53, %v930_v52 }
 0x166   : > { %v905_v54 = vpop.f32.mrf.mxu3 }
 0x167   : > { %v939_v63 = vadd.f32 %v905_v54, %v625_v1 }
 0x168   : > { %v885_v60 = vpop.f32.mrf.mxu2 }
 0x169   : > { %v931_v51 = vadd.f32 %v885_v60, %v605_v34  ;;  %v1606_v2 = vpack.c.bf16 %v939_v63, %v938_v56 }
 0x16b   : > { %v1586_v5 = vpack.c.bf16 %v931_v51, %v930_v52  ;;  %v1026_v15 = vadd.f32 %v1025_v0, %v931_v51  ;;  %1622 = vst [vmem:[%s1842_s21 + $0x78] sm:$0xff] %v1606_v2  }
 0x16d   : > { %1618 = vst [vmem:[%s1842_s21 + $0x58] sm:$0xff] %v1586_v5   ;;  %v1027_v16 = vadd.f32 %v1026_v15, %v1931_v4 }
 0x16f   : > { %v1028_v41 = vadd.f32 %v1027_v16, %v1933_v6 }
 0x171   : > { %v1029_v38 = vadd.f32 %v1028_v41, %v1954_v37 }
 0x173   : > { %v1030_v17 = vadd.f32 %v1029_v38, %v1956_v40 }
 0x175   : > { %v1031_v36 = vadd.f32 %v1030_v17, %v936_v48 }
 0x177   : > { %v1032_v57 = vadd.f32 %v1031_v36, %v937_v3 }
 0x179   : > { %v1033_v55 = vadd.f32 %v1032_v57, %v938_v56 }
 0x17b   : > { %v1034_v20 = vadd.f32 %v1033_v55, %v939_v63 }
 0x17d   : > { %v1035_v23 = vrot.slane %v1034_v20, 4 }
 0x17f   : > { %v1036_v24 = vadd.f32 %v1035_v23, %v1034_v20 }
 0x181   : > { %v1037_v27 = vrot.slane %v1036_v24, 2 }
 0x183   : > { %v1038_v32 = vadd.f32 %v1037_v27, %v1036_v24 }
 0x185   : > { %v1039_v33 = vrot.slane %v1038_v32, 1 }
 0x187   : > { %v1040_v25 = vadd.f32 %v1039_v33, %v1038_v32 }
 0x189   : > { %1143 = vst [vmem:[%s2001_s25] sm:$0x1] %v1040_v25  ;;  %v2004_v26 = vmul.f32 0.00390625, %v1040_v25 }
 0x18b   : > { %v2007_v35 = vsub.f32 %v928_v21, %v2004_v26  ;;  %v2010_v18 = vsub.f32 %v929_v22, %v2004_v26  ;;  %v2013_v19 = vsub.f32 %v930_v52, %v2004_v26  ;;  %v2016_v39 = vsub.f32 %v931_v51, %v2004_v26 }
 0x18c   : > { %v2019_v42 = vsub.f32 %v936_v48, %v2004_v26  ;;  %v2022_v50 = vsub.f32 %v937_v3, %v2004_v26  ;;  %v2025_v9 = vsub.f32 %v938_v56, %v2004_v26  ;;  %v2028_v21 = vsub.f32 %v939_v63, %v2004_v26 }
 0x18d   : > { %v1042_v22 = vsub.f32 %v1834_v61, %v2004_v26  ;;  %v1043_v8 = vsub.f32 %v1836_v62, %v2004_v26  ;;  %v1044_v52 = vsub.f32 %v1853_v13, %v2004_v26  ;;  %v1045_v3 = vsub.f32 %v1855_v14, %v2004_v26 }
 0x18e   : > { %v1046_v53 = vsub.f32 %v1866_v28, %v2004_v26  ;;  %v1047_v56 = vsub.f32 %v1868_v29, %v2004_v26  ;;  %v1048_v62 = vsub.f32 %v1877_v43, %v2004_v26  ;;  %v1049_v0 = vsub.f32 %v1879_v44, %v2004_v26 }
 0x18f   : > { %v1074_v48 = vmul.f32 %v1042_v22, %v1042_v22  ;;  %v1075_v1 = vmul.f32 %v1043_v8, %v1043_v8  ;;  %v1076_v34 = vmul.f32 %v1044_v52, %v1044_v52  ;;  %v1077_v61 = vmul.f32 %v1045_v3, %v1045_v3 }
 0x190   : > { %v1078_v63 = vmul.f32 %v1046_v53, %v1046_v53  ;;  %v1079_v51 = vmul.f32 %v1047_v56, %v1047_v56  ;;  %v1050_v28 = vsub.f32 %v1887_v58, %v2004_v26  ;;  %v1080_v2 = vmul.f32 %v1048_v62, %v1048_v62 }
 0x191   : > { %v1106_v54 = vadd.f32 %v1075_v1, %v1074_v48  ;;  %v1051_v29 = vsub.f32 %v1889_v59, %v2004_v26  ;;  %v1081_v15 = vmul.f32 %v1049_v0, %v1049_v0  ;;  %v1052_v43 = vsub.f32 %v1899_v11, %v2004_v26 }
 0x192   : > { %v1082_v41 = vmul.f32 %v1050_v28, %v1050_v28  ;;  %v1053_v44 = vsub.f32 %v1901_v12, %v2004_v26  ;;  %v1054_v58 = vsub.f32 %v1911_v30, %v2004_v26  ;;  %v1055_v59 = vsub.f32 %v1913_v31, %v2004_v26 }
 0x193   : > { %v1107_v60 = vadd.f32 %v1106_v54, %v1076_v34  ;;  %v1083_v17 = vmul.f32 %v1051_v29, %v1051_v29  ;;  %v1084_v57 = vmul.f32 %v1052_v43, %v1052_v43  ;;  %v1056_v11 = vsub.f32 %v1922_v47, %v2004_v26 }
 0x194   : > { %v1085_v20 = vmul.f32 %v1053_v44, %v1053_v44  ;;  %v1086_v24 = vmul.f32 %v1054_v58, %v1054_v58  ;;  %v1057_v12 = vsub.f32 %v1924_v49, %v2004_v26  ;;  %v1087_v32 = vmul.f32 %v1055_v59, %v1055_v59 }
 0x195   : > { %v1108_v13 = vadd.f32 %v1107_v60, %v1077_v61  ;;  %v1058_v30 = vsub.f32 %v1935_v7, %v2004_v26  ;;  %v1088_v25 = vmul.f32 %v1056_v11, %v1056_v11  ;;  %v1059_v31 = vsub.f32 %v1937_v10, %v2004_v26 }
 0x196   : > { %v1089_v8 = vmul.f32 %v1057_v12, %v1057_v12  ;;  %v1060_v47 = vsub.f32 %v1959_v45, %v2004_v26  ;;  %v1061_v49 = vsub.f32 %v1961_v46, %v2004_v26  ;;  %v1094_v61 = vmul.f32 %v2007_v35, %v2007_v35 }
 0x197   : > { %v1109_v14 = vadd.f32 %v1108_v13, %v1078_v63  ;;  %v1090_v48 = vmul.f32 %v1058_v30, %v1058_v30  ;;  %v1091_v3 = vmul.f32 %v1059_v31, %v1059_v31  ;;  %v1095_v60 = vmul.f32 %v2010_v18, %v2010_v18 }
 0x198   : > { %v1092_v34 = vmul.f32 %v1060_v47, %v1060_v47  ;;  %v1093_v7 = vmul.f32 %v1061_v49, %v1061_v49  ;;  %v1066_v45 = vsub.f32 %v1931_v4, %v2004_v26  ;;  %v1096_v46 = vmul.f32 %v2013_v19, %v2013_v19 }
 0x199   : > { %v1110_v5 = vadd.f32 %v1109_v14, %v1079_v51  ;;  %v1067_v13 = vsub.f32 %v1933_v6, %v2004_v26  ;;  %v1097_v0 = vmul.f32 %v2016_v39, %v2016_v39  ;;  %v1068_v35 = vsub.f32 %v1954_v37, %v2004_v26 }
 0x19a   : > { %v1098_v14 = vmul.f32 %v1066_v45, %v1066_v45  ;;  %v1069_v28 = vsub.f32 %v1956_v40, %v2004_v26  ;;  %v1102_v6 = vmul.f32 %v2019_v42, %v2019_v42  ;;  %v1104_v43 = vmul.f32 %v2025_v9, %v2025_v9 }
 0x19b   : > { %v1111_v16 = vadd.f32 %v1110_v5, %v1080_v2  ;;  %v1099_v4 = vmul.f32 %v1067_v13, %v1067_v13  ;;  %v1100_v5 = vmul.f32 %v1068_v35, %v1068_v35  ;;  %v1105_v40 = vmul.f32 %v2028_v21, %v2028_v21 }
 0x19c   : > { %v1101_v29 = vmul.f32 %v1069_v28, %v1069_v28 }
 0x19d   : > { %v1112_v38 = vadd.f32 %v1111_v16, %v1081_v15  ;;  %v1103_v16 = vmul.f32 %v2022_v50, %v2022_v50 }
 0x19f   : > { %v1113_v36 = vadd.f32 %v1112_v38, %v1082_v41 }
 0x1a1   : > { %v1114_v55 = vadd.f32 %v1113_v36, %v1083_v17 }
 0x1a3   : > { %v1115_v23 = vadd.f32 %v1114_v55, %v1084_v57 }
 0x1a5   : > { %v1116_v27 = vadd.f32 %v1115_v23, %v1085_v20 }
 0x1a7   : > { %v1117_v33 = vadd.f32 %v1116_v27, %v1086_v24 }
 0x1a9   : > { %v1118_v22 = vadd.f32 %v1117_v33, %v1087_v32 }
 0x1ab   : > { %v1119_v52 = vadd.f32 %v1118_v22, %v1088_v25 }
 0x1ad   : > { %v1120_v1 = vadd.f32 %v1119_v52, %v1089_v8 }
 0x1af   : > { %v1121_v53 = vadd.f32 %v1120_v1, %v1090_v48 }
 0x1b1   : > { %v1122_v54 = vadd.f32 %v1121_v53, %v1091_v3 }
 0x1b3   : > { %v1123_v56 = vadd.f32 %v1122_v54, %v1092_v34 }
 0x1b5   : > { %v1124_v10 = vadd.f32 %v1123_v56, %v1093_v7 }
 0x1b7   : > { %v1125_v62 = vadd.f32 %v1124_v10, %v1094_v61 }
 0x1b9   : > { %v1126_v63 = vadd.f32 %v1125_v62, %v1095_v60 }
 0x1bb   : > { %v1127_v51 = vadd.f32 %v1126_v63, %v1096_v46 }
 0x1bd   : > { %v1128_v18 = vadd.f32 %v1127_v51, %v1097_v0 }
 0x1bf   : > { %v1129_v2 = vadd.f32 %v1128_v18, %v1098_v14 }
 0x1c1   : > { %v1130_v19 = vadd.f32 %v1129_v2, %v1099_v4 }
 0x1c3   : > { %v1131_v15 = vadd.f32 %v1130_v19, %v1100_v5 }
 0x1c5   : > { %v1132_v39 = vadd.f32 %v1131_v15, %v1101_v29 }
 0x1c7   : > { %v1133_v37 = vadd.f32 %v1132_v39, %v1102_v6 }
 0x1c9   : > { %v1134_v41 = vadd.f32 %v1133_v37, %v1103_v16 }
 0x1cb   : > { %v1135_v26 = vadd.f32 %v1134_v41, %v1104_v43 }
 0x1cd   : > { %v1136_v38 = vadd.f32 %v1135_v26, %v1105_v40 }
 0x1cf   : > { %v1137_v44 = vrot.slane %v1136_v38, 4 }
 0x1d1   : > { %v1138_v17 = vadd.f32 %v1137_v44, %v1136_v38 }
 0x1d3   : > { %v1139_v36 = vrot.slane %v1138_v17, 2 }
 0x1d5   : > { %v1140_v58 = vadd.f32 %v1139_v36, %v1138_v17 }
 0x1d7   : > { %v1141_v57 = vrot.slane %v1140_v58, 1 }
 0x1d9   : > { %v1142_v42 = vadd.f32 %v1141_v57, %v1140_v58 }
 0x1db   : > { %1144 = vst [vmem:[%s2001_s25 + $0x1] sm:$0x1] %v1142_v42 }
 0x1dc PF: > { %s14_s12 = sadd.s32 1, %s1661_s12  }
 0x1dd   : > { %p11_p6 = scmp.ge.s32.totalorder %s14_s12, 4  }
 0x1df   :  { %13 = sbr.rel (!%p11_p6) target bundleno = 1 (0x1), region = 70 }

</bundles_post_ra>
